<compile_context>
chip_gen: v7x
topology: tpu7x:2x2x1
jax: 0.10.0
libtpu: 0.0.40
codegen_flags: <defaults>
</compile_context>

<pallas_src>
import functools

import jax
import jax.numpy as jnp
from jax import lax
from jax.experimental import pallas as pl
from jax.experimental.pallas import tpu as pltpu

# ----------------------------- scaled-down config ----------------------------
B = 2
IN_CH = 3
IMG = (32, 32, 16)                       # (D, H, W)   [full model: (128, 128, 64)]
PATCH = (8, 8, 8)                        # [full model: (16, 16, 16)]
GRID3 = tuple(s // p for s, p in zip(IMG, PATCH))
N_PATCH = GRID3[0] * GRID3[1] * GRID3[2]         # 32   [full: 256]
HIDDEN = 128                                     # [full: 2048]
HEADS = 4                                        # [full: 32]
HEAD_DIM = HIDDEN // HEADS
MLP_DIM = 192                                    # [full: 3072]
LAYERS = 4                                       # [full: 16]
POOL_K = 3                                       # nn.AvgPool2d(3, stride=3)
P_OUT = N_PATCH // POOL_K                        # 10   [full: 85]
Q_OUT = HIDDEN // POOL_K                         # 42   [full: 682]
FC_DIMS = (128, 64, 32, 2)                       # [full: (512, 128, 64, 2)]
LN_EPS = 1e-5                                    # nn.LayerNorm default
PATCH_DIM = IN_CH * PATCH[0] * PATCH[1] * PATCH[2]
VEC_W = max(HIDDEN, MLP_DIM)                     # lane width of the packed per-layer vectors


# ----------------------------- in-kernel helpers ------------------------------
def _erf(x):
    # Abramowitz & Stegun 7.1.26, |err| <= 1.5e-7 — exact-GELU erf in f32.
    a1, a2, a3, a4, a5 = 0.254829592, -0.284496736, 1.421413741, -1.453152027, 1.061405429
    p = 0.3275911
    s = jnp.where(x >= 0.0, 1.0, -1.0)
    z = jnp.abs(x)
    t = 1.0 / (1.0 + p * z)
    poly = ((((a5 * t + a4) * t + a3) * t + a2) * t + a1) * t
    return s * (1.0 - poly * jnp.exp(-z * z))


def _gelu_exact(x):
    return 0.5 * x * (1.0 + _erf(x * 0.7071067811865476))


def _layernorm(x, g, b, eps):
    # x: (N, D) f32; g, b: (1, D) f32.  Statistics kept in f32.
    mu = jnp.mean(x, axis=-1, keepdims=True)
    xc = x - mu
    var = jnp.mean(xc * xc, axis=-1, keepdims=True)
    return xc * lax.rsqrt(var + eps) * g + b


def _bf16(x):
    return x.astype(jnp.bfloat16)


# ----------------------------- fused kernel -----------------------------------
def _vit_kernel(patches_ref, pw_ref, posb_ref,
                qkv_w_ref, proj_w_ref, fc1_w_ref, fc2_w_ref, vec_ref,
                a2_ref, w1f_ref, b1_ref, w2_ref, b2_ref, w3_ref, b3_ref,
                w4_ref, b4_ref,
                o_ref, h_ref,
                *, batch, n_tok, heads, head_dim, p_out, eps):
    layer = pl.program_id(0)
    hidden = heads * head_dim
    mlp = fc1_w_ref.shape[1]

    # ---- patch embedding: conv-as-matmul + (conv bias + position embedding) ----
    @pl.when(layer == 0)
    def _():
        h_ref[...] = jnp.dot(patches_ref[...], pw_ref[...],
                             preferred_element_type=jnp.float32) + posb_ref[...]

    h = h_ref[...]                                           # (B*Np, H) f32, VMEM-resident
    vec = vec_ref[...]                                       # (8, VEC_W) packed f32 vectors
    ln1_g, ln1_b = vec[0:1, :hidden], vec[1:2, :hidden]
    ln2_g, ln2_b = vec[2:3, :hidden], vec[3:4, :hidden]
    proj_b, fc2_b = vec[4:5, :hidden], vec[5:6, :hidden]
    fc1_b = vec[6:7, :mlp]

    # ---- x = x + attn(norm1(x)) ----
    n1 = _layernorm(h, ln1_g, ln1_b, eps)
    # scale (head_dim**-0.5) folded into the Q columns of qkv_w; qkv_bias=False (dropped).
    qkv = jnp.dot(_bf16(n1), qkv_w_ref[...],
                  preferred_element_type=jnp.float32)        # (B*Np, 3H) f32
    q = qkv[:, :hidden].reshape(batch, n_tok, hidden)        # leading-dim split only
    k = qkv[:, hidden:2 * hidden].reshape(batch, n_tok, hidden)
    v = qkv[:, 2 * hidden:].reshape(batch, n_tok, hidden)

    outs = []
    for hh in range(heads):                                  # small unrolled head loop
        sl = slice(hh * head_dim, (hh + 1) * head_dim)
        s = jnp.einsum('bqd,bkd->bqk', _bf16(q[:, :, sl]), _bf16(k[:, :, sl]),
                       preferred_element_type=jnp.float32)   # (B, Np, Np) f32
        s = s - jnp.max(s, axis=-1, keepdims=True)
        e = jnp.exp(s)
        p = e / jnp.sum(e, axis=-1, keepdims=True)           # exact softmax
        outs.append(jnp.einsum('bqk,bkd->bqd', _bf16(p), _bf16(v[:, :, sl]),
                               preferred_element_type=jnp.float32))
    att = jnp.concatenate(outs, axis=-1).reshape(batch * n_tok, hidden)
    h = h + jnp.dot(_bf16(att), proj_w_ref[...],
                    preferred_element_type=jnp.float32) + proj_b

    # ---- x = x + mlp(norm2(x)) ----
    n2 = _layernorm(h, ln2_g, ln2_b, eps)
    m1 = _gelu_exact(jnp.dot(_bf16(n2), fc1_w_ref[...],
                             preferred_element_type=jnp.float32) + fc1_b)
    h = h + jnp.dot(_bf16(m1), fc2_w_ref[...],
                    preferred_element_type=jnp.float32) + fc2_b
    h_ref[...] = h

    # ---- AvgPool2d(3,3) + flatten + 4-layer FC head (last layer only) ----
    @pl.when(layer == pl.num_programs(0) - 1)
    def _():
        # Block-diagonal row pooling over both batch elements at once; rows ordered (p, b).
        t = jnp.dot(a2_ref[...], _bf16(h),
                    preferred_element_type=jnp.float32)      # (P_OUT*B, H) f32
        z = jnp.zeros((batch, w1f_ref.shape[2]), jnp.float32)
        for pp in range(p_out):                              # flatten+FC1; Bm folded into w1f
            tp = t[pp * batch:(pp + 1) * batch, :]           # (B, H)
            z = z + jnp.dot(_bf16(tp), w1f_ref[pp],
                            preferred_element_type=jnp.float32)
        y = jnp.maximum(z + b1_ref[...], 0.0)
        y = jnp.maximum(jnp.dot(_bf16(y), w2_ref[...],
                                preferred_element_type=jnp.float32) + b2_ref[...], 0.0)
        y = jnp.maximum(jnp.dot(_bf16(y), w3_ref[...],
                                preferred_element_type=jnp.float32) + b3_ref[...], 0.0)
        o_ref[...] = jnp.dot(_bf16(y), w4_ref[...],
                             preferred_element_type=jnp.float32) + b4_ref[...]


# ----------------------------- kernel wrapper ----------------------------------
def vit_fused_call(patches, p):
    def cspec(*shape):                                   # fetched once (constant index map)
        z = (0,) * len(shape)
        return pl.BlockSpec(shape, lambda l, z=z: z)

    def lspec(*shape):                                   # per-layer stacked weight
        z = (0,) * len(shape)
        return pl.BlockSpec((None,) + shape, lambda l, z=z: (l,) + z)

    kernel = functools.partial(_vit_kernel, batch=B, n_tok=N_PATCH,
                               heads=HEADS, head_dim=HEAD_DIM,
                               p_out=P_OUT, eps=LN_EPS)
    return pl.pallas_call(
        kernel,
        grid=(LAYERS,),
        in_specs=[
            cspec(B * N_PATCH, PATCH_DIM),               # patches
            cspec(PATCH_DIM, HIDDEN),                    # patch_w
            cspec(B * N_PATCH, HIDDEN),                  # pos emb + conv bias, tiled over batch
            lspec(HIDDEN, 3 * HIDDEN),                   # qkv_w (scale folded)
            lspec(HIDDEN, HIDDEN),                       # proj_w
            lspec(HIDDEN, MLP_DIM),                      # mlp fc1_w
            lspec(MLP_DIM, HIDDEN),                      # mlp fc2_w
            lspec(8, VEC_W),                             # packed per-layer vectors
            cspec(P_OUT * B, B * N_PATCH),               # block-diag row-pool matrix
            cspec(P_OUT, HIDDEN, FC_DIMS[0]),            # W1 with column pooling folded in
            cspec(1, FC_DIMS[0]),
            cspec(FC_DIMS[0], FC_DIMS[1]), cspec(1, FC_DIMS[1]),
            cspec(FC_DIMS[1], FC_DIMS[2]), cspec(1, FC_DIMS[2]),
            cspec(FC_DIMS[2], FC_DIMS[3]), cspec(1, FC_DIMS[3]),
        ],
        out_specs=cspec(B, FC_DIMS[3]),
        out_shape=jax.ShapeDtypeStruct((B, FC_DIMS[3]), jnp.float32),
        scratch_shapes=[pltpu.VMEM((B * N_PATCH, HIDDEN), jnp.float32)],   # residual stream
        compiler_params=pltpu.CompilerParams(dimension_semantics=("arbitrary",)),
    )(patches, p["patch_w"], p["posb"],
      p["qkv_w"], p["proj_w"], p["fc1_w"], p["fc2_w"], p["vecs"],
      p["a2"], p["w1f"], p["b1"], p["w2"], p["b2"], p["w3"], p["b3"],
      p["w4"], p["b4"])


# ----------------------------- params ------------------------------------------
def init_params(key):
    def nrm(k, shape, std=0.02):
        return std * jax.random.normal(k, shape, jnp.float32)

    ks = iter(jax.random.split(key, 24))
    scale = HEAD_DIM ** -0.5

    # Conv3d(kernel=stride=patch) folded to a matmul (PATCH_DIM, HIDDEN), bf16 for MXU.
    patch_w = _bf16(nrm(next(ks), (PATCH_DIM, HIDDEN)))
    patch_b = nrm(next(ks), (1, HIDDEN))
    pos_emb = nrm(next(ks), (N_PATCH, HIDDEN))
    posb = jnp.tile(pos_emb + patch_b, (B, 1))                       # (B*Np, H) f32

    # Per-layer weights stacked along a leading LAYERS axis (layer grid axis).
    qkv_w = nrm(next(ks), (LAYERS, HIDDEN, 3 * HIDDEN))
    qkv_w = _bf16(qkv_w.at[:, :, :HIDDEN].multiply(scale))           # fold attention scale
    proj_w = _bf16(nrm(next(ks), (LAYERS, HIDDEN, HIDDEN)))
    fc1_w = _bf16(nrm(next(ks), (LAYERS, HIDDEN, MLP_DIM)))
    fc2_w = _bf16(nrm(next(ks), (LAYERS, MLP_DIM, HIDDEN)))

    proj_b = nrm(next(ks), (LAYERS, HIDDEN))
    fc1_b = nrm(next(ks), (LAYERS, MLP_DIM))
    fc2_b = nrm(next(ks), (LAYERS, HIDDEN))
    # Packed per-layer f32 vectors: [ln1_g, ln1_b, ln2_g, ln2_b, proj_b, fc2_b, fc1_b, pad].
    vecs = jnp.zeros((LAYERS, 8, VEC_W), jnp.float32)
    vecs = vecs.at[:, 0, :HIDDEN].set(1.0)                           # ln1 gamma (beta=0)
    vecs = vecs.at[:, 2, :HIDDEN].set(1.0)                           # ln2 gamma (beta=0)
    vecs = vecs.at[:, 4, :HIDDEN].set(proj_b)
    vecs = vecs.at[:, 5, :HIDDEN].set(fc2_b)
    vecs = vecs.at[:, 6, :MLP_DIM].set(fc1_b)

    # AvgPool2d(3, stride=3, floor) over the (seq, hidden) plane, expressed as matmuls.
    rows = jnp.arange(N_PATCH)
    a = ((rows[None, :] // POOL_K) == jnp.arange(P_OUT)[:, None]).astype(jnp.float32) / POOL_K
    # Block-diagonal over batch, rows ordered (p, b): a2[p*B+b, b*Np+n] = a[p, n].
    a2 = _bf16((jnp.eye(B)[None, :, :, None] * a[:, None, None, :])
               .reshape(P_OUT * B, B * N_PATCH))
    cols = jnp.arange(HIDDEN)
    bm = ((cols[:, None] // POOL_K) == jnp.arange(Q_OUT)[None, :]).astype(jnp.float32) / POOL_K
    # Fold column pooling into FC1 (math-equivalent reparameterization): (P, H, FC1) bf16.
    w1 = nrm(next(ks), (P_OUT, Q_OUT, FC_DIMS[0]))                   # row-major flatten of (P*Q, FC1)
    w1f = _bf16(jnp.einsum('hq,pqf->phf', bm, w1))

    params = {
        "patch_w": patch_w, "posb": posb,
        "qkv_w": qkv_w, "proj_w": proj_w, "fc1_w": fc1_w, "fc2_w": fc2_w, "vecs": vecs,
        "a2": a2, "w1f": w1f,
        "b1": nrm(next(ks), (1, FC_DIMS[0])),
        "w2": _bf16(nrm(next(ks), (FC_DIMS[0], FC_DIMS[1]))),
        "b2": nrm(next(ks), (1, FC_DIMS[1])),
        "w3": _bf16(nrm(next(ks), (FC_DIMS[1], FC_DIMS[2]))),
        "b3": nrm(next(ks), (1, FC_DIMS[2])),
        "w4": _bf16(nrm(next(ks), (FC_DIMS[2], FC_DIMS[3]))),
        "b4": nrm(next(ks), (1, FC_DIMS[3])),
    }
    return params


# ----------------------------- forward ------------------------------------------
def extract_patches(x):
    # x: (B, C, D, H, W) NCDHW. Patch features ordered (C, pd, ph, pw), patches ordered
    # (d', h', w') — exactly Conv3d(stride=patch) + flatten(2).transpose.  Pure layout glue.
    Bb, C, D, H, W = x.shape
    pd, ph, pw = PATCH
    gd, gh, gw = D // pd, H // ph, W // pw
    x = x.reshape(Bb, C, gd, pd, gh, ph, gw, pw)
    x = x.transpose(0, 2, 4, 6, 1, 3, 5, 7)
    return x.reshape(Bb, gd * gh * gw, C * pd * ph * pw)


def vit_classifier_forward(params, x):
    # TODO(synk): ViTAutoEnc's final norm + transposed-conv decoder branch is not built
    # since forward() only consumes hidden_states_out[num_layers-1]; all dropouts are p=0.
    patches = extract_patches(x).reshape(B * N_PATCH, PATCH_DIM).astype(jnp.bfloat16)
    return vit_fused_call(patches, params)                           # (B, 2) f32


# ----------------------------- main ---------------------------------------------
if __name__ == "__main__":
    key = jax.random.PRNGKey(0)
    pkey, xkey = jax.random.split(key)
    params = init_params(pkey)
    x = jax.random.normal(xkey, (B, IN_CH) + IMG, jnp.float32)       # NCDHW

    out = jax.jit(vit_classifier_forward)(params, x)
    out = jax.block_until_ready(out)
    assert out.shape == (B, FC_DIMS[-1]) and out.dtype == jnp.float32
    assert bool(jnp.all(jnp.isfinite(out)))
    print("KERNEL_OK")
</pallas_src>

<mosaic_0001>
module attributes {stable_mosaic.version = 11 : i64} {
  func.func @_vit_kernel(%arg0: i32, %arg1: memref<64x1536xbf16, #tpu.memory_space<vmem>>, %arg2: memref<1536x128xbf16, #tpu.memory_space<vmem>>, %arg3: memref<64x128xf32, #tpu.memory_space<vmem>>, %arg4: memref<1x128x384xbf16, #tpu.memory_space<vmem>>, %arg5: memref<1x128x128xbf16, #tpu.memory_space<vmem>>, %arg6: memref<1x128x192xbf16, #tpu.memory_space<vmem>>, %arg7: memref<1x192x128xbf16, #tpu.memory_space<vmem>>, %arg8: memref<1x8x192xf32, #tpu.memory_space<vmem>>, %arg9: memref<20x64xbf16, #tpu.memory_space<vmem>>, %arg10: memref<10x128x128xbf16, #tpu.memory_space<vmem>>, %arg11: memref<1x128xf32, #tpu.memory_space<vmem>>, %arg12: memref<128x64xbf16, #tpu.memory_space<vmem>>, %arg13: memref<1x64xf32, #tpu.memory_space<vmem>>, %arg14: memref<64x32xbf16, #tpu.memory_space<vmem>>, %arg15: memref<1x32xf32, #tpu.memory_space<vmem>>, %arg16: memref<32x2xbf16, #tpu.memory_space<vmem>>, %arg17: memref<1x2xf32, #tpu.memory_space<vmem>>, %arg18: memref<2x2xf32, #tpu.memory_space<vmem>>, %arg19: memref<64x128xf32, #tpu.memory_space<vmem>>) attributes {dimension_semantics = [#tpu.dimension_semantics<arbitrary>], iteration_bounds = array<i64: 4>, scalar_prefetch = 0 : i64, scratch_operands = 1 : i64, tpu.core_type = #tpu.core_type<tc>, window_params = [{pipeline_mode = #tpu.pipeline_mode<synchronous>, transform_indices = @transform_0, window_bounds = array<i64: 64, 1536>}, {pipeline_mode = #tpu.pipeline_mode<synchronous>, transform_indices = @transform_1, window_bounds = array<i64: 1536, 128>}, {pipeline_mode = #tpu.pipeline_mode<synchronous>, transform_indices = @transform_2, window_bounds = array<i64: 64, 128>}, {transform_indices = @transform_3, window_bounds = array<i64: 1, 128, 384>}, {transform_indices = @transform_4, window_bounds = array<i64: 1, 128, 128>}, {transform_indices = @transform_5, window_bounds = array<i64: 1, 128, 192>}, {transform_indices = @transform_6, window_bounds = array<i64: 1, 192, 128>}, {transform_indices = @transform_7, window_bounds = array<i64: 1, 8, 192>}, {pipeline_mode = #tpu.pipeline_mode<synchronous>, transform_indices = @transform_8, window_bounds = array<i64: 20, 64>}, {pipeline_mode = #tpu.pipeline_mode<synchronous>, transform_indices = @transform_9, window_bounds = array<i64: 10, 128, 128>}, {pipeline_mode = #tpu.pipeline_mode<synchronous>, transform_indices = @transform_10, window_bounds = array<i64: 1, 128>}, {pipeline_mode = #tpu.pipeline_mode<synchronous>, transform_indices = @transform_11, window_bounds = array<i64: 128, 64>}, {pipeline_mode = #tpu.pipeline_mode<synchronous>, transform_indices = @transform_12, window_bounds = array<i64: 1, 64>}, {pipeline_mode = #tpu.pipeline_mode<synchronous>, transform_indices = @transform_13, window_bounds = array<i64: 64, 32>}, {pipeline_mode = #tpu.pipeline_mode<synchronous>, transform_indices = @transform_14, window_bounds = array<i64: 1, 32>}, {pipeline_mode = #tpu.pipeline_mode<synchronous>, transform_indices = @transform_15, window_bounds = array<i64: 32, 2>}, {pipeline_mode = #tpu.pipeline_mode<synchronous>, transform_indices = @transform_16, window_bounds = array<i64: 1, 2>}, {pipeline_mode = #tpu.pipeline_mode<synchronous>, transform_indices = @transform_17, window_bounds = array<i64: 2, 2>}]} {
    %c0_i32 = arith.constant 0 : i32
    %0 = arith.cmpi eq, %arg0, %c0_i32 : i32
    %1 = arith.extui %0 : i1 to i32
    %c0_i32_0 = arith.constant 0 : i32
    %2 = arith.cmpi ne, %1, %c0_i32_0 : i32
    scf.if %2 {
      %c0_65 = arith.constant 0 : index
      %c0_66 = arith.constant 0 : index
      %202 = vector.load %arg1[%c0_65, %c0_66] : memref<64x1536xbf16, #tpu.memory_space<vmem>>, vector<64x1536xbf16>
      %c0_67 = arith.constant 0 : index
      %c0_68 = arith.constant 0 : index
      %203 = vector.load %arg2[%c0_67, %c0_68] : memref<1536x128xbf16, #tpu.memory_space<vmem>>, vector<1536x128xbf16>
      %cst_69 = arith.constant dense<0.000000e+00> : vector<64x128xf32>
      %204 = tpu.matmul %202, %203, %cst_69 {dimension_numbers = #tpu.dot_dimension_numbers<[1], [0], [0], [1], [0, 0, 1, 1], [], []>} : vector<64x1536xbf16>, vector<1536x128xbf16>, vector<64x128xf32> -> vector<64x128xf32>
      %c0_70 = arith.constant 0 : index
      %c0_71 = arith.constant 0 : index
      %205 = vector.load %arg3[%c0_70, %c0_71] : memref<64x128xf32, #tpu.memory_space<vmem>>, vector<64x128xf32>
      %206 = arith.addf %204, %205 : vector<64x128xf32>
      %c0_72 = arith.constant 0 : index
      %c0_73 = arith.constant 0 : index
      %207 = vector.load %arg19[%c0_72, %c0_73] : memref<64x128xf32, #tpu.memory_space<vmem>>, vector<64x128xf32>
      tpu.vector_store %arg19[%c0_72, %c0_73], %206 {strides = array<i32>} : memref<64x128xf32, #tpu.memory_space<vmem>>, vector<64x128xf32>,
    } else {
    }
    %c0 = arith.constant 0 : index
    %c0_1 = arith.constant 0 : index
    %3 = vector.load %arg19[%c0, %c0_1] : memref<64x128xf32, #tpu.memory_space<vmem>>, vector<64x128xf32>
    %c0_2 = arith.constant 0 : index
    %c0_3 = arith.constant 0 : index
    %c0_4 = arith.constant 0 : index
    %4 = vector.load %arg8[%c0_2, %c0_3, %c0_4] : memref<1x8x192xf32, #tpu.memory_space<vmem>>, vector<1x8x192xf32>
    %5 = vector.shape_cast %4 : vector<1x8x192xf32> to vector<8x192xf32>
    %6 = vector.extract_strided_slice %5 {offsets = [0, 0], sizes = [1, 128], strides = [1, 1]} : vector<8x192xf32> to vector<1x128xf32>
    %7 = vector.extract_strided_slice %5 {offsets = [1, 0], sizes = [1, 128], strides = [1, 1]} : vector<8x192xf32> to vector<1x128xf32>
    %8 = vector.extract_strided_slice %5 {offsets = [2, 0], sizes = [1, 128], strides = [1, 1]} : vector<8x192xf32> to vector<1x128xf32>
    %9 = vector.extract_strided_slice %5 {offsets = [3, 0], sizes = [1, 128], strides = [1, 1]} : vector<8x192xf32> to vector<1x128xf32>
    %10 = vector.extract_strided_slice %5 {offsets = [4, 0], sizes = [1, 128], strides = [1, 1]} : vector<8x192xf32> to vector<1x128xf32>
    %11 = vector.extract_strided_slice %5 {offsets = [5, 0], sizes = [1, 128], strides = [1, 1]} : vector<8x192xf32> to vector<1x128xf32>
    %12 = vector.extract_strided_slice %5 {offsets = [6, 0], sizes = [1, 192], strides = [1, 1]} : vector<8x192xf32> to vector<1x192xf32>
    %cst = arith.constant dense<0.000000e+00> : vector<64xf32>
    %13 = vector.multi_reduction <add>, %3, %cst [1] : vector<64x128xf32> to vector<64xf32>
    %14 = vector.shape_cast %13 : vector<64xf32> to vector<64x1xf32>
    %cst_5 = arith.constant 1.280000e+02 : f32
    %15 = vector.broadcast %cst_5 : f32 to vector<64x1xf32>
    %16 = arith.divf %14, %15 : vector<64x1xf32>
    %17 = vector.broadcast %16 : vector<64x1xf32> to vector<64x128xf32>
    %18 = arith.subf %3, %17 : vector<64x128xf32>
    %19 = arith.mulf %18, %18 : vector<64x128xf32>
    %cst_6 = arith.constant dense<0.000000e+00> : vector<64xf32>
    %20 = vector.multi_reduction <add>, %19, %cst_6 [1] : vector<64x128xf32> to vector<64xf32>
    %21 = vector.shape_cast %20 : vector<64xf32> to vector<64x1xf32>
    %cst_7 = arith.constant 1.280000e+02 : f32
    %22 = vector.broadcast %cst_7 : f32 to vector<64x1xf32>
    %23 = arith.divf %21, %22 : vector<64x1xf32>
    %cst_8 = arith.constant 9.99999974E-6 : f32
    %24 = vector.broadcast %cst_8 : f32 to vector<64x1xf32>
    %25 = arith.addf %23, %24 : vector<64x1xf32>
    %26 = math.rsqrt %25 : vector<64x1xf32>
    %27 = vector.broadcast %26 : vector<64x1xf32> to vector<64x128xf32>
    %28 = arith.mulf %18, %27 : vector<64x128xf32>
    %29 = vector.broadcast %6 : vector<1x128xf32> to vector<64x128xf32>
    %30 = arith.mulf %28, %29 : vector<64x128xf32>
    %31 = vector.broadcast %7 : vector<1x128xf32> to vector<64x128xf32>
    %32 = arith.addf %30, %31 : vector<64x128xf32>
    %33 = arith.truncf %32 : vector<64x128xf32> to vector<64x128xbf16>
    %c0_9 = arith.constant 0 : index
    %c0_10 = arith.constant 0 : index
    %c0_11 = arith.constant 0 : index
    %34 = vector.load %arg4[%c0_9, %c0_10, %c0_11] : memref<1x128x384xbf16, #tpu.memory_space<vmem>>, vector<1x128x384xbf16>
    %35 = vector.shape_cast %34 : vector<1x128x384xbf16> to vector<128x384xbf16>
    %cst_12 = arith.constant dense<0.000000e+00> : vector<64x384xf32>
    %36 = tpu.matmul %33, %35, %cst_12 {dimension_numbers = #tpu.dot_dimension_numbers<[1], [0], [0], [1], [0, 0, 1, 1], [], []>} : vector<64x128xbf16>, vector<128x384xbf16>, vector<64x384xf32> -> vector<64x384xf32>
    %37 = vector.extract_strided_slice %36 {offsets = [0, 0], sizes = [64, 128], strides = [1, 1]} : vector<64x384xf32> to vector<64x128xf32>
    %38 = vector.shape_cast %37 : vector<64x128xf32> to vector<2x32x128xf32>
    %39 = vector.extract_strided_slice %36 {offsets = [0, 128], sizes = [64, 128], strides = [1, 1]} : vector<64x384xf32> to vector<64x128xf32>
    %40 = vector.shape_cast %39 : vector<64x128xf32> to vector<2x32x128xf32>
    %41 = vector.extract_strided_slice %36 {offsets = [0, 256], sizes = [64, 128], strides = [1, 1]} : vector<64x384xf32> to vector<64x128xf32>
    %42 = vector.shape_cast %41 : vector<64x128xf32> to vector<2x32x128xf32>
    %43 = vector.extract_strided_slice %38 {offsets = [0, 0, 0], sizes = [2, 32, 32], strides = [1, 1, 1]} : vector<2x32x128xf32> to vector<2x32x32xf32>
    %44 = arith.truncf %43 : vector<2x32x32xf32> to vector<2x32x32xbf16>
    %45 = vector.extract_strided_slice %40 {offsets = [0, 0, 0], sizes = [2, 32, 32], strides = [1, 1, 1]} : vector<2x32x128xf32> to vector<2x32x32xf32>
    %46 = arith.truncf %45 : vector<2x32x32xf32> to vector<2x32x32xbf16>
    "tpu.trace_start"() <{level = 10 : i32, message = "bqd,bkd->bqk"}> : () -> ()
    %cst_13 = arith.constant dense<0.000000e+00> : vector<2x32x32xf32>
    %47 = tpu.matmul %44, %46, %cst_13 {dimension_numbers = #tpu.dot_dimension_numbers<[2], [2], [1], [1], [0, 0, 0, 1, 1, 1], [0], [0]>} : vector<2x32x32xbf16>, vector<2x32x32xbf16>, vector<2x32x32xf32> -> vector<2x32x32xf32>
    "tpu.trace_stop"() : () -> ()
    %cst_14 = arith.constant dense<0xFF800000> : vector<2x32xf32>
    %48 = vector.multi_reduction <maximumf>, %47, %cst_14 [2] : vector<2x32x32xf32> to vector<2x32xf32>
    %49 = vector.shape_cast %48 : vector<2x32xf32> to vector<2x32x1xf32>
    %50 = vector.broadcast %49 : vector<2x32x1xf32> to vector<2x32x32xf32>
    %51 = arith.subf %47, %50 : vector<2x32x32xf32>
    %52 = math.exp %51 : vector<2x32x32xf32>
    %cst_15 = arith.constant dense<0.000000e+00> : vector<2x32xf32>
    %53 = vector.multi_reduction <add>, %52, %cst_15 [2] : vector<2x32x32xf32> to vector<2x32xf32>
    %54 = vector.shape_cast %53 : vector<2x32xf32> to vector<2x32x1xf32>
    %55 = vector.broadcast %54 : vector<2x32x1xf32> to vector<2x32x32xf32>
    %56 = arith.divf %52, %55 : vector<2x32x32xf32>
    %57 = arith.truncf %56 : vector<2x32x32xf32> to vector<2x32x32xbf16>
    %58 = vector.extract_strided_slice %42 {offsets = [0, 0, 0], sizes = [2, 32, 32], strides = [1, 1, 1]} : vector<2x32x128xf32> to vector<2x32x32xf32>
    %59 = arith.truncf %58 : vector<2x32x32xf32> to vector<2x32x32xbf16>
    "tpu.trace_start"() <{level = 10 : i32, message = "bqk,bkd->bqd"}> : () -> ()
    %cst_16 = arith.constant dense<0.000000e+00> : vector<2x32x32xf32>
    %60 = tpu.matmul %57, %59, %cst_16 {dimension_numbers = #tpu.dot_dimension_numbers<[2], [1], [1], [2], [0, 0, 0, 1, 1, 2], [0], [0]>} : vector<2x32x32xbf16>, vector<2x32x32xbf16>, vector<2x32x32xf32> -> vector<2x32x32xf32>
    "tpu.trace_stop"() : () -> ()
    %61 = vector.extract_strided_slice %38 {offsets = [0, 0, 32], sizes = [2, 32, 32], strides = [1, 1, 1]} : vector<2x32x128xf32> to vector<2x32x32xf32>
    %62 = arith.truncf %61 : vector<2x32x32xf32> to vector<2x32x32xbf16>
    %63 = vector.extract_strided_slice %40 {offsets = [0, 0, 32], sizes = [2, 32, 32], strides = [1, 1, 1]} : vector<2x32x128xf32> to vector<2x32x32xf32>
    %64 = arith.truncf %63 : vector<2x32x32xf32> to vector<2x32x32xbf16>
    "tpu.trace_start"() <{level = 10 : i32, message = "bqd,bkd->bqk"}> : () -> ()
    %cst_17 = arith.constant dense<0.000000e+00> : vector<2x32x32xf32>
    %65 = tpu.matmul %62, %64, %cst_17 {dimension_numbers = #tpu.dot_dimension_numbers<[2], [2], [1], [1], [0, 0, 0, 1, 1, 1], [0], [0]>} : vector<2x32x32xbf16>, vector<2x32x32xbf16>, vector<2x32x32xf32> -> vector<2x32x32xf32>
    "tpu.trace_stop"() : () -> ()
    %cst_18 = arith.constant dense<0xFF800000> : vector<2x32xf32>
    %66 = vector.multi_reduction <maximumf>, %65, %cst_18 [2] : vector<2x32x32xf32> to vector<2x32xf32>
    %67 = vector.shape_cast %66 : vector<2x32xf32> to vector<2x32x1xf32>
    %68 = vector.broadcast %67 : vector<2x32x1xf32> to vector<2x32x32xf32>
    %69 = arith.subf %65, %68 : vector<2x32x32xf32>
    %70 = math.exp %69 : vector<2x32x32xf32>
    %cst_19 = arith.constant dense<0.000000e+00> : vector<2x32xf32>
    %71 = vector.multi_reduction <add>, %70, %cst_19 [2] : vector<2x32x32xf32> to vector<2x32xf32>
    %72 = vector.shape_cast %71 : vector<2x32xf32> to vector<2x32x1xf32>
    %73 = vector.broadcast %72 : vector<2x32x1xf32> to vector<2x32x32xf32>
    %74 = arith.divf %70, %73 : vector<2x32x32xf32>
    %75 = arith.truncf %74 : vector<2x32x32xf32> to vector<2x32x32xbf16>
    %76 = vector.extract_strided_slice %42 {offsets = [0, 0, 32], sizes = [2, 32, 32], strides = [1, 1, 1]} : vector<2x32x128xf32> to vector<2x32x32xf32>
    %77 = arith.truncf %76 : vector<2x32x32xf32> to vector<2x32x32xbf16>
    "tpu.trace_start"() <{level = 10 : i32, message = "bqk,bkd->bqd"}> : () -> ()
    %cst_20 = arith.constant dense<0.000000e+00> : vector<2x32x32xf32>
    %78 = tpu.matmul %75, %77, %cst_20 {dimension_numbers = #tpu.dot_dimension_numbers<[2], [1], [1], [2], [0, 0, 0, 1, 1, 2], [0], [0]>} : vector<2x32x32xbf16>, vector<2x32x32xbf16>, vector<2x32x32xf32> -> vector<2x32x32xf32>
    "tpu.trace_stop"() : () -> ()
    %79 = vector.extract_strided_slice %38 {offsets = [0, 0, 64], sizes = [2, 32, 32], strides = [1, 1, 1]} : vector<2x32x128xf32> to vector<2x32x32xf32>
    %80 = arith.truncf %79 : vector<2x32x32xf32> to vector<2x32x32xbf16>
    %81 = vector.extract_strided_slice %40 {offsets = [0, 0, 64], sizes = [2, 32, 32], strides = [1, 1, 1]} : vector<2x32x128xf32> to vector<2x32x32xf32>
    %82 = arith.truncf %81 : vector<2x32x32xf32> to vector<2x32x32xbf16>
    "tpu.trace_start"() <{level = 10 : i32, message = "bqd,bkd->bqk"}> : () -> ()
    %cst_21 = arith.constant dense<0.000000e+00> : vector<2x32x32xf32>
    %83 = tpu.matmul %80, %82, %cst_21 {dimension_numbers = #tpu.dot_dimension_numbers<[2], [2], [1], [1], [0, 0, 0, 1, 1, 1], [0], [0]>} : vector<2x32x32xbf16>, vector<2x32x32xbf16>, vector<2x32x32xf32> -> vector<2x32x32xf32>
    "tpu.trace_stop"() : () -> ()
    %cst_22 = arith.constant dense<0xFF800000> : vector<2x32xf32>
    %84 = vector.multi_reduction <maximumf>, %83, %cst_22 [2] : vector<2x32x32xf32> to vector<2x32xf32>
    %85 = vector.shape_cast %84 : vector<2x32xf32> to vector<2x32x1xf32>
    %86 = vector.broadcast %85 : vector<2x32x1xf32> to vector<2x32x32xf32>
    %87 = arith.subf %83, %86 : vector<2x32x32xf32>
    %88 = math.exp %87 : vector<2x32x32xf32>
    %cst_23 = arith.constant dense<0.000000e+00> : vector<2x32xf32>
    %89 = vector.multi_reduction <add>, %88, %cst_23 [2] : vector<2x32x32xf32> to vector<2x32xf32>
    %90 = vector.shape_cast %89 : vector<2x32xf32> to vector<2x32x1xf32>
    %91 = vector.broadcast %90 : vector<2x32x1xf32> to vector<2x32x32xf32>
    %92 = arith.divf %88, %91 : vector<2x32x32xf32>
    %93 = arith.truncf %92 : vector<2x32x32xf32> to vector<2x32x32xbf16>
    %94 = vector.extract_strided_slice %42 {offsets = [0, 0, 64], sizes = [2, 32, 32], strides = [1, 1, 1]} : vector<2x32x128xf32> to vector<2x32x32xf32>
    %95 = arith.truncf %94 : vector<2x32x32xf32> to vector<2x32x32xbf16>
    "tpu.trace_start"() <{level = 10 : i32, message = "bqk,bkd->bqd"}> : () -> ()
    %cst_24 = arith.constant dense<0.000000e+00> : vector<2x32x32xf32>
    %96 = tpu.matmul %93, %95, %cst_24 {dimension_numbers = #tpu.dot_dimension_numbers<[2], [1], [1], [2], [0, 0, 0, 1, 1, 2], [0], [0]>} : vector<2x32x32xbf16>, vector<2x32x32xbf16>, vector<2x32x32xf32> -> vector<2x32x32xf32>
    "tpu.trace_stop"() : () -> ()
    %97 = vector.extract_strided_slice %38 {offsets = [0, 0, 96], sizes = [2, 32, 32], strides = [1, 1, 1]} : vector<2x32x128xf32> to vector<2x32x32xf32>
    %98 = arith.truncf %97 : vector<2x32x32xf32> to vector<2x32x32xbf16>
    %99 = vector.extract_strided_slice %40 {offsets = [0, 0, 96], sizes = [2, 32, 32], strides = [1, 1, 1]} : vector<2x32x128xf32> to vector<2x32x32xf32>
    %100 = arith.truncf %99 : vector<2x32x32xf32> to vector<2x32x32xbf16>
    "tpu.trace_start"() <{level = 10 : i32, message = "bqd,bkd->bqk"}> : () -> ()
    %cst_25 = arith.constant dense<0.000000e+00> : vector<2x32x32xf32>
    %101 = tpu.matmul %98, %100, %cst_25 {dimension_numbers = #tpu.dot_dimension_numbers<[2], [2], [1], [1], [0, 0, 0, 1, 1, 1], [0], [0]>} : vector<2x32x32xbf16>, vector<2x32x32xbf16>, vector<2x32x32xf32> -> vector<2x32x32xf32>
    "tpu.trace_stop"() : () -> ()
    %cst_26 = arith.constant dense<0xFF800000> : vector<2x32xf32>
    %102 = vector.multi_reduction <maximumf>, %101, %cst_26 [2] : vector<2x32x32xf32> to vector<2x32xf32>
    %103 = vector.shape_cast %102 : vector<2x32xf32> to vector<2x32x1xf32>
    %104 = vector.broadcast %103 : vector<2x32x1xf32> to vector<2x32x32xf32>
    %105 = arith.subf %101, %104 : vector<2x32x32xf32>
    %106 = math.exp %105 : vector<2x32x32xf32>
    %cst_27 = arith.constant dense<0.000000e+00> : vector<2x32xf32>
    %107 = vector.multi_reduction <add>, %106, %cst_27 [2] : vector<2x32x32xf32> to vector<2x32xf32>
    %108 = vector.shape_cast %107 : vector<2x32xf32> to vector<2x32x1xf32>
    %109 = vector.broadcast %108 : vector<2x32x1xf32> to vector<2x32x32xf32>
    %110 = arith.divf %106, %109 : vector<2x32x32xf32>
    %111 = arith.truncf %110 : vector<2x32x32xf32> to vector<2x32x32xbf16>
    %112 = vector.extract_strided_slice %42 {offsets = [0, 0, 96], sizes = [2, 32, 32], strides = [1, 1, 1]} : vector<2x32x128xf32> to vector<2x32x32xf32>
    %113 = arith.truncf %112 : vector<2x32x32xf32> to vector<2x32x32xbf16>
    "tpu.trace_start"() <{level = 10 : i32, message = "bqk,bkd->bqd"}> : () -> ()
    %cst_28 = arith.constant dense<0.000000e+00> : vector<2x32x32xf32>
    %114 = tpu.matmul %111, %113, %cst_28 {dimension_numbers = #tpu.dot_dimension_numbers<[2], [1], [1], [2], [0, 0, 0, 1, 1, 2], [0], [0]>} : vector<2x32x32xbf16>, vector<2x32x32xbf16>, vector<2x32x32xf32> -> vector<2x32x32xf32>
    "tpu.trace_stop"() : () -> ()
    %115 = tpu.concatenate %60, %78, %96, %114 in 2 : vector<2x32x32xf32>, vector<2x32x32xf32>, vector<2x32x32xf32>, vector<2x32x32xf32> -> vector<2x32x128xf32>
    %116 = vector.shape_cast %115 : vector<2x32x128xf32> to vector<64x128xf32>
    %117 = arith.truncf %116 : vector<64x128xf32> to vector<64x128xbf16>
    %c0_29 = arith.constant 0 : index
    %c0_30 = arith.constant 0 : index
    %c0_31 = arith.constant 0 : index
    %118 = vector.load %arg5[%c0_29, %c0_30, %c0_31] : memref<1x128x128xbf16, #tpu.memory_space<vmem>>, vector<1x128x128xbf16>
    %119 = vector.shape_cast %118 : vector<1x128x128xbf16> to vector<128x128xbf16>
    %cst_32 = arith.constant dense<0.000000e+00> : vector<64x128xf32>
    %120 = tpu.matmul %117, %119, %cst_32 {dimension_numbers = #tpu.dot_dimension_numbers<[1], [0], [0], [1], [0, 0, 1, 1], [], []>} : vector<64x128xbf16>, vector<128x128xbf16>, vector<64x128xf32> -> vector<64x128xf32>
    %121 = arith.addf %3, %120 : vector<64x128xf32>
    %122 = vector.broadcast %10 : vector<1x128xf32> to vector<64x128xf32>
    %123 = arith.addf %121, %122 : vector<64x128xf32>
    %cst_33 = arith.constant dense<0.000000e+00> : vector<64xf32>
    %124 = vector.multi_reduction <add>, %123, %cst_33 [1] : vector<64x128xf32> to vector<64xf32>
    %125 = vector.shape_cast %124 : vector<64xf32> to vector<64x1xf32>
    %cst_34 = arith.constant 1.280000e+02 : f32
    %126 = vector.broadcast %cst_34 : f32 to vector<64x1xf32>
    %127 = arith.divf %125, %126 : vector<64x1xf32>
    %128 = vector.broadcast %127 : vector<64x1xf32> to vector<64x128xf32>
    %129 = arith.subf %123, %128 : vector<64x128xf32>
    %130 = arith.mulf %129, %129 : vector<64x128xf32>
    %cst_35 = arith.constant dense<0.000000e+00> : vector<64xf32>
    %131 = vector.multi_reduction <add>, %130, %cst_35 [1] : vector<64x128xf32> to vector<64xf32>
    %132 = vector.shape_cast %131 : vector<64xf32> to vector<64x1xf32>
    %cst_36 = arith.constant 1.280000e+02 : f32
    %133 = vector.broadcast %cst_36 : f32 to vector<64x1xf32>
    %134 = arith.divf %132, %133 : vector<64x1xf32>
    %cst_37 = arith.constant 9.99999974E-6 : f32
    %135 = vector.broadcast %cst_37 : f32 to vector<64x1xf32>
    %136 = arith.addf %134, %135 : vector<64x1xf32>
    %137 = math.rsqrt %136 : vector<64x1xf32>
    %138 = vector.broadcast %137 : vector<64x1xf32> to vector<64x128xf32>
    %139 = arith.mulf %129, %138 : vector<64x128xf32>
    %140 = vector.broadcast %8 : vector<1x128xf32> to vector<64x128xf32>
    %141 = arith.mulf %139, %140 : vector<64x128xf32>
    %142 = vector.broadcast %9 : vector<1x128xf32> to vector<64x128xf32>
    %143 = arith.addf %141, %142 : vector<64x128xf32>
    %144 = arith.truncf %143 : vector<64x128xf32> to vector<64x128xbf16>
    %c0_38 = arith.constant 0 : index
    %c0_39 = arith.constant 0 : index
    %c0_40 = arith.constant 0 : index
    %145 = vector.load %arg6[%c0_38, %c0_39, %c0_40] : memref<1x128x192xbf16, #tpu.memory_space<vmem>>, vector<1x128x192xbf16>
    %146 = vector.shape_cast %145 : vector<1x128x192xbf16> to vector<128x192xbf16>
    %cst_41 = arith.constant dense<0.000000e+00> : vector<64x192xf32>
    %147 = tpu.matmul %144, %146, %cst_41 {dimension_numbers = #tpu.dot_dimension_numbers<[1], [0], [0], [1], [0, 0, 1, 1], [], []>} : vector<64x128xbf16>, vector<128x192xbf16>, vector<64x192xf32> -> vector<64x192xf32>
    %148 = vector.broadcast %12 : vector<1x192xf32> to vector<64x192xf32>
    %149 = arith.addf %147, %148 : vector<64x192xf32>
    %cst_42 = arith.constant 5.000000e-01 : f32
    %150 = vector.broadcast %cst_42 : f32 to vector<64x192xf32>
    %151 = arith.mulf %150, %149 : vector<64x192xf32>
    %cst_43 = arith.constant 0.707106769 : f32
    %152 = vector.broadcast %cst_43 : f32 to vector<64x192xf32>
    %153 = arith.mulf %149, %152 : vector<64x192xf32>
    %cst_44 = arith.constant 0.000000e+00 : f32
    %154 = vector.broadcast %cst_44 : f32 to vector<64x192xf32>
    %155 = arith.cmpf oge, %153, %154 : vector<64x192xf32>
    %cst_45 = arith.constant 1.000000e+00 : f32
    %cst_46 = arith.constant -1.000000e+00 : f32
    %156 = vector.broadcast %cst_45 : f32 to vector<64x192xf32>
    %157 = vector.broadcast %cst_46 : f32 to vector<64x192xf32>
    %158 = arith.select %155, %156, %157 : vector<64x192xi1>, vector<64x192xf32>
    %159 = math.absf %153 : vector<64x192xf32>
    %cst_47 = arith.constant 0.327591091 : f32
    %160 = vector.broadcast %cst_47 : f32 to vector<64x192xf32>
    %161 = arith.mulf %160, %159 : vector<64x192xf32>
    %cst_48 = arith.constant 1.000000e+00 : f32
    %162 = vector.broadcast %cst_48 : f32 to vector<64x192xf32>
    %163 = arith.addf %162, %161 : vector<64x192xf32>
    %cst_49 = arith.constant 1.000000e+00 : f32
    %164 = vector.broadcast %cst_49 : f32 to vector<64x192xf32>
    %165 = arith.divf %164, %163 : vector<64x192xf32>
    %cst_50 = arith.constant 1.06140542 : f32
    %166 = vector.broadcast %cst_50 : f32 to vector<64x192xf32>
    %167 = arith.mulf %166, %165 : vector<64x192xf32>
    %cst_51 = arith.constant -1.45315206 : f32
    %168 = vector.broadcast %cst_51 : f32 to vector<64x192xf32>
    %169 = arith.addf %167, %168 : vector<64x192xf32>
    %170 = arith.mulf %169, %165 : vector<64x192xf32>
    %cst_52 = arith.constant 1.42141378 : f32
    %171 = vector.broadcast %cst_52 : f32 to vector<64x192xf32>
    %172 = arith.addf %170, %171 : vector<64x192xf32>
    %173 = arith.mulf %172, %165 : vector<64x192xf32>
    %cst_53 = arith.constant -0.284496725 : f32
    %174 = vector.broadcast %cst_53 : f32 to vector<64x192xf32>
    %175 = arith.addf %173, %174 : vector<64x192xf32>
    %176 = arith.mulf %175, %165 : vector<64x192xf32>
    %cst_54 = arith.constant 0.254829586 : f32
    %177 = vector.broadcast %cst_54 : f32 to vector<64x192xf32>
    %178 = arith.addf %176, %177 : vector<64x192xf32>
    %179 = arith.mulf %178, %165 : vector<64x192xf32>
    %cst_55 = arith.constant 0.000000e+00 : f32
    %180 = vector.broadcast %cst_55 : f32 to vector<64x192xf32>
    %181 = arith.subf %180, %159 : vector<64x192xf32>
    %182 = arith.mulf %181, %159 : vector<64x192xf32>
    %183 = math.exp %182 : vector<64x192xf32>
    %184 = arith.mulf %179, %183 : vector<64x192xf32>
    %cst_56 = arith.constant 1.000000e+00 : f32
    %185 = vector.broadcast %cst_56 : f32 to vector<64x192xf32>
    %186 = arith.subf %185, %184 : vector<64x192xf32>
    %187 = arith.mulf %158, %186 : vector<64x192xf32>
    %cst_57 = arith.constant 1.000000e+00 : f32
    %188 = vector.broadcast %cst_57 : f32 to vector<64x192xf32>
    %189 = arith.addf %188, %187 : vector<64x192xf32>
    %190 = arith.mulf %151, %189 : vector<64x192xf32>
    %191 = arith.truncf %190 : vector<64x192xf32> to vector<64x192xbf16>
    %c0_58 = arith.constant 0 : index
    %c0_59 = arith.constant 0 : index
    %c0_60 = arith.constant 0 : index
    %192 = vector.load %arg7[%c0_58, %c0_59, %c0_60] : memref<1x192x128xbf16, #tpu.memory_space<vmem>>, vector<1x192x128xbf16>
    %193 = vector.shape_cast %192 : vector<1x192x128xbf16> to vector<192x128xbf16>
    %cst_61 = arith.constant dense<0.000000e+00> : vector<64x128xf32>
    %194 = tpu.matmul %191, %193, %cst_61 {dimension_numbers = #tpu.dot_dimension_numbers<[1], [0], [0], [1], [0, 0, 1, 1], [], []>} : vector<64x192xbf16>, vector<192x128xbf16>, vector<64x128xf32> -> vector<64x128xf32>
    %195 = arith.addf %123, %194 : vector<64x128xf32>
    %196 = vector.broadcast %11 : vector<1x128xf32> to vector<64x128xf32>
    %197 = arith.addf %195, %196 : vector<64x128xf32>
    %c0_62 = arith.constant 0 : index
    %c0_63 = arith.constant 0 : index
    %198 = vector.load %arg19[%c0_62, %c0_63] : memref<64x128xf32, #tpu.memory_space<vmem>>, vector<64x128xf32>
    tpu.vector_store %arg19[%c0_62, %c0_63], %197 {strides = array<i32>} : memref<64x128xf32, #tpu.memory_space<vmem>>, vector<64x128xf32>,
    %c3_i32 = arith.constant 3 : i32
    %199 = arith.cmpi eq, %arg0, %c3_i32 : i32
    %200 = arith.extui %199 : i1 to i32
    %c0_i32_64 = arith.constant 0 : i32
    %201 = arith.cmpi ne, %200, %c0_i32_64 : i32
    scf.if %201 {
      %c0_65 = arith.constant 0 : index
      %c0_66 = arith.constant 0 : index
      %202 = vector.load %arg9[%c0_65, %c0_66] : memref<20x64xbf16, #tpu.memory_space<vmem>>, vector<20x64xbf16>
      %203 = arith.truncf %197 : vector<64x128xf32> to vector<64x128xbf16>
      %cst_67 = arith.constant dense<0.000000e+00> : vector<20x128xf32>
      %204 = tpu.matmul %202, %203, %cst_67 {dimension_numbers = #tpu.dot_dimension_numbers<[1], [0], [0], [1], [0, 0, 1, 1], [], []>} : vector<20x64xbf16>, vector<64x128xbf16>, vector<20x128xf32> -> vector<20x128xf32>
      %cst_68 = arith.constant 0.000000e+00 : f32
      %205 = vector.broadcast %cst_68 : f32 to vector<2x128xf32>
      %206 = vector.extract_strided_slice %204 {offsets = [0, 0], sizes = [2, 128], strides = [1, 1]} : vector<20x128xf32> to vector<2x128xf32>
      %207 = arith.truncf %206 : vector<2x128xf32> to vector<2x128xbf16>
      %c0_69 = arith.constant 0 : index
      %c0_70 = arith.constant 0 : index
      %c0_71 = arith.constant 0 : index
      %208 = vector.load %arg10[%c0_69, %c0_70, %c0_71] : memref<10x128x128xbf16, #tpu.memory_space<vmem>>, vector<1x128x128xbf16>
      %209 = vector.shape_cast %208 : vector<1x128x128xbf16> to vector<128x128xbf16>
      %cst_72 = arith.constant dense<0.000000e+00> : vector<2x128xf32>
      %210 = tpu.matmul %207, %209, %cst_72 {dimension_numbers = #tpu.dot_dimension_numbers<[1], [0], [0], [1], [0, 0, 1, 1], [], []>} : vector<2x128xbf16>, vector<128x128xbf16>, vector<2x128xf32> -> vector<2x128xf32>
      %211 = arith.addf %205, %210 : vector<2x128xf32>
      %212 = vector.extract_strided_slice %204 {offsets = [2, 0], sizes = [2, 128], strides = [1, 1]} : vector<20x128xf32> to vector<2x128xf32>
      %213 = arith.truncf %212 : vector<2x128xf32> to vector<2x128xbf16>
      %c1 = arith.constant 1 : index
      %c0_73 = arith.constant 0 : index
      %c0_74 = arith.constant 0 : index
      %214 = vector.load %arg10[%c1, %c0_73, %c0_74] : memref<10x128x128xbf16, #tpu.memory_space<vmem>>, vector<1x128x128xbf16>
      %215 = vector.shape_cast %214 : vector<1x128x128xbf16> to vector<128x128xbf16>
      %cst_75 = arith.constant dense<0.000000e+00> : vector<2x128xf32>
      %216 = tpu.matmul %213, %215, %cst_75 {dimension_numbers = #tpu.dot_dimension_numbers<[1], [0], [0], [1], [0, 0, 1, 1], [], []>} : vector<2x128xbf16>, vector<128x128xbf16>, vector<2x128xf32> -> vector<2x128xf32>
      %217 = arith.addf %211, %216 : vector<2x128xf32>
      %218 = vector.extract_strided_slice %204 {offsets = [4, 0], sizes = [2, 128], strides = [1, 1]} : vector<20x128xf32> to vector<2x128xf32>
      %219 = arith.truncf %218 : vector<2x128xf32> to vector<2x128xbf16>
      %c2 = arith.constant 2 : index
      %c0_76 = arith.constant 0 : index
      %c0_77 = arith.constant 0 : index
      %220 = vector.load %arg10[%c2, %c0_76, %c0_77] : memref<10x128x128xbf16, #tpu.memory_space<vmem>>, vector<1x128x128xbf16>
      %221 = vector.shape_cast %220 : vector<1x128x128xbf16> to vector<128x128xbf16>
      %cst_78 = arith.constant dense<0.000000e+00> : vector<2x128xf32>
      %222 = tpu.matmul %219, %221, %cst_78 {dimension_numbers = #tpu.dot_dimension_numbers<[1], [0], [0], [1], [0, 0, 1, 1], [], []>} : vector<2x128xbf16>, vector<128x128xbf16>, vector<2x128xf32> -> vector<2x128xf32>
      %223 = arith.addf %217, %222 : vector<2x128xf32>
      %224 = vector.extract_strided_slice %204 {offsets = [6, 0], sizes = [2, 128], strides = [1, 1]} : vector<20x128xf32> to vector<2x128xf32>
      %225 = arith.truncf %224 : vector<2x128xf32> to vector<2x128xbf16>
      %c3 = arith.constant 3 : index
      %c0_79 = arith.constant 0 : index
      %c0_80 = arith.constant 0 : index
      %226 = vector.load %arg10[%c3, %c0_79, %c0_80] : memref<10x128x128xbf16, #tpu.memory_space<vmem>>, vector<1x128x128xbf16>
      %227 = vector.shape_cast %226 : vector<1x128x128xbf16> to vector<128x128xbf16>
      %cst_81 = arith.constant dense<0.000000e+00> : vector<2x128xf32>
      %228 = tpu.matmul %225, %227, %cst_81 {dimension_numbers = #tpu.dot_dimension_numbers<[1], [0], [0], [1], [0, 0, 1, 1], [], []>} : vector<2x128xbf16>, vector<128x128xbf16>, vector<2x128xf32> -> vector<2x128xf32>
      %229 = arith.addf %223, %228 : vector<2x128xf32>
      %230 = vector.extract_strided_slice %204 {offsets = [8, 0], sizes = [2, 128], strides = [1, 1]} : vector<20x128xf32> to vector<2x128xf32>
      %231 = arith.truncf %230 : vector<2x128xf32> to vector<2x128xbf16>
      %c4 = arith.constant 4 : index
      %c0_82 = arith.constant 0 : index
      %c0_83 = arith.constant 0 : index
      %232 = vector.load %arg10[%c4, %c0_82, %c0_83] : memref<10x128x128xbf16, #tpu.memory_space<vmem>>, vector<1x128x128xbf16>
      %233 = vector.shape_cast %232 : vector<1x128x128xbf16> to vector<128x128xbf16>
      %cst_84 = arith.constant dense<0.000000e+00> : vector<2x128xf32>
      %234 = tpu.matmul %231, %233, %cst_84 {dimension_numbers = #tpu.dot_dimension_numbers<[1], [0], [0], [1], [0, 0, 1, 1], [], []>} : vector<2x128xbf16>, vector<128x128xbf16>, vector<2x128xf32> -> vector<2x128xf32>
      %235 = arith.addf %229, %234 : vector<2x128xf32>
      %236 = vector.extract_strided_slice %204 {offsets = [10, 0], sizes = [2, 128], strides = [1, 1]} : vector<20x128xf32> to vector<2x128xf32>
      %237 = arith.truncf %236 : vector<2x128xf32> to vector<2x128xbf16>
      %c5 = arith.constant 5 : index
      %c0_85 = arith.constant 0 : index
      %c0_86 = arith.constant 0 : index
      %238 = vector.load %arg10[%c5, %c0_85, %c0_86] : memref<10x128x128xbf16, #tpu.memory_space<vmem>>, vector<1x128x128xbf16>
      %239 = vector.shape_cast %238 : vector<1x128x128xbf16> to vector<128x128xbf16>
      %cst_87 = arith.constant dense<0.000000e+00> : vector<2x128xf32>
      %240 = tpu.matmul %237, %239, %cst_87 {dimension_numbers = #tpu.dot_dimension_numbers<[1], [0], [0], [1], [0, 0, 1, 1], [], []>} : vector<2x128xbf16>, vector<128x128xbf16>, vector<2x128xf32> -> vector<2x128xf32>
      %241 = arith.addf %235, %240 : vector<2x128xf32>
      %242 = vector.extract_strided_slice %204 {offsets = [12, 0], sizes = [2, 128], strides = [1, 1]} : vector<20x128xf32> to vector<2x128xf32>
      %243 = arith.truncf %242 : vector<2x128xf32> to vector<2x128xbf16>
      %c6 = arith.constant 6 : index
      %c0_88 = arith.constant 0 : index
      %c0_89 = arith.constant 0 : index
      %244 = vector.load %arg10[%c6, %c0_88, %c0_89] : memref<10x128x128xbf16, #tpu.memory_space<vmem>>, vector<1x128x128xbf16>
      %245 = vector.shape_cast %244 : vector<1x128x128xbf16> to vector<128x128xbf16>
      %cst_90 = arith.constant dense<0.000000e+00> : vector<2x128xf32>
      %246 = tpu.matmul %243, %245, %cst_90 {dimension_numbers = #tpu.dot_dimension_numbers<[1], [0], [0], [1], [0, 0, 1, 1], [], []>} : vector<2x128xbf16>, vector<128x128xbf16>, vector<2x128xf32> -> vector<2x128xf32>
      %247 = arith.addf %241, %246 : vector<2x128xf32>
      %248 = vector.extract_strided_slice %204 {offsets = [14, 0], sizes = [2, 128], strides = [1, 1]} : vector<20x128xf32> to vector<2x128xf32>
      %249 = arith.truncf %248 : vector<2x128xf32> to vector<2x128xbf16>
      %c7 = arith.constant 7 : index
      %c0_91 = arith.constant 0 : index
      %c0_92 = arith.constant 0 : index
      %250 = vector.load %arg10[%c7, %c0_91, %c0_92] : memref<10x128x128xbf16, #tpu.memory_space<vmem>>, vector<1x128x128xbf16>
      %251 = vector.shape_cast %250 : vector<1x128x128xbf16> to vector<128x128xbf16>
      %cst_93 = arith.constant dense<0.000000e+00> : vector<2x128xf32>
      %252 = tpu.matmul %249, %251, %cst_93 {dimension_numbers = #tpu.dot_dimension_numbers<[1], [0], [0], [1], [0, 0, 1, 1], [], []>} : vector<2x128xbf16>, vector<128x128xbf16>, vector<2x128xf32> -> vector<2x128xf32>
      %253 = arith.addf %247, %252 : vector<2x128xf32>
      %254 = vector.extract_strided_slice %204 {offsets = [16, 0], sizes = [2, 128], strides = [1, 1]} : vector<20x128xf32> to vector<2x128xf32>
      %255 = arith.truncf %254 : vector<2x128xf32> to vector<2x128xbf16>
      %c8 = arith.constant 8 : index
      %c0_94 = arith.constant 0 : index
      %c0_95 = arith.constant 0 : index
      %256 = vector.load %arg10[%c8, %c0_94, %c0_95] : memref<10x128x128xbf16, #tpu.memory_space<vmem>>, vector<1x128x128xbf16>
      %257 = vector.shape_cast %256 : vector<1x128x128xbf16> to vector<128x128xbf16>
      %cst_96 = arith.constant dense<0.000000e+00> : vector<2x128xf32>
      %258 = tpu.matmul %255, %257, %cst_96 {dimension_numbers = #tpu.dot_dimension_numbers<[1], [0], [0], [1], [0, 0, 1, 1], [], []>} : vector<2x128xbf16>, vector<128x128xbf16>, vector<2x128xf32> -> vector<2x128xf32>
      %259 = arith.addf %253, %258 : vector<2x128xf32>
      %260 = vector.extract_strided_slice %204 {offsets = [18, 0], sizes = [2, 128], strides = [1, 1]} : vector<20x128xf32> to vector<2x128xf32>
      %261 = arith.truncf %260 : vector<2x128xf32> to vector<2x128xbf16>
      %c9 = arith.constant 9 : index
      %c0_97 = arith.constant 0 : index
      %c0_98 = arith.constant 0 : index
      %262 = vector.load %arg10[%c9, %c0_97, %c0_98] : memref<10x128x128xbf16, #tpu.memory_space<vmem>>, vector<1x128x128xbf16>
      %263 = vector.shape_cast %262 : vector<1x128x128xbf16> to vector<128x128xbf16>
      %cst_99 = arith.constant dense<0.000000e+00> : vector<2x128xf32>
      %264 = tpu.matmul %261, %263, %cst_99 {dimension_numbers = #tpu.dot_dimension_numbers<[1], [0], [0], [1], [0, 0, 1, 1], [], []>} : vector<2x128xbf16>, vector<128x128xbf16>, vector<2x128xf32> -> vector<2x128xf32>
      %265 = arith.addf %259, %264 : vector<2x128xf32>
      %c0_100 = arith.constant 0 : index
      %c0_101 = arith.constant 0 : index
      %266 = vector.load %arg11[%c0_100, %c0_101] : memref<1x128xf32, #tpu.memory_space<vmem>>, vector<1x128xf32>
      %267 = vector.broadcast %266 : vector<1x128xf32> to vector<2x128xf32>
      %268 = arith.addf %265, %267 : vector<2x128xf32>
      %cst_102 = arith.constant 0.000000e+00 : f32
      %269 = vector.broadcast %cst_102 : f32 to vector<2x128xf32>
      %270 = arith.maximumf %268, %269 : vector<2x128xf32>
      %271 = arith.truncf %270 : vector<2x128xf32> to vector<2x128xbf16>
      %c0_103 = arith.constant 0 : index
      %c0_104 = arith.constant 0 : index
      %272 = vector.load %arg12[%c0_103, %c0_104] : memref<128x64xbf16, #tpu.memory_space<vmem>>, vector<128x64xbf16>
      %cst_105 = arith.constant dense<0.000000e+00> : vector<2x64xf32>
      %273 = tpu.matmul %271, %272, %cst_105 {dimension_numbers = #tpu.dot_dimension_numbers<[1], [0], [0], [1], [0, 0, 1, 1], [], []>} : vector<2x128xbf16>, vector<128x64xbf16>, vector<2x64xf32> -> vector<2x64xf32>
      %c0_106 = arith.constant 0 : index
      %c0_107 = arith.constant 0 : index
      %274 = vector.load %arg13[%c0_106, %c0_107] : memref<1x64xf32, #tpu.memory_space<vmem>>, vector<1x64xf32>
      %275 = vector.broadcast %274 : vector<1x64xf32> to vector<2x64xf32>
      %276 = arith.addf %273, %275 : vector<2x64xf32>
      %cst_108 = arith.constant 0.000000e+00 : f32
      %277 = vector.broadcast %cst_108 : f32 to vector<2x64xf32>
      %278 = arith.maximumf %276, %277 : vector<2x64xf32>
      %279 = arith.truncf %278 : vector<2x64xf32> to vector<2x64xbf16>
      %c0_109 = arith.constant 0 : index
      %c0_110 = arith.constant 0 : index
      %280 = vector.load %arg14[%c0_109, %c0_110] : memref<64x32xbf16, #tpu.memory_space<vmem>>, vector<64x32xbf16>
      %cst_111 = arith.constant dense<0.000000e+00> : vector<2x32xf32>
      %281 = tpu.matmul %279, %280, %cst_111 {dimension_numbers = #tpu.dot_dimension_numbers<[1], [0], [0], [1], [0, 0, 1, 1], [], []>} : vector<2x64xbf16>, vector<64x32xbf16>, vector<2x32xf32> -> vector<2x32xf32>
      %c0_112 = arith.constant 0 : index
      %c0_113 = arith.constant 0 : index
      %282 = vector.load %arg15[%c0_112, %c0_113] : memref<1x32xf32, #tpu.memory_space<vmem>>, vector<1x32xf32>
      %283 = vector.broadcast %282 : vector<1x32xf32> to vector<2x32xf32>
      %284 = arith.addf %281, %283 : vector<2x32xf32>
      %cst_114 = arith.constant 0.000000e+00 : f32
      %285 = vector.broadcast %cst_114 : f32 to vector<2x32xf32>
      %286 = arith.maximumf %284, %285 : vector<2x32xf32>
      %287 = arith.truncf %286 : vector<2x32xf32> to vector<2x32xbf16>
      %c0_115 = arith.constant 0 : index
      %c0_116 = arith.constant 0 : index
      %288 = vector.load %arg16[%c0_115, %c0_116] : memref<32x2xbf16, #tpu.memory_space<vmem>>, vector<32x2xbf16>
      %cst_117 = arith.constant dense<0.000000e+00> : vector<2x2xf32>
      %289 = tpu.matmul %287, %288, %cst_117 {dimension_numbers = #tpu.dot_dimension_numbers<[1], [0], [0], [1], [0, 0, 1, 1], [], []>} : vector<2x32xbf16>, vector<32x2xbf16>, vector<2x2xf32> -> vector<2x2xf32>
      %c0_118 = arith.constant 0 : index
      %c0_119 = arith.constant 0 : index
      %290 = vector.load %arg17[%c0_118, %c0_119] : memref<1x2xf32, #tpu.memory_space<vmem>>, vector<1x2xf32>
      %291 = vector.broadcast %290 : vector<1x2xf32> to vector<2x2xf32>
      %292 = arith.addf %289, %291 : vector<2x2xf32>
      %c0_120 = arith.constant 0 : index
      %c0_121 = arith.constant 0 : index
      %293 = vector.load %arg18[%c0_120, %c0_121] : memref<2x2xf32, #tpu.memory_space<vmem>>, vector<2x2xf32>
      tpu.vector_store %arg18[%c0_120, %c0_121], %292 {strides = array<i32>} : memref<2x2xf32, #tpu.memory_space<vmem>>, vector<2x2xf32>,
    } else {
    }
    return
  }
  func.func @transform_0(%arg0: i32) -> (i32, i32) {
    %c0_i32 = arith.constant 0 : i32
    %c0_i32_0 = arith.constant 0 : i32
    %c0_i32_1 = arith.constant 0 : i32
    return %c0_i32, %c0_i32_0 : i32, i32
  }
  func.func @transform_1(%arg0: i32) -> (i32, i32) {
    %c0_i32 = arith.constant 0 : i32
    %c0_i32_0 = arith.constant 0 : i32
    %c0_i32_1 = arith.constant 0 : i32
    return %c0_i32, %c0_i32_0 : i32, i32
  }
  func.func @transform_2(%arg0: i32) -> (i32, i32) {
    %c0_i32 = arith.constant 0 : i32
    %c0_i32_0 = arith.constant 0 : i32
    %c0_i32_1 = arith.constant 0 : i32
    return %c0_i32, %c0_i32_0 : i32, i32
  }
  func.func @transform_3(%arg0: i32) -> (i32, i32, i32) {
    %c0_i32 = arith.constant 0 : i32
    %c0_i32_0 = arith.constant 0 : i32
    %c0_i32_1 = arith.constant 0 : i32
    return %arg0, %c0_i32, %c0_i32_0 : i32, i32, i32
  }
  func.func @transform_4(%arg0: i32) -> (i32, i32, i32) {
    %c0_i32 = arith.constant 0 : i32
    %c0_i32_0 = arith.constant 0 : i32
    %c0_i32_1 = arith.constant 0 : i32
    return %arg0, %c0_i32, %c0_i32_0 : i32, i32, i32
  }
  func.func @transform_5(%arg0: i32) -> (i32, i32, i32) {
    %c0_i32 = arith.constant 0 : i32
    %c0_i32_0 = arith.constant 0 : i32
    %c0_i32_1 = arith.constant 0 : i32
    return %arg0, %c0_i32, %c0_i32_0 : i32, i32, i32
  }
  func.func @transform_6(%arg0: i32) -> (i32, i32, i32) {
    %c0_i32 = arith.constant 0 : i32
    %c0_i32_0 = arith.constant 0 : i32
    %c0_i32_1 = arith.constant 0 : i32
    return %arg0, %c0_i32, %c0_i32_0 : i32, i32, i32
  }
  func.func @transform_7(%arg0: i32) -> (i32, i32, i32) {
    %c0_i32 = arith.constant 0 : i32
    %c0_i32_0 = arith.constant 0 : i32
    %c0_i32_1 = arith.constant 0 : i32
    return %arg0, %c0_i32, %c0_i32_0 : i32, i32, i32
  }
  func.func @transform_8(%arg0: i32) -> (i32, i32) {
    %c0_i32 = arith.constant 0 : i32
    %c0_i32_0 = arith.constant 0 : i32
    %c0_i32_1 = arith.constant 0 : i32
    return %c0_i32, %c0_i32_0 : i32, i32
  }
  func.func @transform_9(%arg0: i32) -> (i32, i32, i32) {
    %c0_i32 = arith.constant 0 : i32
    %c0_i32_0 = arith.constant 0 : i32
    %c0_i32_1 = arith.constant 0 : i32
    %c0_i32_2 = arith.constant 0 : i32
    return %c0_i32, %c0_i32_0, %c0_i32_1 : i32, i32, i32
  }
  func.func @transform_10(%arg0: i32) -> (i32, i32) {
    %c0_i32 = arith.constant 0 : i32
    %c0_i32_0 = arith.constant 0 : i32
    %c0_i32_1 = arith.constant 0 : i32
    return %c0_i32, %c0_i32_0 : i32, i32
  }
  func.func @transform_11(%arg0: i32) -> (i32, i32) {
    %c0_i32 = arith.constant 0 : i32
    %c0_i32_0 = arith.constant 0 : i32
    %c0_i32_1 = arith.constant 0 : i32
    return %c0_i32, %c0_i32_0 : i32, i32
  }
  func.func @transform_12(%arg0: i32) -> (i32, i32) {
    %c0_i32 = arith.constant 0 : i32
    %c0_i32_0 = arith.constant 0 : i32
    %c0_i32_1 = arith.constant 0 : i32
    return %c0_i32, %c0_i32_0 : i32, i32
  }
  func.func @transform_13(%arg0: i32) -> (i32, i32) {
    %c0_i32 = arith.constant 0 : i32
    %c0_i32_0 = arith.constant 0 : i32
    %c0_i32_1 = arith.constant 0 : i32
    return %c0_i32, %c0_i32_0 : i32, i32
  }
  func.func @transform_14(%arg0: i32) -> (i32, i32) {
    %c0_i32 = arith.constant 0 : i32
    %c0_i32_0 = arith.constant 0 : i32
    %c0_i32_1 = arith.constant 0 : i32
    return %c0_i32, %c0_i32_0 : i32, i32
  }
  func.func @transform_15(%arg0: i32) -> (i32, i32) {
    %c0_i32 = arith.constant 0 : i32
    %c0_i32_0 = arith.constant 0 : i32
    %c0_i32_1 = arith.constant 0 : i32
    return %c0_i32, %c0_i32_0 : i32, i32
  }
  func.func @transform_16(%arg0: i32) -> (i32, i32) {
    %c0_i32 = arith.constant 0 : i32
    %c0_i32_0 = arith.constant 0 : i32
    %c0_i32_1 = arith.constant 0 : i32
    return %c0_i32, %c0_i32_0 : i32, i32
  }
  func.func @transform_17(%arg0: i32) -> (i32, i32) {
    %c0_i32 = arith.constant 0 : i32
    %c0_i32_0 = arith.constant 0 : i32
    %c0_i32_1 = arith.constant 0 : i32
    return %c0_i32, %c0_i32_0 : i32, i32
  }
}

</mosaic_0001>

<bundles_post_ra>
// kernel: vit_classifier_forward.1
= control target key start
LH: loop header
LB: loop body
LE: loop exit
PB: predicated region body
PF: predicated region fallthrough
CT: control target
= control target key end

     0   :  { %s10971_s0 = inlined_call_operand.vmem [shape: bf16[64,1536], index: 0, kind: input, shape index: {}]   ;;  %s10972_s1 = inlined_call_operand.vmem [shape: bf16[1536,128], index: 1, kind: input, shape index: {}]   ;;  %s10973_s2 = inlined_call_operand.vmem [shape: f32[64,128], index: 2, kind: input, shape index: {}]   ;;  %s10974_s3 = inlined_call_operand.vmem [shape: bf16[4,128,384], index: 3, kind: input, shape index: {}]   ;;  %s10975_s4 = inlined_call_operand.vmem [shape: bf16[4,128,128], index: 4, kind: input, shape index: {}]   ;;  %s10976_s5 = inlined_call_operand.vmem [shape: bf16[4,128,192], index: 5, kind: input, shape index: {}]   ;;  %s10977_s6 = inlined_call_operand.vmem [shape: bf16[4,192,128], index: 6, kind: input, shape index: {}]   ;;  %s10978_s7 = inlined_call_operand.vmem [shape: f32[4,8,192], index: 7, kind: input, shape index: {}]   ;;  %s10979_s8 = inlined_call_operand.vmem [shape: bf16[20,64], index: 8, kind: input, shape index: {}]   ;;  %s10980_s9 = inlined_call_operand.vmem [shape: bf16[10,128,128], index: 9, kind: input, shape index: {}]   ;;  %s10981_s10 = inlined_call_operand.vmem [shape: f32[1,128], index: 10, kind: input, shape index: {}]   ;;  %s10982_s11 = inlined_call_operand.vmem [shape: bf16[128,64], index: 11, kind: input, shape index: {}]   ;;  %s10983_s12 = inlined_call_operand.vmem [shape: f32[1,64], index: 12, kind: input, shape index: {}]   ;;  %s10984_s13 = inlined_call_operand.vmem [shape: bf16[64,32], index: 13, kind: input, shape index: {}]   ;;  %s10985_s14 = inlined_call_operand.vmem [shape: f32[1,32], index: 14, kind: input, shape index: {}]   ;;  %s10986_s15 = inlined_call_operand.vmem [shape: bf16[32,2], index: 15, kind: input, shape index: {}]   ;;  %s10987_s16 = inlined_call_operand.vmem [shape: f32[1,2], index: 16, kind: input, shape index: {}]   ;;  %s10988_s17 = inlined_call_operand.hbm [shape: f32[2,2], index: 17, kind: output, shape index: {}]  }
   0x1   :  { %11003 = sst [smem:[#allocation14_spill]] %s10971_s0 }
   0x2   :  { %11004 = sst [smem:[#allocation15_spill]] %s10972_s1 }
   0x3   :  { %11005 = sst [smem:[#allocation16_spill]] %s10985_s14 }
   0x4   :  { %11006 = sst [smem:[#allocation17_spill]] %s10986_s15 }
   0x5   :  { %11007 = sst [smem:[#allocation18_spill]] %s10987_s16 }
   0x6   :  { %11008 = sst [smem:[#allocation19_spill]] %s10988_s17 }
   0x7   :  { %22 = vsyncpa [#allocation4], 0  ;;  %s8828_s24 = smov 0  }
   0x8 LB: > { %11009 = sst [smem:[#allocation6_spill]] %s8728_s24  ;;  %s8834_s25 = sadd.s32 4294967295, %s8728_s24   ;;  %s8728_s24 = sphi %s8828_s24, %s28_s24  }
   0x9   : > { %p6643_p0 = scmp.ge.s32.totalorder %s8728_s24, 1  ;;  %p523_p1 = scmp.lt.s32.totalorder %s8728_s24, 5 }
   0xb   : > { %p524_p2 = pnand %p6643_p0, %p523_p1 }
   0xd   : > { %527 = sbr.rel (%p524_p2) target bundleno = 5440 (0x1540), region = 88 }
  0x14   : > { %p590_p3 = scmp.lt.s32.totalorder %s8834_s25, 3  ;;  %p6652_p4 = scmp.ne.s32.totalorder %s8834_s25, 0 }
  0x15   : > { %s11010_s1 = sld [smem:[#allocation15_spill]] (!%p6652_p4) }
  0x16   : > { %s591_s26 = scalar_select %p590_p3, %s8834_s25, 3 }
  0x17   : > { %619 = sbr.rel (%p6652_p4) target bundleno = 371 (0x173), region = 92 }
  0x18   : > { %s8034_s27 = smul.u32 192, %s591_s26  ;;  %s7146_s28 = sshll.u32 %s591_s26, 6 }
  0x19   : > { %s8843_s30 = scalar_lea.vmem %s10975_s4, %s7146_s28  ;;  %s7147_s18 = sshll.u32 %s591_s26, 7 }
  0x1a   : > { %s8848_s20 = scalar_lea.vmem %s10974_s3, %s8034_s27  ;;  %s8853_s23 = scalar_lea.vmem %s10976_s5, %s7147_s18 }
  0x1b   : > { %s8035_s24 = smul.u32 96, %s591_s26  ;;  %s7148_s17 = sshll.u32 %s591_s26, 4  ;;  %v8058_v0 = vld [vmem:[%s11010_s1 + $0x40] sm:$0xff] (!%p6652_p4)   ;;  %v8062_v4 = vld [vmem:[%s11010_s1 + $0x48] sm:$0xff] (!%p6652_p4)   ;;  %v8066_v8 = vld [vmem:[%s11010_s1 + $0x50] sm:$0xff] (!%p6652_p4)  }
  0x1c   : > { %s8858_s15 = scalar_lea.vmem %s10978_s7, %s7148_s17  ;;  %v8059_v1 = vld [vmem:[%s11010_s1 + $0xc0] sm:$0xff] (!%p6652_p4)   ;;  %7149 = vmatprep.subr.bf16.mxu0 (!%p6652_p4), %v8058_v0  ;;  %v8063_v5 = vld [vmem:[%s11010_s1 + $0xc8] sm:$0xff] (!%p6652_p4)   ;;  %v8067_v9 = vld [vmem:[%s11010_s1 + $0xd0] sm:$0xff] (!%p6652_p4)   ;;  %s11011_s17 = sld [smem:[#allocation14_spill]] (!%p6652_p4) }
  0x1d   : > { %s8863_s0 = scalar_lea.vmem %s10977_s6, %s8035_s24  ;;  %v8060_v2 = vld [vmem:[%s11010_s1] sm:$0xff] (!%p6652_p4)   ;;  %7189 = vmatprep.subr.bf16.mxu1 (!%p6652_p4), %v8059_v1  ;;  %v8064_v6 = vld [vmem:[%s11010_s1 + $0x8] sm:$0xff] (!%p6652_p4)   ;;  %v8068_v10 = vld [vmem:[%s11010_s1 + $0x10] sm:$0xff] (!%p6652_p4)  }
  0x1e   : > { %v8061_v3 = vld [vmem:[%s11010_s1 + $0x80] sm:$0xff]   ;;  %7150 = vmatpush3.bf16.msra.mxu0 %v8060_v2  ;;  %v8065_v7 = vld [vmem:[%s11010_s1 + $0x88] sm:$0xff]   ;;  %v8069_v11 = vld [vmem:[%s11010_s1 + $0x90] sm:$0xff]  }
  0x1f   : > { %7190 = vmatpush3.bf16.msra.mxu1 %v8061_v3  ;;  %7151 = vmatprep.subr.bf16.mxu0 %v8062_v4  ;;  %v8070_v12 = vld [vmem:[%s11010_s1 + $0x58] sm:$0xff]   ;;  %v8074_v16 = vld [vmem:[%s11010_s1 + $0x60] sm:$0xff]   ;;  %v8078_v20 = vld [vmem:[%s11010_s1 + $0x68] sm:$0xff]  }
  0x20   : > { %7191 = vmatprep.subr.bf16.mxu1 %v8063_v5  ;;  %v8071_v13 = vld [vmem:[%s11010_s1 + $0xd8] sm:$0xff]   ;;  %v8075_v17 = vld [vmem:[%s11010_s1 + $0xe0] sm:$0xff]   ;;  %v8079_v21 = vld [vmem:[%s11010_s1 + $0xe8] sm:$0xff]  }
  0x21   : > { %v8072_v14 = vld [vmem:[%s11010_s1 + $0x18] sm:$0xff]   ;;  %v8076_v18 = vld [vmem:[%s11010_s1 + $0x20] sm:$0xff]   ;;  %v8080_v22 = vld [vmem:[%s11010_s1 + $0x28] sm:$0xff]  }
  0x22   : > { %7152 = vmatpush3.bf16.msra.mxu0 %v8064_v6  ;;  %v8073_v15 = vld [vmem:[%s11010_s1 + $0x98] sm:$0xff]   ;;  %v8077_v19 = vld [vmem:[%s11010_s1 + $0xa0] sm:$0xff]   ;;  %v8081_v23 = vld [vmem:[%s11010_s1 + $0xa8] sm:$0xff]  }
  0x23   : > { %7192 = vmatpush3.bf16.msra.mxu1 %v8065_v7  ;;  %7153 = vmatprep.subr.bf16.mxu0 %v8066_v8  ;;  %v8082_v24 = vld [vmem:[%s11010_s1 + $0x70] sm:$0xff]   ;;  %v8086_v28 = vld [vmem:[%s11010_s1 + $0x78] sm:$0xff]   ;;  %v8096_v36 = vld [vmem:[%s11010_s1 + $0x140] sm:$0xff]  }
  0x24   : > { %7193 = vmatprep.subr.bf16.mxu1 %v8067_v9  ;;  %v8083_v25 = vld [vmem:[%s11010_s1 + $0xf0] sm:$0xff]   ;;  %v8087_v29 = vld [vmem:[%s11010_s1 + $0xf8] sm:$0xff]   ;;  %v8097_v37 = vld [vmem:[%s11010_s1 + $0x1c0] sm:$0xff]  }
  0x25   : > { %v8084_v26 = vld [vmem:[%s11010_s1 + $0x30] sm:$0xff]   ;;  %v8088_v30 = vld [vmem:[%s11010_s1 + $0x38] sm:$0xff]   ;;  %v8098_v38 = vld [vmem:[%s11010_s1 + $0x100] sm:$0xff]  }
  0x26   : > { %7154 = vmatpush3.bf16.msra.mxu0 %v8068_v10  ;;  %v8085_v27 = vld [vmem:[%s11010_s1 + $0xb0] sm:$0xff]   ;;  %v8089_v31 = vld [vmem:[%s11010_s1 + $0xb8] sm:$0xff]   ;;  %v8099_v39 = vld [vmem:[%s11010_s1 + $0x180] sm:$0xff]  }
  0x27   : > { %7194 = vmatpush3.bf16.msra.mxu1 %v8069_v11  ;;  %7155 = vmatprep.subr.bf16.mxu0 %v8070_v12  ;;  %v8090_v32 = vld [vmem:[%s11011_s17] ss:$48 sps:$4 sm:$0xff]   ;;  %v8092_v33 = vld [vmem:[%s11011_s17 + $0x4] ss:$48 sps:$4 sm:$0xff]   ;;  %v8093_v34 = vld [vmem:[%s11011_s17 + $0x8] ss:$48 sps:$4 sm:$0xff]  }
  0x28   : > { %7195 = vmatprep.subr.bf16.mxu1 %v8071_v13  ;;  %v8095_v35 = vld [vmem:[%s11011_s17 + $0xc] ss:$48 sps:$4 sm:$0xff]   ;;  %1716 = vmatprep.mubr.bf16.mxu0 %v8092_v33  ;;  %v8104_v44 = vld [vmem:[%s11011_s17 + $0x64] ss:$48 sps:$4 sm:$0xff]   ;;  %v8108_v46 = vld [vmem:[%s11011_s17 + $0x60] ss:$48 sps:$4 sm:$0xff]  }
  0x29   : > { %1781 = vmatprep.mubr.bf16.mxu1 %v8095_v35  ;;  %v8100_v40 = vld [vmem:[%s11010_s1 + $0x148] sm:$0xff]   ;;  %v8110_v48 = vld [vmem:[%s11010_s1 + $0x150] sm:$0xff]   ;;  %v8114_v52 = vld [vmem:[%s11010_s1 + $0x158] sm:$0xff]  }
  0x2a   : > { %7156 = vmatpush3.bf16.msra.mxu0 %v8072_v14  ;;  %v8101_v41 = vld [vmem:[%s11010_s1 + $0x1c8] sm:$0xff]   ;;  %v8111_v49 = vld [vmem:[%s11010_s1 + $0x1d0] sm:$0xff]   ;;  %v8115_v53 = vld [vmem:[%s11010_s1 + $0x1d8] sm:$0xff]  }
  0x2b   : > { %7196 = vmatpush3.bf16.msra.mxu1 %v8073_v15  ;;  %7157 = vmatprep.subr.bf16.mxu0 %v8074_v16  ;;  %v8102_v42 = vld [vmem:[%s11010_s1 + $0x108] sm:$0xff]   ;;  %v8112_v50 = vld [vmem:[%s11010_s1 + $0x110] sm:$0xff]   ;;  %v8116_v54 = vld [vmem:[%s11010_s1 + $0x118] sm:$0xff]  }
  0x2c   : > { %7197 = vmatprep.subr.bf16.mxu1 %v8075_v17  ;;  %v8103_v43 = vld [vmem:[%s11010_s1 + $0x188] sm:$0xff]   ;;  %v8113_v51 = vld [vmem:[%s11010_s1 + $0x190] sm:$0xff]   ;;  %v8117_v55 = vld [vmem:[%s11010_s1 + $0x198] sm:$0xff]  }
  0x2d   : > { %v8106_v45 = vld [vmem:[%s11011_s17 + $0x6c] ss:$48 sps:$4 sm:$0xff]   ;;  %v8109_v47 = vld [vmem:[%s11011_s17 + $0x68] ss:$48 sps:$4 sm:$0xff]   ;;  %v8118_v56 = vld [vmem:[%s11011_s17 + $0xc4] ss:$48 sps:$4 sm:$0xff]  }
  0x2e   : > { %7158 = vmatpush3.bf16.msra.mxu0 %v8076_v18  ;;  %v8120_v57 = vld [vmem:[%s11011_s17 + $0xcc] ss:$48 sps:$4 sm:$0xff]   ;;  %v8122_v58 = vld [vmem:[%s11011_s17 + $0xc0] ss:$48 sps:$4 sm:$0xff]   ;;  %v8123_v59 = vld [vmem:[%s11011_s17 + $0xc8] ss:$48 sps:$4 sm:$0xff]  }
  0x2f   : > { %7198 = vmatpush3.bf16.msra.mxu1 %v8077_v19  ;;  %7159 = vmatprep.subr.bf16.mxu0 %v8078_v20  ;;  %v8124_v60 = vld [vmem:[%s11010_s1 + $0x160] sm:$0xff]   ;;  %v8128_v0 = vld [vmem:[%s11010_s1 + $0x168] sm:$0xff]   ;;  %v8138_v8 = vld [vmem:[%s11010_s1 + $0x170] sm:$0xff]  }
  0x30   : > { %7199 = vmatprep.subr.bf16.mxu1 %v8079_v21  ;;  %v8125_v61 = vld [vmem:[%s11010_s1 + $0x1e0] sm:$0xff]   ;;  %v8129_v1 = vld [vmem:[%s11010_s1 + $0x1e8] sm:$0xff]   ;;  %v8139_v9 = vld [vmem:[%s11010_s1 + $0x1f0] sm:$0xff]  }
  0x31   : > { %v8126_v62 = vld [vmem:[%s11010_s1 + $0x120] sm:$0xff]   ;;  %v8130_v2 = vld [vmem:[%s11010_s1 + $0x128] sm:$0xff]   ;;  %v8140_v10 = vld [vmem:[%s11010_s1 + $0x130] sm:$0xff]  }
  0x32   : > { %7160 = vmatpush3.bf16.msra.mxu0 %v8080_v22  ;;  %v8127_v63 = vld [vmem:[%s11010_s1 + $0x1a0] sm:$0xff]   ;;  %v8131_v3 = vld [vmem:[%s11010_s1 + $0x1a8] sm:$0xff]   ;;  %v8141_v11 = vld [vmem:[%s11010_s1 + $0x1b0] sm:$0xff]  }
  0x33   : > { %7200 = vmatpush3.bf16.msra.mxu1 %v8081_v23  ;;  %7161 = vmatprep.subr.bf16.mxu0 %v8082_v24  ;;  %v8132_v4 = vld [vmem:[%s11011_s17 + $0x124] ss:$48 sps:$4 sm:$0xff]   ;;  %v8134_v5 = vld [vmem:[%s11011_s17 + $0x12c] ss:$48 sps:$4 sm:$0xff]   ;;  %v8136_v6 = vld [vmem:[%s11011_s17 + $0x120] ss:$48 sps:$4 sm:$0xff]  }
  0x34   : > { %7201 = vmatprep.subr.bf16.mxu1 %v8083_v25  ;;  %v8137_v7 = vld [vmem:[%s11011_s17 + $0x128] ss:$48 sps:$4 sm:$0xff]   ;;  %v8146_v16 = vld [vmem:[%s11011_s17 + $0x10] ss:$48 sps:$4 sm:$0xff]   ;;  %v8148_v17 = vld [vmem:[%s11011_s17 + $0x14] ss:$48 sps:$4 sm:$0xff]  }
  0x35   : > { %v8142_v12 = vld [vmem:[%s11010_s1 + $0x178] sm:$0xff]   ;;  %v8152_v20 = vld [vmem:[%s11010_s1 + $0x240] sm:$0xff]   ;;  %v8156_v24 = vld [vmem:[%s11010_s1 + $0x248] sm:$0xff]  }
  0x36   : > { %7162 = vmatpush3.bf16.msra.mxu0 %v8084_v26  ;;  %v8143_v13 = vld [vmem:[%s11010_s1 + $0x1f8] sm:$0xff]   ;;  %v8153_v21 = vld [vmem:[%s11010_s1 + $0x2c0] sm:$0xff]   ;;  %v8157_v25 = vld [vmem:[%s11010_s1 + $0x2c8] sm:$0xff]  }
  0x37   : > { %7202 = vmatpush3.bf16.msra.mxu1 %v8085_v27  ;;  %7163 = vmatprep.subr.bf16.mxu0 %v8086_v28  ;;  %v8144_v14 = vld [vmem:[%s11010_s1 + $0x138] sm:$0xff]   ;;  %v8154_v22 = vld [vmem:[%s11010_s1 + $0x200] sm:$0xff]   ;;  %v8158_v26 = vld [vmem:[%s11010_s1 + $0x208] sm:$0xff]  }
  0x38   : > { %7203 = vmatprep.subr.bf16.mxu1 %v8087_v29  ;;  %v8145_v15 = vld [vmem:[%s11010_s1 + $0x1b8] sm:$0xff]   ;;  %v8155_v23 = vld [vmem:[%s11010_s1 + $0x280] sm:$0xff]   ;;  %v8159_v27 = vld [vmem:[%s11010_s1 + $0x288] sm:$0xff]  }
  0x39   : > { %v8149_v18 = vld [vmem:[%s11011_s17 + $0x18] ss:$48 sps:$4 sm:$0xff]   ;;  %v8151_v19 = vld [vmem:[%s11011_s17 + $0x1c] ss:$48 sps:$4 sm:$0xff]   ;;  %v8160_v28 = vld [vmem:[%s11011_s17 + $0x74] ss:$48 sps:$4 sm:$0xff]  }
  0x3a   : > { %7164 = vmatpush3.bf16.msra.mxu0 %v8088_v30  ;;  %v8162_v29 = vld [vmem:[%s11011_s17 + $0x7c] ss:$48 sps:$4 sm:$0xff]   ;;  %v8164_v30 = vld [vmem:[%s11011_s17 + $0x70] ss:$48 sps:$4 sm:$0xff]  }
  0x3b   : > { %7204 = vmatpush3.bf16.msra.mxu1 %v8089_v31  ;;  %7229 = vmatprep.subr.bf16.mxu0 %v8096_v36  ;;  %v8165_v31 = vld [vmem:[%s11011_s17 + $0x78] ss:$48 sps:$4 sm:$0xff]   ;;  %v8167_v33 = vld [vmem:[%s11010_s1 + $0x2d0] sm:$0xff]  }
  0x3c   : > { %7269 = vmatprep.subr.bf16.mxu1 %v8097_v37  ;;  %v8169_v35 = vld [vmem:[%s11010_s1 + $0x290] sm:$0xff]   ;;  %v8170_v36 = vld [vmem:[%s11010_s1 + $0x258] sm:$0xff]  }
  0x3d   : > { %1717 = vmatmul.mubr.bf16.vlgmr.msra.gmra.mrb[0].mxu0 %v8090_v32  ;;  %v8166_v32 = vld [vmem:[%s11010_s1 + $0x250] sm:$0xff]   ;;  %v8171_v37 = vld [vmem:[%s11010_s1 + $0x2d8] sm:$0xff]  }
  0x3e   : > { %1782 = vmatmul.mubr.bf16.vlgmr.msra.gmra.mrb[0].mxu1 %v8093_v34  ;;  %7230 = vmatpush3.bf16.msra.mxu0 %v8098_v38  ;;  %v8168_v34 = vld [vmem:[%s11010_s1 + $0x210] sm:$0xff]   ;;  %v8172_v38 = vld [vmem:[%s11010_s1 + $0x218] sm:$0xff]  }
  0x3f   : > { %7270 = vmatpush3.bf16.msra.mxu1 %v8099_v39  ;;  %7231 = vmatprep.subr.bf16.mxu0 %v8100_v40  ;;  %v8173_v39 = vld [vmem:[%s11010_s1 + $0x298] sm:$0xff]   ;;  %v8174_v40 = vld [vmem:[%s11011_s17 + $0xd4] ss:$48 sps:$4 sm:$0xff]  }
  0x40   : > { %7271 = vmatprep.subr.bf16.mxu1 %v8101_v41  ;;  %1724 = vmatprep.mubr.bf16.mxu0 %v8104_v44  ;;  %v8176_v41 = vld [vmem:[%s11011_s17 + $0xdc] ss:$48 sps:$4 sm:$0xff]   ;;  %v8180_v44 = vld [vmem:[%s11010_s1 + $0x260] sm:$0xff]  }
  0x41   : > { %1789 = vmatprep.mubr.bf16.mxu1 %v8106_v45  ;;  %v8181_v45 = vld [vmem:[%s11010_s1 + $0x2e0] sm:$0xff]  }
  0x42   : > { %7232 = vmatpush3.bf16.msra.mxu0 %v8102_v42  ;;  %v8178_v42 = vld [vmem:[%s11011_s17 + $0xd0] ss:$48 sps:$4 sm:$0xff]  }
  0x43   : > { %7272 = vmatpush3.bf16.msra.mxu1 %v8103_v43  ;;  %7233 = vmatprep.subr.bf16.mxu0 %v8110_v48  ;;  %v8179_v43 = vld [vmem:[%s11011_s17 + $0xd8] ss:$48 sps:$4 sm:$0xff]  }
  0x44   : > { %7273 = vmatprep.subr.bf16.mxu1 %v8111_v49  ;;  %v8184_v48 = vld [vmem:[%s11010_s1 + $0x268] sm:$0xff]  }
  0x45   : > { %1725 = vmatmul.mubr.bf16.gmra.mrb[4].mxu0 %v8108_v46  ;;  %v8182_v46 = vld [vmem:[%s11010_s1 + $0x220] sm:$0xff]   ;;  %v8185_v49 = vld [vmem:[%s11010_s1 + $0x2e8] sm:$0xff]  }
  0x46   : > { %1790 = vmatmul.mubr.bf16.gmra.mrb[4].mxu1 %v8109_v47  ;;  %7234 = vmatpush3.bf16.msra.mxu0 %v8112_v50  ;;  %v8183_v47 = vld [vmem:[%s11010_s1 + $0x2a0] sm:$0xff]   ;;  %v8186_v50 = vld [vmem:[%s11010_s1 + $0x228] sm:$0xff]  }
  0x47   : > { %7274 = vmatpush3.bf16.msra.mxu1 %v8113_v51  ;;  %7235 = vmatprep.subr.bf16.mxu0 %v8114_v52  ;;  %v8187_v51 = vld [vmem:[%s11010_s1 + $0x2a8] sm:$0xff]   ;;  %v8188_v52 = vld [vmem:[%s11011_s17 + $0x134] ss:$48 sps:$4 sm:$0xff]  }
  0x48   : > { %7275 = vmatprep.subr.bf16.mxu1 %v8115_v53  ;;  %1732 = vmatprep.mubr.bf16.mxu0 %v8118_v56  ;;  %v8190_v53 = vld [vmem:[%s11011_s17 + $0x13c] ss:$48 sps:$4 sm:$0xff]   ;;  %v8194_v56 = vld [vmem:[%s11010_s1 + $0x270] sm:$0xff]  }
  0x49   : > { %1797 = vmatprep.mubr.bf16.mxu1 %v8120_v57  ;;  %v8195_v57 = vld [vmem:[%s11010_s1 + $0x2f0] sm:$0xff]  }
  0x4a   : > { %7236 = vmatpush3.bf16.msra.mxu0 %v8116_v54  ;;  %v8192_v54 = vld [vmem:[%s11011_s17 + $0x130] ss:$48 sps:$4 sm:$0xff]  }
  0x4b   : > { %7276 = vmatpush3.bf16.msra.mxu1 %v8117_v55  ;;  %7237 = vmatprep.subr.bf16.mxu0 %v8124_v60  ;;  %v8193_v55 = vld [vmem:[%s11011_s17 + $0x138] ss:$48 sps:$4 sm:$0xff]  }
  0x4c   : > { %7277 = vmatprep.subr.bf16.mxu1 %v8125_v61  ;;  %v8198_v60 = vld [vmem:[%s11010_s1 + $0x278] sm:$0xff]  }
  0x4d   : > { %1733 = vmatmul.mubr.bf16.gmra.mrb[8].mxu0 %v8122_v58  ;;  %v8196_v58 = vld [vmem:[%s11010_s1 + $0x230] sm:$0xff]   ;;  %v8199_v61 = vld [vmem:[%s11010_s1 + $0x2f8] sm:$0xff]  }
  0x4e   : > { %1798 = vmatmul.mubr.bf16.gmra.mrb[8].mxu1 %v8123_v59  ;;  %7238 = vmatpush3.bf16.msra.mxu0 %v8126_v62  ;;  %v8197_v59 = vld [vmem:[%s11010_s1 + $0x2b0] sm:$0xff]   ;;  %v8200_v62 = vld [vmem:[%s11010_s1 + $0x238] sm:$0xff]  }
  0x4f   : > { %7278 = vmatpush3.bf16.msra.mxu1 %v8127_v63  ;;  %7239 = vmatprep.subr.bf16.mxu0 %v8128_v0  ;;  %v8201_v63 = vld [vmem:[%s11010_s1 + $0x2b8] sm:$0xff]   ;;  %v8202_v0 = vld [vmem:[%s11011_s17 + $0x20] ss:$48 sps:$4 sm:$0xff]  }
  0x50   : > { %7279 = vmatprep.subr.bf16.mxu1 %v8129_v1  ;;  %1740 = vmatprep.mubr.bf16.mxu0 %v8132_v4  ;;  %v8204_v1 = vld [vmem:[%s11011_s17 + $0x24] ss:$48 sps:$4 sm:$0xff]  }
  0x51   : > { %1805 = vmatprep.mubr.bf16.mxu1 %v8134_v5  ;;  %v8208_v4 = vld [vmem:[%s11011_s17 + $0x84] ss:$48 sps:$4 sm:$0xff]   ;;  %v8210_v5 = vld [vmem:[%s11011_s17 + $0x8c] ss:$48 sps:$4 sm:$0xff]  }
  0x52   : > { %7240 = vmatpush3.bf16.msra.mxu0 %v8130_v2  ;;  %v8205_v2 = vld [vmem:[%s11011_s17 + $0x28] ss:$48 sps:$4 sm:$0xff]  }
  0x53   : > { %7280 = vmatpush3.bf16.msra.mxu1 %v8131_v3  ;;  %7241 = vmatprep.subr.bf16.mxu0 %v8138_v8  ;;  %v8207_v3 = vld [vmem:[%s11011_s17 + $0x2c] ss:$48 sps:$4 sm:$0xff]   ;;  %v8214_v8 = vld [vmem:[%s11011_s17 + $0xe4] ss:$48 sps:$4 sm:$0xff]  }
  0x54   : > { %7281 = vmatprep.subr.bf16.mxu1 %v8139_v9  ;;  %v8216_v9 = vld [vmem:[%s11011_s17 + $0xec] ss:$48 sps:$4 sm:$0xff]  }
  0x55   : > { %1741 = vmatmul.mubr.bf16.gmra.mrb[12].mxu0 %v8136_v6  ;;  %v8212_v6 = vld [vmem:[%s11011_s17 + $0x80] ss:$48 sps:$4 sm:$0xff]  }
  0x56   : > { %1806 = vmatmul.mubr.bf16.gmra.mrb[12].mxu1 %v8137_v7  ;;  %7242 = vmatpush3.bf16.msra.mxu0 %v8140_v10  ;;  %v8213_v7 = vld [vmem:[%s11011_s17 + $0x88] ss:$48 sps:$4 sm:$0xff]   ;;  %v8218_v10 = vld [vmem:[%s11011_s17 + $0xe0] ss:$48 sps:$4 sm:$0xff]  }
  0x57   : > { %7282 = vmatpush3.bf16.msra.mxu1 %v8141_v11  ;;  %7243 = vmatprep.subr.bf16.mxu0 %v8142_v12  ;;  %v8219_v11 = vld [vmem:[%s11011_s17 + $0xe8] ss:$48 sps:$4 sm:$0xff]   ;;  %v8220_v12 = vld [vmem:[%s11011_s17 + $0x144] ss:$48 sps:$4 sm:$0xff]  }
  0x58   : > { %7283 = vmatprep.subr.bf16.mxu1 %v8143_v13  ;;  %1846 = vmatprep.mubr.bf16.mxu0 %v8148_v17  ;;  %v8222_v13 = vld [vmem:[%s11011_s17 + $0x14c] ss:$48 sps:$4 sm:$0xff]  }
  0x59   : > { %1911 = vmatprep.mubr.bf16.mxu1 %v8151_v19 }
  0x5a   : > { %7244 = vmatpush3.bf16.msra.mxu0 %v8144_v14  ;;  %v8224_v14 = vld [vmem:[%s11011_s17 + $0x140] ss:$48 sps:$4 sm:$0xff]  }
  0x5b   : > { %7284 = vmatpush3.bf16.msra.mxu1 %v8145_v15  ;;  %7309 = vmatprep.subr.bf16.mxu0 %v8152_v20  ;;  %v8225_v15 = vld [vmem:[%s11011_s17 + $0x148] ss:$48 sps:$4 sm:$0xff]  }
  0x5c   : > { %7349 = vmatprep.subr.bf16.mxu1 %v8153_v21 }
  0x5d   : > { %1847 = vmatmul.mubr.bf16.vlgmr.msra.gmra.mrb[16].mxu0 %v8146_v16 }
  0x5e   : > { %1912 = vmatmul.mubr.bf16.vlgmr.msra.gmra.mrb[16].mxu1 %v8149_v18  ;;  %7310 = vmatpush3.bf16.msra.mxu0 %v8154_v22  ;;  %v860_v18 = vld [vmem:[%s10973_s2] sm:$0xff] }
  0x5f   : > { %7350 = vmatpush3.bf16.msra.mxu1 %v8155_v23  ;;  %7311 = vmatprep.subr.bf16.mxu0 %v8156_v24 }
  0x60   : > { %7351 = vmatprep.subr.bf16.mxu1 %v8157_v25  ;;  %1854 = vmatprep.mubr.bf16.mxu0 %v8160_v28  ;;  %v861_v25 = vld [vmem:[%s10973_s2 + $0x8] sm:$0xff] }
  0x61   : > { %1919 = vmatprep.mubr.bf16.mxu1 %v8162_v29 }
  0x62   : > { %7312 = vmatpush3.bf16.msra.mxu0 %v8158_v26 }
  0x63   : > { %7352 = vmatpush3.bf16.msra.mxu1 %v8159_v27  ;;  %7313 = vmatprep.subr.bf16.mxu0 %v8166_v32 }
  0x64   : > { %7353 = vmatprep.subr.bf16.mxu1 %v8167_v33 }
  0x65   : > { %1855 = vmatmul.mubr.bf16.gmra.mrb[20].mxu0 %v8164_v30 }
  0x66   : > { %1920 = vmatmul.mubr.bf16.gmra.mrb[20].mxu1 %v8165_v31  ;;  %7314 = vmatpush3.bf16.msra.mxu0 %v8168_v34 }
  0x67   : > { %7354 = vmatpush3.bf16.msra.mxu1 %v8169_v35  ;;  %7315 = vmatprep.subr.bf16.mxu0 %v8170_v36  ;;  %v862_v36 = vld [vmem:[%s10973_s2 + $0x10] sm:$0xff] }
  0x68   : > { %7355 = vmatprep.subr.bf16.mxu1 %v8171_v37  ;;  %1862 = vmatprep.mubr.bf16.mxu0 %v8174_v40 }
  0x69   : > { %1927 = vmatprep.mubr.bf16.mxu1 %v8176_v41 }
  0x6a   : > { %7316 = vmatpush3.bf16.msra.mxu0 %v8172_v38 }
  0x6b   : > { %7356 = vmatpush3.bf16.msra.mxu1 %v8173_v39  ;;  %7317 = vmatprep.subr.bf16.mxu0 %v8180_v44 }
  0x6c   : > { %7357 = vmatprep.subr.bf16.mxu1 %v8181_v45 }
  0x6d   : > { %1863 = vmatmul.mubr.bf16.gmra.mrb[24].mxu0 %v8178_v42 }
  0x6e   : > { %1928 = vmatmul.mubr.bf16.gmra.mrb[24].mxu1 %v8179_v43  ;;  %7318 = vmatpush3.bf16.msra.mxu0 %v8182_v46  ;;  %v863_v43 = vld [vmem:[%s10973_s2 + $0x18] sm:$0xff] }
  0x6f   : > { %7358 = vmatpush3.bf16.msra.mxu1 %v8183_v47  ;;  %7319 = vmatprep.subr.bf16.mxu0 %v8184_v48 }
  0x70   : > { %7359 = vmatprep.subr.bf16.mxu1 %v8185_v49  ;;  %1870 = vmatprep.mubr.bf16.mxu0 %v8188_v52 }
  0x71   : > { %1935 = vmatprep.mubr.bf16.mxu1 %v8190_v53 }
  0x72   : > { %7320 = vmatpush3.bf16.msra.mxu0 %v8186_v50 }
  0x73   : > { %7360 = vmatpush3.bf16.msra.mxu1 %v8187_v51  ;;  %7321 = vmatprep.subr.bf16.mxu0 %v8194_v56 }
  0x74   : > { %7361 = vmatprep.subr.bf16.mxu1 %v8195_v57 }
  0x75   : > { %1871 = vmatmul.mubr.bf16.gmra.mrb[28].mxu0 %v8192_v54  ;;  %v864_v54 = vld [vmem:[%s10973_s2 + $0x20] sm:$0xff] }
  0x76   : > { %1936 = vmatmul.mubr.bf16.gmra.mrb[28].mxu1 %v8193_v55  ;;  %7322 = vmatpush3.bf16.msra.mxu0 %v8196_v58 }
  0x77   : > { %7362 = vmatpush3.bf16.msra.mxu1 %v8197_v59  ;;  %7323 = vmatprep.subr.bf16.mxu0 %v8198_v60 }
  0x78   : > { %7363 = vmatprep.subr.bf16.mxu1 %v8199_v61  ;;  %1976 = vmatprep.mubr.bf16.mxu0 %v8204_v1  ;;  %v865_v61 = vld [vmem:[%s10973_s2 + $0x28] sm:$0xff] }
  0x79   : > { %2041 = vmatprep.mubr.bf16.mxu1 %v8207_v3 }
  0x7a   : > { %7324 = vmatpush3.bf16.msra.mxu0 %v8200_v62 }
  0x7b   : > { %7364 = vmatpush3.bf16.msra.mxu1 %v8201_v63 }
  0x7d   : > { %1977 = vmatmul.mubr.bf16.vlgmr.msra.gmra.mrb[32].mxu0 %v8202_v0 }
  0x7e   : > { %2042 = vmatmul.mubr.bf16.vlgmr.msra.gmra.mrb[32].mxu1 %v8205_v2  ;;  %1984 = vmatprep.mubr.bf16.mxu0 %v8208_v4 }
  0x7f   : > { %2049 = vmatprep.mubr.bf16.mxu1 %v8210_v5 }
  0x85   : > { %1985 = vmatmul.mubr.bf16.gmra.mrb[36].mxu0 %v8212_v6 }
  0x86   : > { %2050 = vmatmul.mubr.bf16.gmra.mrb[36].mxu1 %v8213_v7  ;;  %1992 = vmatprep.mubr.bf16.mxu0 %v8214_v8  ;;  %v866_v8 = vld [vmem:[%s10973_s2 + $0x30] sm:$0xff] }
  0x87   : > { %2057 = vmatprep.mubr.bf16.mxu1 %v8216_v9 }
  0x8d   : > { %1993 = vmatmul.mubr.bf16.gmra.mrb[40].mxu0 %v8218_v10 }
  0x8e   : > { %2058 = vmatmul.mubr.bf16.gmra.mrb[40].mxu1 %v8219_v11  ;;  %2000 = vmatprep.mubr.bf16.mxu0 %v8220_v12 }
  0x8f   : > { %2065 = vmatprep.mubr.bf16.mxu1 %v8222_v13 }
  0x95   : > { %2001 = vmatmul.mubr.bf16.gmra.mrb[44].mxu0 %v8224_v14 }
  0x96   : > { %2066 = vmatmul.mubr.bf16.gmra.mrb[44].mxu1 %v8225_v15  ;;  %v867_v15 = vld [vmem:[%s10973_s2 + $0x38] sm:$0xff] }
 0x110   : > { %v7165_v16 = vpop.f32.mrb[0].mxu0 }
 0x111   : > { %v7205_v17 = vpop.f32.mrb[0].mxu1  ;;  %v7166_v19 = vpop.f32.mrb[1].mxu0 }
 0x112   : > { %v7167_v20 = vadd.f32 %v7166_v19, %v7165_v16  ;;  %v7206_v21 = vpop.f32.mrb[1].mxu1  ;;  %v7168_v22 = vpop.f32.mrb[2].mxu0 }
 0x113   : > { %v7207_v23 = vadd.f32 %v7206_v21, %v7205_v17  ;;  %v7208_v24 = vpop.f32.mrb[2].mxu1  ;;  %v7169_v26 = vpop.f32.mrb[3].mxu0 }
 0x114   : > { %v1719_v27 = vadd.f32 %v7167_v20, %v860_v18  ;;  %v7170_v28 = vadd.f32 %v7169_v26, %v7168_v22  ;;  %v7209_v29 = vpop.f32.mrb[3].mxu1 }
 0x115   : > { %v7210_v30 = vadd.f32 %v7209_v29, %v7208_v24 }
 0x116   : > { %v9304_v31 = vadd.f32 %v7207_v23, %v1719_v27  ;;  %v1722_v32 = vadd.f32 %v7170_v28, %v861_v25 }
 0x118   : > { %v9306_v33 = vadd.f32 %v7210_v30, %v1722_v32  ;;  %v7171_v34 = vpop.f32.mrb[4].mxu0 }
 0x119   : > { %v7211_v35 = vpop.f32.mrb[4].mxu1  ;;  %v7172_v37 = vpop.f32.mrb[5].mxu0 }
 0x11a   : > { %v7173_v38 = vadd.f32 %v7172_v37, %v7171_v34  ;;  %v7212_v39 = vpop.f32.mrb[5].mxu1  ;;  %v7174_v40 = vpop.f32.mrb[6].mxu0 }
 0x11b   : > { %v7213_v41 = vadd.f32 %v7212_v39, %v7211_v35  ;;  %v7214_v42 = vpop.f32.mrb[6].mxu1  ;;  %v7175_v44 = vpop.f32.mrb[7].mxu0 }
 0x11c   : > { %v1727_v45 = vadd.f32 %v7173_v38, %v862_v36  ;;  %v7176_v46 = vadd.f32 %v7175_v44, %v7174_v40  ;;  %v7215_v47 = vpop.f32.mrb[7].mxu1 }
 0x11d   : > { %v7216_v48 = vadd.f32 %v7215_v47, %v7214_v42 }
 0x11e   : > { %v9314_v49 = vadd.f32 %v7213_v41, %v1727_v45  ;;  %v1730_v50 = vadd.f32 %v7176_v46, %v863_v43 }
 0x120   : > { %v9316_v51 = vadd.f32 %v7216_v48, %v1730_v50  ;;  %v7177_v52 = vpop.f32.mrb[8].mxu0 }
 0x121   : > { %v7217_v53 = vpop.f32.mrb[8].mxu1  ;;  %v7178_v55 = vpop.f32.mrb[9].mxu0 }
 0x122   : > { %v7179_v56 = vadd.f32 %v7178_v55, %v7177_v52  ;;  %v7218_v57 = vpop.f32.mrb[9].mxu1  ;;  %v7180_v58 = vpop.f32.mrb[10].mxu0 }
 0x123   : > { %v7219_v59 = vadd.f32 %v7218_v57, %v7217_v53  ;;  %v7220_v60 = vpop.f32.mrb[10].mxu1  ;;  %v7181_v62 = vpop.f32.mrb[11].mxu0 }
 0x124   : > { %v1735_v63 = vadd.f32 %v7179_v56, %v864_v54  ;;  %v7182_v0 = vadd.f32 %v7181_v62, %v7180_v58  ;;  %v7221_v1 = vpop.f32.mrb[11].mxu1 }
 0x125   : > { %v7222_v2 = vadd.f32 %v7221_v1, %v7220_v60 }
 0x126   : > { %v9324_v3 = vadd.f32 %v7219_v59, %v1735_v63  ;;  %v1738_v4 = vadd.f32 %v7182_v0, %v865_v61 }
 0x128   : > { %v9326_v5 = vadd.f32 %v7222_v2, %v1738_v4  ;;  %v7183_v6 = vpop.f32.mrb[12].mxu0 }
 0x129   : > { %v7223_v7 = vpop.f32.mrb[12].mxu1  ;;  %v7184_v9 = vpop.f32.mrb[13].mxu0 }
 0x12a   : > { %v7224_v10 = vpop.f32.mrb[13].mxu1  ;;  %v7185_v11 = vadd.f32 %v7184_v9, %v7183_v6  ;;  %v7186_v13 = vpop.f32.mrb[14].mxu0 }
 0x12b   : > { %v7225_v12 = vadd.f32 %v7224_v10, %v7223_v7  ;;  %v7226_v14 = vpop.f32.mrb[14].mxu1  ;;  %v7187_v16 = vpop.f32.mrb[15].mxu0 }
 0x12c   : > { %v7227_v17 = vpop.f32.mrb[15].mxu1  ;;  %v1743_v18 = vadd.f32 %v7185_v11, %v866_v8  ;;  %v7188_v19 = vadd.f32 %v7187_v16, %v7186_v13 }
 0x12d   : > { %v7228_v20 = vadd.f32 %v7227_v17, %v7226_v14 }
 0x12e   : > { %v1808_v21 = vadd.f32 %v7225_v12, %v1743_v18  ;;  %v1746_v22 = vadd.f32 %v7188_v19, %v867_v15 }
 0x130   : > { %v9334_v23 = vadd.f32 %v7228_v20, %v1746_v22  ;;  %v7245_v24 = vpop.f32.mrb[16].mxu0 }
 0x131   : > { %v7246_v25 = vpop.f32.mrb[17].mxu0  ;;  %v7285_v26 = vpop.f32.mrb[16].mxu1 }
 0x132   : > { %v7247_v27 = vadd.f32 %v7246_v25, %v7245_v24  ;;  %v7248_v28 = vpop.f32.mrb[18].mxu0  ;;  %v7286_v29 = vpop.f32.mrb[17].mxu1 }
 0x133   : > { %v7249_v30 = vpop.f32.mrb[19].mxu0  ;;  %v7287_v34 = vadd.f32 %v7286_v29, %v7285_v26  ;;  %v7288_v35 = vpop.f32.mrb[18].mxu1 }
 0x134   : > { %v1849_v32 = vadd.f32 %v7247_v27, %v9304_v31  ;;  %v7250_v36 = vadd.f32 %v7249_v30, %v7248_v28  ;;  %v7289_v37 = vpop.f32.mrb[19].mxu1 }
 0x135   : > { %v7290_v40 = vadd.f32 %v7289_v37, %v7288_v35 }
 0x136   : > { %v1914_v38 = vadd.f32 %v7287_v34, %v1849_v32  ;;  %v1852_v39 = vadd.f32 %v7250_v36, %v9306_v33 }
 0x138   : > { %v9338_v41 = vadd.f32 %v7290_v40, %v1852_v39  ;;  %v7251_v42 = vpop.f32.mrb[20].mxu0 }
 0x139   : > { %v7291_v43 = vpop.f32.mrb[20].mxu1  ;;  %v7252_v44 = vpop.f32.mrb[21].mxu0 }
 0x13a   : > { %v7253_v45 = vadd.f32 %v7252_v44, %v7251_v42  ;;  %v7292_v46 = vpop.f32.mrb[21].mxu1  ;;  %v7254_v47 = vpop.f32.mrb[22].mxu0 }
 0x13b   : > { %v7293_v48 = vadd.f32 %v7292_v46, %v7291_v43  ;;  %v7294_v50 = vpop.f32.mrb[22].mxu1  ;;  %v7255_v52 = vpop.f32.mrb[23].mxu0 }
 0x13c   : > { %v1857_v31 = vadd.f32 %v7253_v45, %v9314_v49  ;;  %v7256_v53 = vadd.f32 %v7255_v52, %v7254_v47  ;;  %v7295_v54 = vpop.f32.mrb[23].mxu1 }
 0x13d   : > { %v7296_v55 = vadd.f32 %v7295_v54, %v7294_v50 }
 0x13e   : > { %v1922_v56 = vadd.f32 %v7293_v48, %v1857_v31  ;;  %v1860_v33 = vadd.f32 %v7256_v53, %v9316_v51 }
 0x140   : > { %v9342_v57 = vadd.f32 %v7296_v55, %v1860_v33  ;;  %v7257_v58 = vpop.f32.mrb[24].mxu0 }
 0x141   : > { %v7297_v59 = vpop.f32.mrb[24].mxu1  ;;  %v7258_v60 = vpop.f32.mrb[25].mxu0 }
 0x142   : > { %v7298_v61 = vpop.f32.mrb[25].mxu1  ;;  %v7259_v62 = vadd.f32 %v7258_v60, %v7257_v58  ;;  %v7260_v0 = vpop.f32.mrb[26].mxu0 }
 0x143   : > { %v7299_v63 = vadd.f32 %v7298_v61, %v7297_v59  ;;  %v7300_v1 = vpop.f32.mrb[26].mxu1  ;;  %v7261_v2 = vpop.f32.mrb[27].mxu0 }
 0x144   : > { %v7301_v4 = vpop.f32.mrb[27].mxu1  ;;  %v1865_v49 = vadd.f32 %v7259_v62, %v9324_v3  ;;  %v7262_v6 = vadd.f32 %v7261_v2, %v7260_v0 }
 0x145   : > { %v7302_v7 = vadd.f32 %v7301_v4, %v7300_v1 }
 0x146   : > { %v9345_v8 = vadd.f32 %v7299_v63, %v1865_v49  ;;  %v1868_v51 = vadd.f32 %v7262_v6, %v9326_v5 }
 0x148   : > { %v9348_v9 = vadd.f32 %v7302_v7, %v1868_v51  ;;  %v7263_v10 = vpop.f32.mrb[28].mxu0 }
 0x149   : > { %v7303_v11 = vpop.f32.mrb[28].mxu1  ;;  %v7264_v12 = vpop.f32.mrb[29].mxu0 }
 0x14a   : > { %v7265_v13 = vadd.f32 %v7264_v12, %v7263_v10  ;;  %v7304_v14 = vpop.f32.mrb[29].mxu1  ;;  %v7266_v15 = vpop.f32.mrb[30].mxu0 }
 0x14b   : > { %v7305_v16 = vadd.f32 %v7304_v14, %v7303_v11  ;;  %v7306_v17 = vpop.f32.mrb[30].mxu1  ;;  %v7267_v18 = vpop.f32.mrb[31].mxu0 }
 0x14c   : > { %v1873_v19 = vadd.f32 %v7265_v13, %v1808_v21  ;;  %v7268_v20 = vadd.f32 %v7267_v18, %v7266_v15  ;;  %v7307_v3 = vpop.f32.mrb[31].mxu1 }
 0x14d   : > { %v7308_v22 = vadd.f32 %v7307_v3, %v7306_v17 }
 0x14e   : > { %v9350_v24 = vadd.f32 %v7305_v16, %v1873_v19  ;;  %v1876_v25 = vadd.f32 %v7268_v20, %v9334_v23 }
 0x150   : > { %v9353_v5 = vadd.f32 %v7308_v22, %v1876_v25  ;;  %v7325_v26 = vpop.f32.mrb[32].mxu0 }
 0x151   : > { %v7365_v27 = vpop.f32.mrb[32].mxu1  ;;  %v7326_v28 = vpop.f32.mrb[33].mxu0 }
 0x152   : > { %v7327_v29 = vadd.f32 %v7326_v28, %v7325_v26  ;;  %v7366_v30 = vpop.f32.mrb[33].mxu1  ;;  %v7328_v32 = vpop.f32.mrb[34].mxu0 }
 0x153   : > { %v7367_v34 = vadd.f32 %v7366_v30, %v7365_v27  ;;  %v7368_v35 = vpop.f32.mrb[34].mxu1  ;;  %v7329_v36 = vpop.f32.mrb[35].mxu0 }
 0x154   : > { %v1979_v37 = vadd.f32 %v7327_v29, %v1914_v38  ;;  %v7330_v21 = vadd.f32 %v7329_v36, %v7328_v32  ;;  %v7369_v39 = vpop.f32.mrb[35].mxu1 }
 0x155   : > { %v7370_v40 = vadd.f32 %v7369_v39, %v7368_v35 }
 0x156   : > { %v2044_v42 = vadd.f32 %v7367_v34, %v1979_v37  ;;  %v1982_v43 = vadd.f32 %v7330_v21, %v9338_v41 }
 0x158   : > { %2074 = vst [vmem:[#allocation2] sm:$0xff] %v2044_v42  ;;  %v2047_v23 = vadd.f32 %v7370_v40, %v1982_v43  ;;  %v7331_v44 = vpop.f32.mrb[36].mxu0 }
 0x159   : > { %v7371_v45 = vpop.f32.mrb[36].mxu1  ;;  %v7332_v46 = vpop.f32.mrb[37].mxu0 }
 0x15a   : > { %2075 = vst [vmem:[#allocation2 + $0x8] sm:$0xff] %v2047_v23  ;;  %v7333_v47 = vadd.f32 %v7332_v46, %v7331_v44  ;;  %v7372_v48 = vpop.f32.mrb[37].mxu1  ;;  %v7334_v50 = vpop.f32.mrb[38].mxu0 }
 0x15b   : > { %v7373_v52 = vadd.f32 %v7372_v48, %v7371_v45  ;;  %v7374_v31 = vpop.f32.mrb[38].mxu1  ;;  %v7335_v53 = vpop.f32.mrb[39].mxu0 }
 0x15c   : > { %v1987_v54 = vadd.f32 %v7333_v47, %v1922_v56  ;;  %v7336_v38 = vadd.f32 %v7335_v53, %v7334_v50  ;;  %v7375_v55 = vpop.f32.mrb[39].mxu1 }
 0x15d   : > { %v7376_v33 = vadd.f32 %v7375_v55, %v7374_v31 }
 0x15e   : > { %v2052_v58 = vadd.f32 %v7373_v52, %v1987_v54  ;;  %v1990_v59 = vadd.f32 %v7336_v38, %v9342_v57 }
 0x160   : > { %2076 = vst [vmem:[#allocation2 + $0x10] sm:$0xff] %v2052_v58  ;;  %v2055_v41 = vadd.f32 %v7376_v33, %v1990_v59  ;;  %v7337_v60 = vpop.f32.mrb[40].mxu0 }
 0x161   : > { %v7377_v61 = vpop.f32.mrb[40].mxu1  ;;  %v7338_v62 = vpop.f32.mrb[41].mxu0 }
 0x162   : > { %2077 = vst [vmem:[#allocation2 + $0x18] sm:$0xff] %v2055_v41  ;;  %v7339_v63 = vadd.f32 %v7338_v62, %v7337_v60  ;;  %v7378_v0 = vpop.f32.mrb[41].mxu1  ;;  %v7340_v1 = vpop.f32.mrb[42].mxu0 }
 0x163   : > { %v7379_v2 = vadd.f32 %v7378_v0, %v7377_v61  ;;  %v7380_v4 = vpop.f32.mrb[42].mxu1  ;;  %v7341_v49 = vpop.f32.mrb[43].mxu0 }
 0x164   : > { %v1995_v56 = vadd.f32 %v7339_v63, %v9345_v8  ;;  %v7342_v6 = vadd.f32 %v7341_v49, %v7340_v1  ;;  %v7381_v7 = vpop.f32.mrb[43].mxu1 }
 0x165   : > { %v7382_v51 = vadd.f32 %v7381_v7, %v7380_v4 }
 0x166   : > { %v2060_v10 = vadd.f32 %v7379_v2, %v1995_v56  ;;  %v1998_v57 = vadd.f32 %v7342_v6, %v9348_v9 }
 0x168   : > { %2078 = vst [vmem:[#allocation2 + $0x20] sm:$0xff] %v2060_v10  ;;  %v2063_v11 = vadd.f32 %v7382_v51, %v1998_v57  ;;  %v7343_v12 = vpop.f32.mrb[44].mxu0 }
 0x169   : > { %v7383_v13 = vpop.f32.mrb[44].mxu1  ;;  %v7344_v14 = vpop.f32.mrb[45].mxu0 }
 0x16a   : > { %2079 = vst [vmem:[#allocation2 + $0x28] sm:$0xff] %v2063_v11  ;;  %v7345_v15 = vadd.f32 %v7344_v14, %v7343_v12  ;;  %v7384_v16 = vpop.f32.mrb[45].mxu1  ;;  %v7346_v17 = vpop.f32.mrb[46].mxu0 }
 0x16b   : > { %v7385_v18 = vadd.f32 %v7384_v16, %v7383_v13  ;;  %v7386_v19 = vpop.f32.mrb[46].mxu1  ;;  %v7347_v20 = vpop.f32.mrb[47].mxu0 }
 0x16c   : > { %v2003_v8 = vadd.f32 %v7345_v15, %v9350_v24  ;;  %v7348_v3 = vadd.f32 %v7347_v20, %v7346_v17  ;;  %v7387_v22 = vpop.f32.mrb[47].mxu1 }
 0x16d   : > { %v7388_v25 = vadd.f32 %v7387_v22, %v7386_v19 }
 0x16e   : > { %v2068_v26 = vadd.f32 %v7385_v18, %v2003_v8  ;;  %v2006_v9 = vadd.f32 %v7348_v3, %v9353_v5 }
 0x170   : > { %2080 = vst [vmem:[#allocation2 + $0x30] sm:$0xff] %v2068_v26  ;;  %v2071_v27 = vadd.f32 %v7388_v25, %v2006_v9 }
 0x172   : > { %2081 = vst [vmem:[#allocation2 + $0x38] sm:$0xff] %v2071_v27 }
 0x173 PF: > { %v2082_v28 = vld [vmem:[#allocation2] sm:$0xff]  ;;  %v2084_v29 = vld [vmem:[#allocation2 + $0x10] sm:$0xff]  ;;  %v2083_v30 = vld [vmem:[#allocation2 + $0x8] sm:$0xff]  ;;  %v8730_v20 = vmov 0   ;;  %v2181_v27 = vlaneseq  ;;  %vm2515_vm0 = vcmask 261120   ;;  %s8732_s18 = smov 64  }
 0x174   : > { %2092 = vadd.xlane.f32.xlu0 %v2082_v28  ;;  %2096 = vadd.xlane.f32.xlu1 %v2084_v29  ;;  %v2085_v32 = vld [vmem:[#allocation2 + $0x18] sm:$0xff]  ;;  %v2086_v24 = vld [vmem:[#allocation2 + $0x20] sm:$0xff]  ;;  %v2087_v34 = vld [vmem:[#allocation2 + $0x28] sm:$0xff]  ;;  %s8733_s21 = smov 32   ;;  %vm4016_vm1 = vcmask 523264   ;;  %vm4025_vm2 = vcmask 785408  }
 0x175   : > { %v8286_v5 = vld [vmem:[%s8848_s20 + $0x4] ss:$12 sps:$4 sm:$0xff]   ;;  %v8288_v37 = vld [vmem:[%s8848_s20] ss:$12 sps:$4 sm:$0xff]   ;;  %v8289_v21 = vld [vmem:[%s8848_s20 + $0x1c] ss:$12 sps:$4 sm:$0xff]   ;;  %2401 = vmatprep.mubr.bf16.mxu1 %v8730_v20 }
 0x176   : > { %2369 = vmatprep.subr.bf16.mxu1 %v8286_v5  ;;  %v8291_v7 = vld [vmem:[%s8848_s20 + $0x18] ss:$12 sps:$4 sm:$0xff]   ;;  %v8292_v51 = vld [vmem:[%s8848_s20 + $0x34] ss:$12 sps:$4 sm:$0xff]   ;;  %v8294_v10 = vld [vmem:[%s8848_s20 + $0x30] ss:$12 sps:$4 sm:$0xff]  }
 0x177   : > { %v2088_v35 = vld [vmem:[#allocation2 + $0x30] sm:$0xff]  ;;  %2370 = vmatpush1.bf16.msra.mxu1 %v8288_v37  ;;  %v8295_v57 = vld [vmem:[%s8848_s20 + $0x4c] ss:$12 sps:$4 sm:$0xff]   ;;  %v8301_v14 = vld [vmem:[%s8848_s20 + $0x7c] ss:$12 sps:$4 sm:$0xff]   ;;  %p6893_p5 = scmp.ne.s32.totalorder %s8834_s25, 3 }
 0x178   : > { %2094 = vadd.xlane.f32.xlu0 %v2083_v30  ;;  %2098 = vadd.xlane.f32.xlu1 %v2085_v32  ;;  %v8297_v11 = vld [vmem:[%s8848_s20 + $0x48] ss:$12 sps:$4 sm:$0xff]   ;;  %v8298_v12 = vld [vmem:[%s8848_s20 + $0x64] ss:$12 sps:$4 sm:$0xff]   ;;  %v8300_v13 = vld [vmem:[%s8848_s20 + $0x60] ss:$12 sps:$4 sm:$0xff]  }
 0x179   : > { %v2089_v36 = vld [vmem:[#allocation2 + $0x38] sm:$0xff]  ;;  %2371 = vmatprep.subr.bf16.mxu1 %v8289_v21  ;;  %v8304_v16 = vld [vmem:[%s8848_s20 + $0x94] ss:$12 sps:$4 sm:$0xff]   ;;  %s11028_s26 = sld [smem:[#allocation16_spill]] (!%p6893_p5)  ;;  %s11029_s29 = sld [smem:[#allocation18_spill]] (!%p6893_p5) }
 0x17a   : > { %v8303_v15 = vld [vmem:[%s8848_s20 + $0x78] ss:$12 sps:$4 sm:$0xff]   ;;  %v8306_v17 = vld [vmem:[%s8848_s20 + $0x90] ss:$12 sps:$4 sm:$0xff]   ;;  %v8309_v19 = vld [vmem:[%s8848_s20 + $0xa8] ss:$12 sps:$4 sm:$0xff]  }
 0x17b   : > { %2372 = vmatpush1.bf16.msra.mxu1 %v8291_v7  ;;  %v8307_v18 = vld [vmem:[%s8848_s20 + $0xac] ss:$12 sps:$4 sm:$0xff]   ;;  %v8310_v8 = vld [vmem:[%s8848_s20 + $0x8] ss:$12 sps:$4 sm:$0xff]  }
 0x17c   : > { %2100 = vadd.xlane.f32.xlu0 %v2086_v24  ;;  %2102 = vadd.xlane.f32.xlu1 %v2087_v34 }
 0x17d   : > { %2373 = vmatprep.subr.bf16.mxu1 %v8292_v51 }
 0x17f   : > { %2374 = vmatpush1.bf16.msra.mxu1 %v8294_v10  ;;  %v8311_v10 = vld [vmem:[%s8848_s20 + $0x20] ss:$12 sps:$4 sm:$0xff]  }
 0x180   : > { %2104 = vadd.xlane.f32.xlu0 %v2088_v35  ;;  %2106 = vadd.xlane.f32.xlu1 %v2089_v36 }
 0x181   : > { %2375 = vmatprep.subr.bf16.mxu1 %v8295_v57 }
 0x183   : > { %2376 = vmatpush1.bf16.msra.mxu1 %v8297_v11 }
 0x184   : > { %2377 = vmatprep.subr.bf16.mxu1 %v8298_v12 }
 0x187   : > { %2378 = vmatpush1.bf16.msra.mxu1 %v8300_v13 }
 0x188   : > { %2379 = vmatprep.subr.bf16.mxu1 %v8301_v14  ;;  %v8312_v14 = vld [vmem:[%s8848_s20 + $0x38] ss:$12 sps:$4 sm:$0xff]  }
 0x18b   : > { %2380 = vmatpush1.bf16.msra.mxu1 %v8303_v15 }
 0x18c   : > { %2381 = vmatprep.subr.bf16.mxu1 %v8304_v16 }
 0x18f   : > { %2382 = vmatpush1.bf16.msra.mxu1 %v8306_v17  ;;  %v8313_v17 = vld [vmem:[%s8848_s20 + $0x50] ss:$12 sps:$4 sm:$0xff]  }
 0x190   : > { %2383 = vmatprep.subr.bf16.mxu1 %v8307_v18 }
 0x193   : > { %2384 = vmatpush1.bf16.msra.mxu1 %v8309_v19 }
 0x194   : > { %7590 = vmatprep.subr.bf16.mxu1 %v8310_v8 }
 0x201   : > { %v2093_v39 = vpop.xlane.xlu0 %2092  ;;  %v2097_v40 = vpop.xlane.xlu1 %2096 }
 0x202   : > { %v2109_v42 = vmul.f32 0.0078125, %v2093_v39  ;;  %v2111_v43 = vmul.f32 0.0078125, %v2097_v40 }
 0x204   : > { %v9364_v23 = vsub.f32 %v2082_v28, %v2109_v42  ;;  %v9366_v44 = vsub.f32 %v2084_v29, %v2111_v43  ;;  %v2090_v42 = vld [vmem:[%s8858_s15] sm:$0xff] }
 0x205   : > { %v2095_v45 = vpop.xlane.xlu0 %2094  ;;  %v2099_v46 = vpop.xlane.xlu1 %2098 }
 0x206   : > { %v2110_v47 = vmul.f32 0.0078125, %v2095_v45  ;;  %v2125_v48 = vmul.f32 %v9364_v23, %v9364_v23  ;;  %v2112_v50 = vmul.f32 0.0078125, %v2099_v46  ;;  %v2127_v52 = vmul.f32 %v9366_v44, %v9366_v44 }
 0x208   : > { %2133 = vadd.xlane.f32.xlu0 %v2125_v48  ;;  %v9372_v31 = vsub.f32 %v2083_v30, %v2110_v47  ;;  %v9374_v53 = vsub.f32 %v2085_v32, %v2112_v50 }
 0x209   : > { %v2101_v54 = vpop.xlane.xlu0 %2100  ;;  %v2103_v38 = vpop.xlane.xlu1 %2102 }
 0x20a   : > { %v2113_v55 = vmul.f32 0.0078125, %v2101_v54  ;;  %v2126_v33 = vmul.f32 %v9372_v31, %v9372_v31  ;;  %v2114_v58 = vmul.f32 0.0078125, %v2103_v38  ;;  %v2128_v59 = vmul.f32 %v9374_v53, %v9374_v53 }
 0x20c   : > { %2137 = vadd.xlane.f32.xlu0 %v2127_v52  ;;  %2135 = vadd.xlane.f32.xlu1 %v2126_v33  ;;  %v9380_v41 = vsub.f32 %v2086_v24, %v2113_v55  ;;  %v9382_v60 = vsub.f32 %v2087_v34, %v2114_v58 }
 0x20d   : > { %v2105_v61 = vpop.xlane.xlu0 %2104  ;;  %v2107_v62 = vpop.xlane.xlu1 %2106 }
 0x20e   : > { %v2115_v63 = vmul.f32 0.0078125, %v2105_v61  ;;  %v2129_v0 = vmul.f32 %v9380_v41, %v9380_v41  ;;  %v2116_v1 = vmul.f32 0.0078125, %v2107_v62  ;;  %v2130_v2 = vmul.f32 %v9382_v60, %v9382_v60 }
 0x210   : > { %2139 = vadd.xlane.f32.xlu1 %v2128_v59  ;;  %2141 = vadd.xlane.f32.xlu0 %v2129_v0  ;;  %v9388_v4 = vsub.f32 %v2088_v35, %v2115_v63  ;;  %v9390_v49 = vsub.f32 %v2089_v36, %v2116_v1  ;;  %v9411_v35 = vshrl.u32 %v2181_v27, 7  ;;  %v8315_v27 = vld [vmem:[%s8848_s20 + $0x80] ss:$12 sps:$4 sm:$0xff]  }
 0x212   : > { %v2131_v56 = vmul.f32 %v9388_v4, %v9388_v4  ;;  %v2132_v6 = vmul.f32 %v9390_v49, %v9390_v49  ;;  %v2183_v39 = vsub.s32 0, %v9411_v35  ;;  %v2195_v54 = vsub.s32 1, %v9411_v35 }
 0x214   : > { %2143 = vadd.xlane.f32.xlu1 %v2130_v2  ;;  %2145 = vadd.xlane.f32.xlu0 %v2131_v56  ;;  %v2184_v52 = vrot.slane %v2090_v42, %v2183_v39  ;;  %v2196_v61 = vrot.slane %v2090_v42, %v2195_v54 }
 0x218   : > { %2147 = vadd.xlane.f32.xlu1 %v2132_v6 }
 0x295   : > { %v2134_v3 = vpop.xlane.xlu0 %2133 }
 0x296   : > { %v2149_v22 = vmul.f32 0.0078125, %v2134_v3 }
 0x298   : > { %v2157_v25 = vadd.f32 1e-05, %v2149_v22 }
 0x299   : > { %v2136_v26 = vpop.xlane.xlu1 %2135  ;;  %v2138_v9 = vpop.xlane.xlu0 %2137 }
 0x29a   : > { %8362 = vrsqrt.f32 %v2157_v25  ;;  %v2150_v28 = vmul.f32 0.0078125, %v2136_v26  ;;  %v2151_v29 = vmul.f32 0.0078125, %v2138_v9 }
 0x29c   : > { %v2158_v30 = vadd.f32 1e-05, %v2150_v28  ;;  %v2159_v32 = vadd.f32 1e-05, %v2151_v29 }
 0x29d   : > { %v2140_v24 = vpop.xlane.xlu1 %2139  ;;  %v2142_v34 = vpop.xlane.xlu0 %2141 }
 0x29e   : > { %8364 = vrsqrt.f32 %v2158_v30  ;;  %v2152_v36 = vmul.f32 0.0078125, %v2140_v24  ;;  %v2153_v37 = vmul.f32 0.0078125, %v2142_v34  ;;  %v8317_v34 = vld [vmem:[%s8848_s20 + $0xb0] ss:$12 sps:$4 sm:$0xff]  }
 0x29f   : > { %8366 = vrsqrt.f32 %v2159_v32  ;;  %v8316_v32 = vld [vmem:[%s8848_s20 + $0x98] ss:$12 sps:$4 sm:$0xff]  }
 0x2a0   : > { %v2160_v5 = vadd.f32 1e-05, %v2152_v36  ;;  %v2161_v45 = vadd.f32 1e-05, %v2153_v37 }
 0x2a1   : > { %v2144_v21 = vpop.xlane.xlu1 %2143  ;;  %v2146_v47 = vpop.xlane.xlu0 %2145 }
 0x2a2   : > { %8368 = vrsqrt.f32 %v2160_v5  ;;  %v2154_v40 = vmul.f32 0.0078125, %v2144_v21  ;;  %v2155_v33 = vmul.f32 0.0078125, %v2146_v47 }
 0x2a4   : > { %v8363_v43 = vpop.eup %8362  ;;  %v2162_v46 = vadd.f32 1e-05, %v2154_v40  ;;  %v2163_v2 = vadd.f32 1e-05, %v2155_v33 }
 0x2a5   : > { %v2148_v48 = vpop.xlane.xlu1 %2147  ;;  %v2173_v50 = vmul.f32 %v8363_v43, %v9364_v23 }
 0x2a6   : > { %8370 = vrsqrt.f32 %v2162_v46  ;;  %v2156_v38 = vmul.f32 0.0078125, %v2148_v48 }
 0x2a7   : > { %8372 = vrsqrt.f32 %v2161_v45  ;;  %v2185_v59 = vmul.f32 %v2184_v52, %v2173_v50 }
 0x2a8   : > { %v8365_v55 = vpop.eup %8364  ;;  %v2164_v63 = vadd.f32 1e-05, %v2156_v38 }
 0x2a9   : > { %v2174_v58 = vmul.f32 %v8365_v55, %v9372_v31  ;;  %v8367_v62 = vpop.eup %8366  ;;  %v2197_v56 = vadd.f32 %v2196_v61, %v2185_v59 }
 0x2aa   : > { %v2175_v6 = vmul.f32 %v8367_v62, %v9366_v44  ;;  %8374 = vrsqrt.f32 %v2164_v63 }
 0x2ab   : > { %v2186_v0 = vmul.f32 %v2184_v52, %v2174_v58  ;;  %8376 = vrsqrt.f32 %v2163_v2 }
 0x2ac   : > { %v8369_v1 = vpop.eup %8368  ;;  %v2187_v31 = vmul.f32 %v2184_v52, %v2175_v6 }
 0x2ad   : > { %v2198_v23 = vadd.f32 %v2196_v61, %v2186_v0  ;;  %v2176_v7 = vmul.f32 %v8369_v1, %v9374_v53 }
 0x2ae   : > { %v2199_v53 = vadd.f32 %v2196_v61, %v2187_v31 }
 0x2af   : > { %v2205_v51 = vpack.c.bf16 %v2198_v23, %v2197_v56  ;;  %v2188_v57 = vmul.f32 %v2184_v52, %v2176_v7 }
 0x2b0   : > { %v8371_v11 = vpop.eup %8370 }
 0x2b1   : > { %2402 = vmatmul.mubr.bf16.vlgmr.msra.gmra.mrb[0].mxu1 %v2205_v51  ;;  %v8373_v12 = vpop.eup %8372  ;;  %v2200_v13 = vadd.f32 %v2196_v61, %v2188_v57  ;;  %v2178_v44 = vmul.f32 %v8371_v11, %v9382_v60  ;;  %v8314_v60 = vld [vmem:[%s8848_s20 + $0x68] ss:$12 sps:$4 sm:$0xff]   ;;  %s8731_s20 = smov 96  }
 0x2b2   : > { %7591 = vmatpush3.bf16.msra.mxu1 %v8310_v8  ;;  %2411 = vmatprep.mubr.bf16.mxu1 %v8730_v20  ;;  %v2177_v15 = vmul.f32 %v8373_v12, %v9380_v41 }
 0x2b3   : > { %7592 = vmatprep.subr.bf16.mxu1 %v8311_v10  ;;  %v2206_v16 = vpack.c.bf16 %v2200_v13, %v2199_v53  ;;  %v2190_v18 = vmul.f32 %v2184_v52, %v2178_v44 }
 0x2b4   : > { %v8375_v19 = vpop.eup %8374  ;;  %v2189_v8 = vmul.f32 %v2184_v52, %v2177_v15 }
 0x2b5   : > { %v8377_v3 = vpop.eup %8376  ;;  %v2202_v22 = vadd.f32 %v2196_v61, %v2190_v18  ;;  %v2180_v25 = vmul.f32 %v8375_v19, %v9390_v49 }
 0x2b6   : > { %7593 = vmatpush3.bf16.msra.mxu1 %v8311_v10  ;;  %v2201_v41 = vadd.f32 %v2196_v61, %v2189_v8  ;;  %v2179_v26 = vmul.f32 %v8377_v3, %v9388_v4 }
 0x2b7   : > { %7594 = vmatprep.subr.bf16.mxu1 %v8312_v14  ;;  %v2192_v28 = vmul.f32 %v2184_v52, %v2180_v25 }
 0x2b8   : > { %v2207_v9 = vpack.c.bf16 %v2202_v22, %v2201_v41  ;;  %v2191_v29 = vmul.f32 %v2184_v52, %v2179_v26 }
 0x2b9   : > { %2412 = vmatmul.mubr.bf16.gmra.mrb[4].mxu1 %v2206_v16  ;;  %v2204_v30 = vadd.f32 %v2196_v61, %v2192_v28 }
 0x2ba   : > { %7595 = vmatpush3.bf16.msra.mxu1 %v8312_v14  ;;  %2421 = vmatprep.mubr.bf16.mxu1 %v8730_v20  ;;  %v2203_v24 = vadd.f32 %v2196_v61, %v2191_v29 }
 0x2bb   : > { %7596 = vmatprep.subr.bf16.mxu1 %v8313_v17 }
 0x2bc   : > { %v2208_v49 = vpack.c.bf16 %v2204_v30, %v2203_v24 }
 0x2be   : > { %7597 = vmatpush3.bf16.msra.mxu1 %v8313_v17 }
 0x2bf   : > { %7598 = vmatprep.subr.bf16.mxu1 %v8314_v60 }
 0x2c1   : > { %2422 = vmatmul.mubr.bf16.gmra.mrb[8].mxu1 %v2207_v9 }
 0x2c2   : > { %7599 = vmatpush3.bf16.msra.mxu1 %v8314_v60  ;;  %2431 = vmatprep.mubr.bf16.mxu1 %v8730_v20 }
 0x2c3   : > { %7600 = vmatprep.subr.bf16.mxu1 %v8315_v27 }
 0x2c6   : > { %7601 = vmatpush3.bf16.msra.mxu1 %v8315_v27 }
 0x2c7   : > { %7602 = vmatprep.subr.bf16.mxu1 %v8316_v32 }
 0x2c9   : > { %2432 = vmatmul.mubr.bf16.gmra.mrb[12].mxu1 %v2208_v49 }
 0x2ca   : > { %7603 = vmatpush3.bf16.msra.mxu1 %v8316_v32  ;;  %7606 = vmatprep.mubr.bf16.mxu1 %v2205_v51 }
 0x2cb   : > { %7604 = vmatprep.subr.bf16.mxu1 %v8317_v34 }
 0x2ce   : > { %7605 = vmatpush3.bf16.msra.mxu1 %v8317_v34 }
 0x2d1   : > { %7607 = vmatmul.mubr.bf16.vlgmr.msra.gmra.mrb[16].mxu1 %v2206_v16 }
 0x2d2   : > { %7610 = vmatprep.mubr.bf16.mxu1 %v2207_v9 }
 0x2d9   : > { %7611 = vmatmul.mubr.bf16.gmra.mrb[20].mxu1 %v2208_v49 }
 0x384   : > { %v2403_v4 = vpop.f32.mrb[0].mxu1 }
 0x385   : > { %v2405_v36 = vpop.f32.mrb[1].mxu1 }
 0x386   : > { %v2407_v5 = vpop.f32.mrb[2].mxu1 }
 0x387   : > { %v9434_v37 = vpack.c.bf16 %v2407_v5, %v2403_v4  ;;  %v2409_v21 = vpop.f32.mrb[3].mxu1 }
 0x388   : > { %v9436_v39 = vpack.c.bf16 %v2409_v21, %v2405_v36 }
 0x389   : > { %7618 = vmatprep.mubr.msk.bf16.mxu1 %vm2515_vm0, %v9434_v37 }
 0x38a   : > { %2852 = vrot.lane.b32.xlu0 %v9436_v39, %s8731_s20  ;;  %8018 = vmatprep.subr.msk.bf16.mxu1 %vm2515_vm0, %v9436_v39  ;;  %v2523_v40 = vsel %vm2515_vm0, %v9436_v39, 0 }
 0x38b   : > { %7615 = vmatpush3.bf16.xpose.msra.mxu1 %v2523_v40 }
 0x38c   : > { %v2413_v42 = vpop.f32.mrb[4].mxu1 }
 0x38d   : > { %v2415_v43 = vpop.f32.mrb[5].mxu1 }
 0x38e   : > { %v2417_v45 = vpop.f32.mrb[6].mxu1 }
 0x38f   : > { %v9446_v46 = vpack.c.bf16 %v2417_v45, %v2413_v42  ;;  %v2419_v47 = vpop.f32.mrb[7].mxu1 }
 0x390   : > { %v9448_v48 = vpack.c.bf16 %v2419_v47, %v2415_v43 }
 0x392   : > { %2854 = vrot.lane.b32.xlu1 %v9448_v48, %s8731_s20  ;;  %8019 = vmatprep.subr.msk.bf16.mxu1 %vm2515_vm0, %v9448_v48  ;;  %v2526_v50 = vsel %vm2515_vm0, %v9448_v48, 0 }
 0x393   : > { %7617 = vmatpush3.bf16.xpose.msra.mxu1 %v2526_v50 }
 0x394   : > { %v2423_v52 = vpop.f32.mrb[8].mxu1 }
 0x395   : > { %v2425_v54 = vpop.f32.mrb[9].mxu1 }
 0x396   : > { %2846 = vrot.lane.b32.xlu1 %v9434_v37, %s8731_s20  ;;  %v2427_v38 = vpop.f32.mrb[10].mxu1 }
 0x397   : > { %v9458_v55 = vpack.c.bf16 %v2427_v38, %v2423_v52  ;;  %v2429_v33 = vpop.f32.mrb[11].mxu1 }
 0x398   : > { %v9460_v58 = vpack.c.bf16 %v2429_v33, %v2425_v54 }
 0x399   : > { %7626 = vmatprep.mubr.msk.bf16.mxu0 %vm2515_vm0, %v9458_v55 }
 0x39a   : > { %2848 = vrot.lane.b32.xlu1 %v9446_v46, %s8731_s20  ;;  %2925 = vrot.lane.b32.xlu0 %v9460_v58, %s8731_s20  ;;  %v2584_v59 = vsel %vm2515_vm0, %v9460_v58, 0 }
 0x39b   : > { %7619 = vmatmul.mubr.msk.bf16.vlgmr.msra.gmra.mrb[24].mxu1 %vm2515_vm0, %v9446_v46  ;;  %8020 = vmatprep.subr.msk.bf16.mxu0 %vm2515_vm0, %v9460_v58 }
 0x39c   : > { %7623 = vmatpush3.bf16.xpose.msra.mxu0 %v2584_v59  ;;  %v2433_v61 = vpop.f32.mrb[12].mxu1 }
 0x39d   : > { %v2435_v62 = vpop.f32.mrb[13].mxu1 }
 0x39e   : > { %2919 = vrot.lane.b32.xlu0 %v9458_v55, %s8731_s20  ;;  %v2437_v63 = vpop.f32.mrb[14].mxu1 }
 0x39f   : > { %v9476_v0 = vpack.c.bf16 %v2437_v63, %v2433_v61  ;;  %v2439_v1 = vpop.f32.mrb[15].mxu1 }
 0x3a0   : > { %v9478_v2 = vpack.c.bf16 %v2439_v1, %v2435_v62 }
 0x3a2   : > { %3212 = vrot.lane.b32.xlu0 %v9436_v39, %s8732_s18  ;;  %2927 = vrot.lane.b32.xlu1 %v9478_v2, %s8731_s20  ;;  %v2587_v56 = vsel %vm2515_vm0, %v9478_v2, 0 }
 0x3a3   : > { %8021 = vmatprep.subr.msk.bf16.mxu0 %vm2515_vm0, %v9478_v2 }
 0x3a4   : > { %7625 = vmatpush3.bf16.xpose.msra.mxu0 %v2587_v56  ;;  %v7608_v23 = vpop.f32.mrb[16].mxu1 }
 0x3a5   : > { %v2476_v6 = vpop.f32.mrb[17].mxu1 }
 0x3a6   : > { %2921 = vrot.lane.b32.xlu1 %v9476_v0, %s8731_s20  ;;  %v7609_v7 = vpop.f32.mrb[18].mxu1 }
 0x3a7   : > { %v9490_v51 = vpack.c.bf16 %v7609_v7, %v7608_v23  ;;  %v2479_v10 = vpop.f32.mrb[19].mxu1 }
 0x3a8   : > { %v9492_v57 = vpack.c.bf16 %v2479_v10, %v2476_v6 }
 0x3aa   : > { %3086 = vrot.lane.b32.xlu1 %v9490_v51, %s8731_s20  ;;  %3084 = vrot.lane.b32.xlu0 %v9492_v57, %s8731_s20 }
 0x3ab   : > { %7627 = vmatmul.mubr.msk.bf16.vlgmr.msra.gmra.mrb[0].mxu0 %vm2515_vm0, %v9476_v0  ;;  %7630 = vmatprep.subr.bf16.mxu1 %v9492_v57 }
 0x3ac   : > { %7631 = vmatpush3.bf16.msra.mxu1 %v9492_v57  ;;  %v7612_v11 = vpop.f32.mrb[20].mxu1 }
 0x3ad   : > { %7632 = vmatprep.subr.bf16.mxu1 %v9490_v51  ;;  %v2492_v31 = vpop.f32.mrb[21].mxu1 }
 0x3ae   : > { %v7613_v12 = vpop.f32.mrb[22].mxu1 }
 0x3af   : > { %v9503_v13 = vpack.c.bf16 %v7613_v12, %v7612_v11  ;;  %v2495_v14 = vpop.f32.mrb[23].mxu1 }
 0x3b0   : > { %v9505_v44 = vpack.c.bf16 %v2495_v14, %v2492_v31  ;;  %7633 = vmatpush3.bf16.msra.mxu1 %v9490_v51 }
 0x3b2   : > { %7638 = vmatprep.subr.bf16.mxu1 %v9505_v44 }
 0x3fc   : > { %v2853_v53 = vpop.permute.xlu0 %2852 }
 0x3fd   : > { %8022 = vmatprep.subr.msk.bf16.mxu0 %vm2515_vm0, %v2853_v53  ;;  %v2863_v15 = vsel %vm2515_vm0, %v2853_v53, 0 }
 0x3fe   : > { %7647 = vmatpush3.bf16.xpose.msra.mxu0 %v2863_v15 }
 0x404   : > { %v2855_v16 = vpop.permute.xlu1 %2854 }
 0x405   : > { %8023 = vmatprep.subr.msk.bf16.mxu0 %vm2515_vm0, %v2855_v16  ;;  %v2866_v17 = vsel %vm2515_vm0, %v2855_v16, 0 }
 0x406   : > { %7649 = vmatpush3.bf16.xpose.msra.mxu0 %v2866_v17 }
 0x408   : > { %v2847_v18 = vpop.permute.xlu1 %2846 }
 0x409   : > { %7650 = vmatprep.mubr.msk.bf16.mxu0 %vm2515_vm0, %v2847_v18 }
 0x40c   : > { %v2849_v19 = vpop.permute.xlu1 %2848  ;;  %v2926_v8 = vpop.permute.xlu0 %2925 }
 0x40d   : > { %7651 = vmatmul.mubr.msk.bf16.vlgmr.msra.gmra.mrb[4].mxu0 %vm2515_vm0, %v2849_v19  ;;  %8024 = vmatprep.subr.msk.bf16.mxu0 %vm2515_vm0, %v2926_v8  ;;  %v2936_v3 = vsel %vm2515_vm0, %v2926_v8, 0 }
 0x40e   : > { %7655 = vmatpush3.bf16.xpose.msra.mxu0 %v2936_v3 }
 0x410   : > { %v2920_v22 = vpop.permute.xlu0 %2919 }
 0x411   : > { %7658 = vmatprep.mubr.msk.bf16.mxu0 %vm2515_vm0, %v2920_v22 }
 0x414   : > { %v2928_v60 = vpop.permute.xlu1 %2927  ;;  %v9520_v41 = vpop.permute.xlu0 %3212 }
 0x415   : > { %8025 = vmatprep.subr.msk.bf16.mxu0 %vm2515_vm0, %v2928_v60  ;;  %v2939_v25 = vsel %vm2515_vm0, %v2928_v60, 0 }
 0x416   : > { %7657 = vmatpush3.bf16.xpose.msra.mxu0 %v2939_v25 }
 0x418   : > { %v2922_v26 = vpop.permute.xlu1 %2921 }
 0x41c   : > { %v3085_v9 = vpop.permute.xlu0 %3084  ;;  %v3087_v27 = vpop.permute.xlu1 %3086 }
 0x41d   : > { %7659 = vmatmul.mubr.msk.bf16.vlgmr.msra.gmra.mrb[8].mxu0 %vm2515_vm0, %v2922_v26  ;;  %7662 = vmatprep.subr.bf16.mxu0 %v3085_v9 }
 0x41e   : > { %7663 = vmatpush3.bf16.msra.mxu0 %v3085_v9 }
 0x41f   : > { %7664 = vmatprep.subr.bf16.mxu0 %v3087_v27 }
 0x422   : > { %7665 = vmatpush3.bf16.msra.mxu0 %v3087_v27 }
 0x423   : > { %8026 = vmatprep.subr.msk.bf16.mxu0 %vm2515_vm0, %v9520_v41 }
 0x46e   : > { %v7620_v28 = vpop.f32.mrb[24].mxu1 }
 0x46f   : > { %v2562_v29 = vpop.f32.mrb[25].mxu1  ;;  %v2644_v30 = vsel %vm2515_vm0, %v7620_v28, -inf }
 0x470   : > { %2645 = vmax.xlane.f32.xlu0 %v2644_v30  ;;  %v9526_v32 = vpop.f32.mrb[26].mxu1  ;;  %v2638_v34 = vsel %vm2515_vm0, %v2562_v29, -inf }
 0x471   : > { %v9528_v24 = vpop.f32.mrb[27].mxu1  ;;  %v2647_v4 = vsel %vm2515_vm0, %v9526_v32, -inf }
 0x472   : > { %v2641_v49 = vsel %vm2515_vm0, %v9528_v24, -inf }
 0x473   : > { %2642 = vmax.xlane.f32.xlu1 %v2641_v49 }
 0x474   : > { %2639 = vmax.xlane.f32.xlu0 %v2638_v34 }
 0x478   : > { %2648 = vmax.xlane.f32.xlu0 %v2647_v4 }
 0x47e   : > { %v7628_v36 = vpop.f32.mrb[0].mxu0 }
 0x47f   : > { %v2623_v5 = vpop.f32.mrb[1].mxu0  ;;  %v2656_v21 = vsel %vm2515_vm0, %v7628_v36, -inf }
 0x480   : > { %v9536_v40 = vpop.f32.mrb[2].mxu0  ;;  %2657 = vmax.xlane.f32.xlu0 %v2656_v21  ;;  %v2650_v45 = vsel %vm2515_vm0, %v2623_v5, -inf }
 0x481   : > { %v9538_v42 = vpop.f32.mrb[3].mxu0  ;;  %v2659_v43 = vsel %vm2515_vm0, %v9536_v40, -inf }
 0x482   : > { %2660 = vmax.xlane.f32.xlu1 %v2659_v43  ;;  %v2653_v47 = vsel %vm2515_vm0, %v9538_v42, -inf }
 0x484   : > { %2651 = vmax.xlane.f32.xlu0 %v2650_v45 }
 0x486   : > { %2654 = vmax.xlane.f32.xlu1 %v2653_v47 }
 0x4e0   : > { %v9545_v50 = vpop.f32.mrb[4].mxu0 }
 0x4e1   : > { %v9547_v52 = vpop.f32.mrb[5].mxu0  ;;  %v2996_v54 = vsel %vm2515_vm0, %v9545_v50, -inf }
 0x4e2   : > { %2997 = vmax.xlane.f32.xlu0 %v2996_v54  ;;  %v9551_v38 = vpop.f32.mrb[6].mxu0  ;;  %v2990_v61 = vsel %vm2515_vm0, %v9547_v52, -inf }
 0x4e3   : > { %v9553_v33 = vpop.f32.mrb[7].mxu0  ;;  %v2999_v59 = vsel %vm2515_vm0, %v9551_v38, -inf }
 0x4e4   : > { %3000 = vmax.xlane.f32.xlu1 %v2999_v59  ;;  %v2993_v62 = vsel %vm2515_vm0, %v9553_v33, -inf }
 0x4e6   : > { %2991 = vmax.xlane.f32.xlu0 %v2990_v61 }
 0x4e8   : > { %2994 = vmax.xlane.f32.xlu1 %v2993_v62 }
 0x4f0   : > { %v9561_v63 = vpop.f32.mrb[8].mxu0 }
 0x4f1   : > { %v9563_v1 = vpop.f32.mrb[9].mxu0  ;;  %v3008_v56 = vsel %vm2515_vm0, %v9561_v63, -inf }
 0x4f2   : > { %3009 = vmax.xlane.f32.xlu0 %v3008_v56  ;;  %v9567_v23 = vpop.f32.mrb[10].mxu0  ;;  %v3002_v7 = vsel %vm2515_vm0, %v9563_v1, -inf }
 0x4f3   : > { %v9569_v6 = vpop.f32.mrb[11].mxu0  ;;  %v3011_v16 = vsel %vm2515_vm0, %v9567_v23, -inf }
 0x4f4   : > { %v3005_v8 = vsel %vm2515_vm0, %v9569_v6, -inf }
 0x4f6   : > { %3003 = vmax.xlane.f32.xlu0 %v3002_v7 }
 0x4f9   : > { %3147 = vrot.lane.b32.xlu1 %v9505_v44, %s8731_s20 }
 0x4fd   : > { %v2646_v10 = vpop.xlane.xlu0 %2645 }
 0x4fe   : > { %v2664_v12 = vsub.f32 %v7620_v28, %v2646_v10 }
 0x500   : > { %v2674_v53 = vmul.f32 1.442695, %v2664_v12  ;;  %v2643_v34 = vpop.xlane.xlu1 %2642 }
 0x501   : > { %v2640_v11 = vpop.xlane.xlu0 %2639 }
 0x502   : > { %v2662_v15 = vsub.f32 %v2562_v29, %v2640_v11  ;;  %8378 = vpow2.f32 %v2674_v53 }
 0x504   : > { %v2670_v17 = vmul.f32 1.442695, %v2662_v15 }
 0x505   : > { %v2649_v31 = vpop.xlane.xlu0 %2648 }
 0x506   : > { %8380 = vpow2.f32 %v2670_v17  ;;  %v2665_v4 = vsub.f32 %v9526_v32, %v2649_v31 }
 0x508   : > { %v2676_v21 = vmul.f32 1.442695, %v2665_v4 }
 0x50c   : > { %3149 = vrot.lane.b32.xlu0 %v9503_v13, %s8731_s20  ;;  %v9581_v25 = vpop.eup %8378 }
 0x50d   : > { %v2658_v14 = vpop.xlane.xlu0 %2657  ;;  %v2692_v26 = vsel %vm2515_vm0, %v9581_v25, 0.0 }
 0x50e   : > { %v2668_v18 = vsub.f32 %v7628_v36, %v2658_v14 }
 0x50f   : > { %v2661_v36 = vpop.xlane.xlu1 %2660 }
 0x510   : > { %v2682_v3 = vmul.f32 1.442695, %v2668_v18  ;;  %v9585_v9 = vpop.eup %8380  ;;  %v2669_v45 = vsub.f32 %v9536_v40, %v2661_v36 }
 0x511   : > { %v2652_v19 = vpop.xlane.xlu0 %2651  ;;  %v2686_v27 = vsel %vm2515_vm0, %v9585_v9, 0.0 }
 0x512   : > { %v2666_v22 = vsub.f32 %v2623_v5, %v2652_v19  ;;  %8382 = vpow2.f32 %v2682_v3  ;;  %v2663_v5 = vsub.f32 %v9528_v24, %v2643_v34  ;;  %v2684_v54 = vmul.f32 1.442695, %v2669_v45 }
 0x513   : > { %v2655_v47 = vpop.xlane.xlu1 %2654 }
 0x514   : > { %v2678_v60 = vmul.f32 1.442695, %v2666_v22  ;;  %v2672_v43 = vmul.f32 1.442695, %v2663_v5  ;;  %v2667_v59 = vsub.f32 %v9538_v42, %v2655_v47 }
 0x516   : > { %8384 = vpow2.f32 %v2678_v60  ;;  %v2680_v61 = vmul.f32 1.442695, %v2667_v59 }
 0x517   : > { %8386 = vpow2.f32 %v2676_v21 }
 0x518   : > { %8388 = vpow2.f32 %v2672_v43 }
 0x519   : > { %8390 = vpow2.f32 %v2684_v54 }
 0x51a   : > { %8392 = vpow2.f32 %v2680_v61 }
 0x51c   : > { %v9589_v28 = vpop.eup %8382 }
 0x51d   : > { %3012 = vmax.xlane.f32.xlu1 %v3011_v16  ;;  %v2704_v29 = vsel %vm2515_vm0, %v9589_v28, 0.0 }
 0x520   : > { %v9595_v30 = vpop.eup %8384 }
 0x521   : > { %3006 = vmax.xlane.f32.xlu1 %v3005_v8  ;;  %v2698_v49 = vsel %vm2515_vm0, %v9595_v30, 0.0  ;;  %v9603_v62 = vpop.eup %8386 }
 0x522   : > { %v2695_v32 = vsel %vm2515_vm0, %v9603_v62, 0.0  ;;  %v9607_v56 = vpop.eup %8388 }
 0x523   : > { %v2689_v24 = vsel %vm2515_vm0, %v9607_v56, 0.0  ;;  %v9611_v40 = vpop.eup %8390 }
 0x524   : > { %v2707_v42 = vsel %vm2515_vm0, %v9611_v40, 0.0  ;;  %v9615_v7 = vpop.eup %8392 }
 0x525   : > { %v2701_v10 = vsel %vm2515_vm0, %v9615_v7, 0.0 }
 0x52b   : > { %2693 = vadd.xlane.f32.xlu0 %v2692_v26 }
 0x52f   : > { %2687 = vadd.xlane.f32.xlu0 %v2686_v27 }
 0x532   : > { %3214 = vrot.lane.b32.xlu1 %v9448_v48, %s8732_s18 }
 0x533   : > { %2705 = vadd.xlane.f32.xlu0 %v2704_v29 }
 0x537   : > { %2699 = vadd.xlane.f32.xlu0 %v2698_v49 }
 0x556   : > { %2696 = vadd.xlane.f32.xlu1 %v2695_v32 }
 0x55a   : > { %2690 = vadd.xlane.f32.xlu1 %v2689_v24 }
 0x55e   : > { %2708 = vadd.xlane.f32.xlu1 %v2707_v42 }
 0x562   : > { %2702 = vadd.xlane.f32.xlu1 %v2701_v10 }
 0x56f   : > { %v2998_v11 = vpop.xlane.xlu0 %2997 }
 0x570   : > { %v3016_v31 = vsub.f32 %v9545_v50, %v2998_v11 }
 0x571   : > { %v3001_v12 = vpop.xlane.xlu1 %3000 }
 0x572   : > { %v3026_v14 = vmul.f32 1.442695, %v3016_v31  ;;  %v3017_v53 = vsub.f32 %v9551_v38, %v3001_v12 }
 0x573   : > { %v2992_v15 = vpop.xlane.xlu0 %2991 }
 0x574   : > { %8394 = vpow2.f32 %v3026_v14  ;;  %v3028_v16 = vmul.f32 1.442695, %v3017_v53  ;;  %v3014_v17 = vsub.f32 %v9547_v52, %v2992_v15 }
 0x575   : > { %v2995_v18 = vpop.xlane.xlu1 %2994 }
 0x576   : > { %8396 = vpow2.f32 %v3028_v16  ;;  %v3022_v19 = vmul.f32 1.442695, %v3014_v17  ;;  %v3015_v8 = vsub.f32 %v9553_v33, %v2995_v18 }
 0x578   : > { %8398 = vpow2.f32 %v3022_v19  ;;  %v3024_v3 = vmul.f32 1.442695, %v3015_v8 }
 0x579   : > { %v9647_v21 = vpop.permute.xlu1 %3147 }
 0x57a   : > { %8400 = vpow2.f32 %v3024_v3 }
 0x57e   : > { %v9623_v22 = vpop.eup %8394 }
 0x57f   : > { %v3010_v50 = vpop.xlane.xlu0 %3009  ;;  %v3044_v60 = vsel %vm2515_vm0, %v9623_v22, 0.0 }
 0x580   : > { %v9627_v38 = vpop.eup %8396  ;;  %v3020_v26 = vsub.f32 %v9561_v63, %v3010_v50  ;;  %3045 = vadd.xlane.f32.xlu0 %v3044_v60 }
 0x581   : > { %v3047_v52 = vsel %vm2515_vm0, %v9627_v38, 0.0 }
 0x582   : > { %v9632_v27 = vpop.eup %8398  ;;  %v3034_v33 = vmul.f32 1.442695, %v3020_v26  ;;  %3048 = vadd.xlane.f32.xlu1 %v3047_v52 }
 0x583   : > { %v3038_v29 = vsel %vm2515_vm0, %v9632_v27, 0.0  ;;  %v3004_v36 = vpop.xlane.xlu0 %3003 }
 0x584   : > { %v9636_v49 = vpop.eup %8400  ;;  %8402 = vpow2.f32 %v3034_v33  ;;  %3039 = vadd.xlane.f32.xlu0 %v3038_v29  ;;  %v3018_v5 = vsub.f32 %v9563_v1, %v3004_v36 }
 0x585   : > { %v3041_v34 = vsel %vm2515_vm0, %v9636_v49, 0.0 }
 0x586   : > { %3042 = vadd.xlane.f32.xlu1 %v3041_v34  ;;  %v3030_v43 = vmul.f32 1.442695, %v3018_v5 }
 0x588   : > { %8404 = vpow2.f32 %v3030_v43 }
 0x58e   : > { %v9640_v63 = vpop.eup %8402 }
 0x58f   : > { %v3056_v4 = vsel %vm2515_vm0, %v9640_v63, 0.0 }
 0x590   : > { %3057 = vadd.xlane.f32.xlu1 %v3056_v4 }
 0x592   : > { %v9651_v24 = vpop.eup %8404 }
 0x593   : > { %v3050_v42 = vsel %vm2515_vm0, %v9651_v24, 0.0 }
 0x59a   : > { %3208 = vrot.lane.b32.xlu0 %v9434_v37, %s8732_s18 }
 0x5aa   : > { %v3013_v45 = vpop.xlane.xlu1 %3012 }
 0x5ab   : > { %v3021_v47 = vsub.f32 %v9567_v23, %v3013_v45 }
 0x5ad   : > { %v3036_v54 = vmul.f32 1.442695, %v3021_v47 }
 0x5ae   : > { %v3007_v59 = vpop.xlane.xlu1 %3006 }
 0x5af   : > { %8406 = vpow2.f32 %v3036_v54  ;;  %v3019_v61 = vsub.f32 %v9569_v6, %v3007_v59  ;;  %v3150_v6 = vpop.permute.xlu0 %3149 }
 0x5b1   : > { %v3032_v32 = vmul.f32 1.442695, %v3019_v61 }
 0x5b2   : > { %v9673_v12 = vpop.permute.xlu1 %3214 }
 0x5b3   : > { %8408 = vpow2.f32 %v3032_v32 }
 0x5b8   : > { %v2694_v31 = vpop.xlane.xlu0 %2693 }
 0x5b9   : > { %v9655_v1 = vpop.eup %8406  ;;  %3051 = vadd.xlane.f32.xlu0 %v3050_v42 }
 0x5ba   : > { %v3059_v10 = vsel %vm2515_vm0, %v9655_v1, 0.0 }
 0x5bb   : > { %3060 = vadd.xlane.f32.xlu1 %v3059_v10 }
 0x5bc   : > { %v2688_v14 = vpop.xlane.xlu0 %2687 }
 0x5bd   : > { %v9659_v23 = vpop.eup %8408 }
 0x5be   : > { %v3053_v11 = vsel %vm2515_vm0, %v9659_v23, 0.0 }
 0x5bf   : > { %3054 = vadd.xlane.f32.xlu1 %v3053_v11 }
 0x5c0   : > { %v2706_v15 = vpop.xlane.xlu0 %2705 }
 0x5c4   : > { %v2700_v17 = vpop.xlane.xlu0 %2699 }
 0x5cf   : > { %3281 = vrot.lane.b32.xlu0 %v9460_v58, %s8732_s18 }
 0x5d0   : > { %3210 = vrot.lane.b32.xlu1 %v9446_v46, %s8732_s18 }
 0x5d3   : > { %3277 = vrot.lane.b32.xlu0 %v9458_v55, %s8732_s18 }
 0x5d4   : > { %3283 = vrot.lane.b32.xlu1 %v9478_v2, %s8732_s18 }
 0x5d8   : > { %3279 = vrot.lane.b32.xlu1 %v9476_v0, %s8732_s18 }
 0x5e3   : > { %v2697_v53 = vpop.xlane.xlu1 %2696 }
 0x5e4   : > { %8410 = vrcp.f32 %v2697_v53 }
 0x5e5   : > { %8412 = vrcp.f32 %v2688_v14 }
 0x5e6   : > { %8414 = vrcp.f32 %v2694_v31 }
 0x5e7   : > { %v2691_v16 = vpop.xlane.xlu1 %2690 }
 0x5e8   : > { %8416 = vrcp.f32 %v2691_v16 }
 0x5eb   : > { %v2709_v18 = vpop.xlane.xlu1 %2708 }
 0x5ec   : > { %8418 = vrcp.f32 %v2709_v18 }
 0x5ed   : > { %8420 = vrcp.f32 %v2700_v17 }
 0x5ee   : > { %v8411_v19 = vpop.eup %8410  ;;  %8422 = vrcp.f32 %v2706_v15  ;;  %v3223_v15 = vsel %vm2515_vm0, %v9520_v41, 0 }
 0x5ef   : > { %v2703_v8 = vpop.xlane.xlu1 %2702  ;;  %v8413_v3 = vpop.eup %8412  ;;  %v2717_v26 = vmul.f32 %v8411_v19, %v9603_v62 }
 0x5f0   : > { %8424 = vrcp.f32 %v2703_v8  ;;  %v8415_v50 = vpop.eup %8414  ;;  %v2711_v52 = vmul.f32 %v8413_v3, %v9585_v9 }
 0x5f1   : > { %v2715_v29 = vmul.f32 %v8415_v50, %v9581_v25 }
 0x5f2   : > { %v8417_v60 = vpop.eup %8416 }
 0x5f3   : > { %v2713_v33 = vmul.f32 %v8417_v60, %v9607_v56  ;;  %v2727_v4 = vpack.c.bf16 %v2717_v26, %v2715_v29 }
 0x5f5   : > { %v2726_v34 = vpack.c.bf16 %v2713_v33, %v2711_v52 }
 0x5f6   : > { %v8419_v36 = vpop.eup %8418 }
 0x5f7   : > { %7634 = vmatprep.mubr.msk.bf16.mxu1 %vm2515_vm0, %v2726_v34  ;;  %v8421_v5 = vpop.eup %8420  ;;  %v2725_v62 = vmul.f32 %v8419_v36, %v9611_v40 }
 0x5f8   : > { %7635 = vmatmul.mubr.msk.bf16.vlgmr.msra.gmra.mrb[28].mxu1 %vm2515_vm0, %v2727_v4  ;;  %v8423_v43 = vpop.eup %8422  ;;  %v2719_v9 = vmul.f32 %v8421_v5, %v9595_v30 }
 0x5f9   : > { %7639 = vmatpush3.bf16.msra.mxu1 %v9505_v44  ;;  %v2723_v56 = vmul.f32 %v8423_v43, %v9589_v28 }
 0x5fa   : > { %v8425_v45 = vpop.eup %8424  ;;  %7640 = vmatprep.subr.bf16.mxu1 %v9503_v13 }
 0x5fb   : > { %v2721_v25 = vmul.f32 %v8425_v45, %v9615_v7  ;;  %v2729_v54 = vpack.c.bf16 %v2725_v62, %v2723_v56 }
 0x5fd   : > { %7641 = vmatpush3.bf16.msra.mxu1 %v9503_v13  ;;  %v2728_v47 = vpack.c.bf16 %v2721_v25, %v2719_v9 }
 0x5fe   : > { %7670 = vmatprep.subr.bf16.mxu1 %v9647_v21 }
 0x5ff   : > { %7642 = vmatprep.mubr.msk.bf16.mxu1 %vm2515_vm0, %v2728_v47 }
 0x600   : > { %7643 = vmatmul.mubr.msk.bf16.vlgmr.msra.gmra.mrb[32].mxu1 %vm2515_vm0, %v2729_v54 }
 0x601   : > { %7671 = vmatpush3.bf16.msra.mxu1 %v9647_v21 }
 0x602   : > { %7672 = vmatprep.subr.bf16.mxu1 %v3150_v6 }
 0x605   : > { %7673 = vmatpush3.bf16.msra.mxu1 %v3150_v6 }
 0x60d   : > { %v3046_v40 = vpop.xlane.xlu0 %3045 }
 0x60f   : > { %v3049_v30 = vpop.xlane.xlu1 %3048 }
 0x610   : > { %8426 = vrcp.f32 %v3049_v30 }
 0x611   : > { %v3040_v7 = vpop.xlane.xlu0 %3039 }
 0x612   : > { %8428 = vrcp.f32 %v3040_v7 }
 0x613   : > { %8430 = vrcp.f32 %v3046_v40  ;;  %v3043_v28 = vpop.xlane.xlu1 %3042 }
 0x614   : > { %8432 = vrcp.f32 %v3043_v28 }
 0x615   : > { %v3209_v53 = vpop.permute.xlu0 %3208 }
 0x61a   : > { %v8427_v59 = vpop.eup %8426 }
 0x61b   : > { %v3069_v10 = vmul.f32 %v8427_v59, %v9627_v38  ;;  %v3226_v38 = vsel %vm2515_vm0, %v9673_v12, 0 }
 0x61c   : > { %v8429_v61 = vpop.eup %8428 }
 0x61d   : > { %v8431_v32 = vpop.eup %8430  ;;  %v3063_v11 = vmul.f32 %v8429_v61, %v9632_v27 }
 0x61e   : > { %v8433_v42 = vpop.eup %8432  ;;  %v3067_v6 = vmul.f32 %v8431_v32, %v9623_v22  ;;  %v3058_v22 = vpop.xlane.xlu1 %3057 }
 0x61f   : > { %v3065_v21 = vmul.f32 %v8433_v42, %v9636_v49 }
 0x620   : > { %v3079_v14 = vpack.c.bf16 %v3069_v10, %v3067_v6 }
 0x621   : > { %v3078_v31 = vpack.c.bf16 %v3065_v21, %v3063_v11 }
 0x623   : > { %7666 = vmatprep.mubr.msk.bf16.mxu0 %vm2515_vm0, %v3078_v31 }
 0x624   : > { %7667 = vmatmul.mubr.msk.bf16.vlgmr.msra.gmra.mrb[12].mxu0 %vm2515_vm0, %v3079_v14 }
 0x625   : > { %7679 = vmatpush3.bf16.xpose.msra.mxu0 %v3223_v15  ;;  %7682 = vmatprep.mubr.msk.bf16.mxu0 %vm2515_vm0, %v3209_v53 }
 0x626   : > { %8027 = vmatprep.subr.msk.bf16.mxu0 %vm2515_vm0, %v9673_v12 }
 0x62d   : > { %7681 = vmatpush3.bf16.xpose.msra.mxu0 %v3226_v38 }
 0x646   : > { %v3052_v27 = vpop.xlane.xlu0 %3051 }
 0x648   : > { %v3061_v49 = vpop.xlane.xlu1 %3060 }
 0x649   : > { %8434 = vrcp.f32 %v3061_v49 }
 0x64a   : > { %v3282_v16 = vpop.permute.xlu0 %3281  ;;  %8436 = vrcp.f32 %v3052_v27 }
 0x64b   : > { %8028 = vmatprep.subr.msk.bf16.mxu1 %vm2515_vm0, %v3282_v16  ;;  %8438 = vrcp.f32 %v3058_v22  ;;  %v3292_v29 = vsel %vm2515_vm0, %v3282_v16, 0 }
 0x64c   : > { %v3055_v41 = vpop.xlane.xlu1 %3054 }
 0x64d   : > { %8440 = vrcp.f32 %v3055_v41 }
 0x64e   : > { %v3278_v34 = vpop.permute.xlu0 %3277 }
 0x650   : > { %v3211_v17 = vpop.permute.xlu1 %3210 }
 0x651   : > { %7683 = vmatmul.mubr.msk.bf16.vlgmr.msra.gmra.mrb[16].mxu0 %vm2515_vm0, %v3211_v17 }
 0x653   : > { %v8435_v18 = vpop.eup %8434 }
 0x654   : > { %v8437_v19 = vpop.eup %8436  ;;  %v3077_v12 = vmul.f32 %v8435_v18, %v9655_v1  ;;  %v3284_v4 = vpop.permute.xlu1 %3283 }
 0x655   : > { %v8439_v8 = vpop.eup %8438  ;;  %v3071_v50 = vmul.f32 %v8437_v19, %v9651_v24  ;;  %v3295_v24 = vsel %vm2515_vm0, %v3284_v4, 0 }
 0x656   : > { %v3075_v26 = vmul.f32 %v8439_v8, %v9640_v63 }
 0x657   : > { %v8441_v3 = vpop.eup %8440 }
 0x658   : > { %v3073_v60 = vmul.f32 %v8441_v3, %v9659_v23  ;;  %v3081_v33 = vpack.c.bf16 %v3077_v12, %v3075_v26  ;;  %v3280_v1 = vpop.permute.xlu1 %3279 }
 0x65a   : > { %v3080_v52 = vpack.c.bf16 %v3073_v60, %v3071_v50 }
 0x65c   : > { %7674 = vmatprep.mubr.msk.bf16.mxu1 %vm2515_vm0, %v3080_v52 }
 0x65d   : > { %7675 = vmatmul.mubr.msk.bf16.vlgmr.msra.gmra.mrb[36].mxu1 %vm2515_vm0, %v3081_v33 }
 0x65e   : > { %7687 = vmatpush3.bf16.xpose.msra.mxu1 %v3292_v29  ;;  %7690 = vmatprep.mubr.msk.bf16.mxu1 %vm2515_vm0, %v3278_v34 }
 0x65f   : > { %8029 = vmatprep.subr.msk.bf16.mxu1 %vm2515_vm0, %v3284_v4 }
 0x666   : > { %7689 = vmatpush3.bf16.xpose.msra.mxu1 %v3295_v24 }
 0x66d   : > { %7691 = vmatmul.mubr.msk.bf16.vlgmr.msra.gmra.mrb[40].mxu1 %vm2515_vm0, %v3280_v1 }
 0x6cb   : > { %v9718_v63 = vpop.f32.mrb[28].mxu1 }
 0x6cc   : > { %v9720_v23 = vpop.f32.mrb[29].mxu1 }
 0x6cd   : > { %v9722_v36 = vpop.f32.mrb[30].mxu1 }
 0x6ce   : > { %v9724_v5 = vpop.f32.mrb[31].mxu1 }
 0x6d3   : > { %v9726_v43 = vpop.f32.mrb[32].mxu1 }
 0x6d4   : > { %v9728_v45 = vpop.f32.mrb[33].mxu1 }
 0x6d5   : > { %v9730_v62 = vpop.f32.mrb[34].mxu1 }
 0x6d6   : > { %v9732_v9 = vpop.f32.mrb[35].mxu1 }
 0x6f7   : > { %v9734_v25 = vpop.f32.mrb[12].mxu0 }
 0x6f8   : > { %v9736_v56 = vpop.f32.mrb[13].mxu0 }
 0x6f9   : > { %v9738_v47 = vpop.f32.mrb[14].mxu0 }
 0x6fa   : > { %v8231_v54 = vpack.i.bf16 %v9738_v47, %v9734_v25  ;;  %v9742_v40 = vpop.f32.mrb[15].mxu0 }
 0x6fb   : > { %v8226_v30 = vpack.i.bf16 %v9742_v40, %v9736_v56 }
 0x724   : > { %v7684_v7 = vpop.f32.mrb[16].mxu0 }
 0x725   : > { %v3262_v28 = vpop.f32.mrb[17].mxu0  ;;  %v3352_v10 = vsel %vm2515_vm0, %v7684_v7, -inf }
 0x726   : > { %v7685_v59 = vpop.f32.mrb[18].mxu0  ;;  %v3346_v61 = vsel %vm2515_vm0, %v3262_v28, -inf }
 0x727   : > { %3347 = vmax.xlane.f32.xlu0 %v3346_v61  ;;  %v3265_v32 = vpop.f32.mrb[19].mxu0  ;;  %v3355_v11 = vsel %vm2515_vm0, %v7685_v59, -inf }
 0x728   : > { %v3349_v42 = vsel %vm2515_vm0, %v3265_v32, -inf }
 0x729   : > { %3350 = vmax.xlane.f32.xlu1 %v3349_v42 }
 0x72b   : > { %3353 = vmax.xlane.f32.xlu0 %v3352_v10 }
 0x72f   : > { %3356 = vmax.xlane.f32.xlu0 %v3355_v11 }
 0x730   : > { %v9750_v21 = vpop.f32.mrb[36].mxu1 }
 0x731   : > { %v9752_v6 = vpop.f32.mrb[37].mxu1 }
 0x732   : > { %v9754_v31 = vpop.f32.mrb[38].mxu1 }
 0x733   : > { %v8261_v14 = vpack.i.bf16 %v9754_v31, %v9750_v21  ;;  %v9758_v53 = vpop.f32.mrb[39].mxu1 }
 0x734   : > { %v8256_v15 = vpack.i.bf16 %v9758_v53, %v9752_v6 }
 0x740   : > { %v7692_v38 = vpop.f32.mrb[40].mxu1 }
 0x741   : > { %v9762_v22 = vpop.f32.mrb[41].mxu1  ;;  %v3364_v27 = vsel %vm2515_vm0, %v7692_v38, -inf }
 0x742   : > { %3365 = vmax.xlane.f32.xlu0 %v3364_v27  ;;  %v7693_v49 = vpop.f32.mrb[42].mxu1  ;;  %v3358_v17 = vsel %vm2515_vm0, %v9762_v22, -inf }
 0x743   : > { %v3334_v16 = vpop.f32.mrb[43].mxu1  ;;  %v3367_v18 = vsel %vm2515_vm0, %v7693_v49, -inf }
 0x744   : > { %v3361_v41 = vsel %vm2515_vm0, %v3334_v16, -inf }
 0x745   : > { %3362 = vmax.xlane.f32.xlu1 %v3361_v41 }
 0x746   : > { %3359 = vmax.xlane.f32.xlu0 %v3358_v17 }
 0x749   : > { %3368 = vmax.xlane.f32.xlu1 %v3367_v18 }
 0x75a   : > { %3440 = vrot.lane.b32.xlu1 %v9490_v51, %s8732_s18 }
 0x75c   : > { %3438 = vrot.lane.b32.xlu0 %v9492_v57, %s8732_s18 }
 0x75e   : > { %3499 = vrot.lane.b32.xlu1 %v9505_v44, %s8732_s18 }
 0x760   : > { %3564 = vrot.lane.b32.xlu0 %v9436_v39, %s8733_s21 }
 0x762   : > { %3566 = vrot.lane.b32.xlu1 %v9448_v48, %s8733_s21 }
 0x764   : > { %3501 = vrot.lane.b32.xlu0 %v9503_v13, %s8732_s18 }
 0x7b4   : > { %v3348_v19 = vpop.xlane.xlu0 %3347 }
 0x7b5   : > { %v3370_v8 = vsub.f32 %v3262_v28, %v3348_v19 }
 0x7b6   : > { %v3351_v3 = vpop.xlane.xlu1 %3350 }
 0x7b7   : > { %v3378_v60 = vmul.f32 1.442695, %v3370_v8  ;;  %v3371_v26 = vsub.f32 %v3265_v32, %v3351_v3 }
 0x7b8   : > { %v3354_v12 = vpop.xlane.xlu0 %3353 }
 0x7b9   : > { %v3372_v50 = vsub.f32 %v7684_v7, %v3354_v12  ;;  %v3380_v34 = vmul.f32 1.442695, %v3371_v26 }
 0x7bb   : > { %v3382_v52 = vmul.f32 1.442695, %v3372_v50 }
 0x7bc   : > { %v3357_v33 = vpop.xlane.xlu0 %3356 }
 0x7bd   : > { %8442 = vpow2.f32 %v3382_v52  ;;  %v3373_v29 = vsub.f32 %v7685_v59, %v3357_v33 }
 0x7be   : > { %8444 = vpow2.f32 %v3378_v60 }
 0x7bf   : > { %v3384_v39 = vmul.f32 1.442695, %v3373_v29 }
 0x7c1   : > { %8446 = vpow2.f32 %v3384_v39 }
 0x7c2   : > { %8448 = vpow2.f32 %v3380_v34 }
 0x7c7   : > { %v9781_v48 = vpop.eup %8442 }
 0x7c8   : > { %v3400_v4 = vsel %vm2515_vm0, %v9781_v48, 0.0  ;;  %v9785_v24 = vpop.eup %8444 }
 0x7c9   : > { %3401 = vadd.xlane.f32.xlu0 %v3400_v4  ;;  %v3394_v7 = vsel %vm2515_vm0, %v9785_v24, 0.0 }
 0x7cb   : > { %v9787_v1 = vpop.eup %8446 }
 0x7cc   : > { %v3403_v28 = vsel %vm2515_vm0, %v9787_v1, 0.0  ;;  %v9793_v59 = vpop.eup %8448 }
 0x7cd   : > { %3395 = vadd.xlane.f32.xlu0 %v3394_v7  ;;  %3404 = vadd.xlane.f32.xlu1 %v3403_v28  ;;  %v3397_v42 = vsel %vm2515_vm0, %v9793_v59, 0.0 }
 0x7cf   : > { %v3366_v61 = vpop.xlane.xlu0 %3365 }
 0x7d0   : > { %v3376_v32 = vsub.f32 %v7692_v38, %v3366_v61 }
 0x7d1   : > { %3398 = vadd.xlane.f32.xlu1 %v3397_v42 }
 0x7d2   : > { %v3390_v10 = vmul.f32 1.442695, %v3376_v32  ;;  %v3363_v11 = vpop.xlane.xlu1 %3362 }
 0x7d3   : > { %v3360_v27 = vpop.xlane.xlu0 %3359  ;;  %v3375_v41 = vsub.f32 %v3334_v16, %v3363_v11 }
 0x7d4   : > { %8450 = vpow2.f32 %v3390_v10  ;;  %v3374_v34 = vsub.f32 %v9762_v22, %v3360_v27 }
 0x7d5   : > { %v3388_v8 = vmul.f32 1.442695, %v3375_v41 }
 0x7d6   : > { %v3369_v17 = vpop.xlane.xlu1 %3368  ;;  %v3386_v39 = vmul.f32 1.442695, %v3374_v34 }
 0x7d7   : > { %v3377_v18 = vsub.f32 %v7693_v49, %v3369_v17  ;;  %v3439_v19 = vpop.permute.xlu0 %3438 }
 0x7d8   : > { %7694 = vmatprep.subr.bf16.mxu0 %v3439_v19 }
 0x7d9   : > { %v3392_v3 = vmul.f32 1.442695, %v3377_v18  ;;  %7695 = vmatpush3.bf16.msra.mxu0 %v3439_v19 }
 0x7da   : > { %v3441_v12 = vpop.permute.xlu1 %3440 }
 0x7db   : > { %8452 = vpow2.f32 %v3392_v3  ;;  %7696 = vmatprep.subr.bf16.mxu0 %v3441_v12  ;;  %v3565_v38 = vpop.permute.xlu0 %3564 }
 0x7dc   : > { %8454 = vpow2.f32 %v3388_v8  ;;  %v3575_v17 = vsel %vm2515_vm0, %v3565_v38, 0 }
 0x7dd   : > { %7697 = vmatpush3.bf16.msra.mxu0 %v3441_v12  ;;  %8456 = vpow2.f32 %v3386_v39 }
 0x7de   : > { %v9797_v50 = vpop.eup %8450  ;;  %v3500_v60 = vpop.permute.xlu1 %3499  ;;  %8030 = vmatprep.subr.msk.bf16.mxu0 %vm2515_vm0, %v3565_v38 }
 0x7df   : > { %7702 = vmatprep.subr.bf16.mxu1 %v3500_v60  ;;  %v3502_v16 = vpop.permute.xlu0 %3501  ;;  %v3412_v49 = vsel %vm2515_vm0, %v9797_v50, 0.0 }
 0x7e0   : > { %7703 = vmatpush3.bf16.msra.mxu1 %v3500_v60  ;;  %3413 = vadd.xlane.f32.xlu1 %v3412_v49 }
 0x7e1   : > { %7704 = vmatprep.subr.bf16.mxu1 %v3502_v16 }
 0x7e2   : > { %v3567_v22 = vpop.permute.xlu1 %3566 }
 0x7e3   : > { %3560 = vrot.lane.b32.xlu0 %v9434_v37, %s8733_s21 }
 0x7e4   : > { %7705 = vmatpush3.bf16.msra.mxu1 %v3502_v16 }
 0x7e5   : > { %v8453_v26 = vpop.eup %8452 }
 0x7e6   : > { %v3415_v52 = vsel %vm2515_vm0, %v8453_v26, 0.0  ;;  %v8455_v33 = vpop.eup %8454 }
 0x7e7   : > { %3416 = vadd.xlane.f32.xlu1 %v3415_v52  ;;  %v3409_v29 = vsel %vm2515_vm0, %v8455_v33, 0.0  ;;  %v8457_v4 = vpop.eup %8456 }
 0x7e8   : > { %v3406_v37 = vsel %vm2515_vm0, %v8457_v4, 0.0 }
 0x7eb   : > { %3410 = vadd.xlane.f32.xlu1 %v3409_v29 }
 0x7fc   : > { %3562 = vrot.lane.b32.xlu1 %v9446_v46, %s8733_s21 }
 0x800   : > { %3635 = vrot.lane.b32.xlu1 %v9478_v2, %s8733_s21 }
 0x802   : > { %3407 = vadd.xlane.f32.xlu0 %v3406_v37 }
 0x804   : > { %3631 = vrot.lane.b32.xlu1 %v9476_v0, %s8733_s21 }
 0x818   : > { %3633 = vrot.lane.b32.xlu0 %v9460_v58, %s8733_s21 }
 0x81c   : > { %3629 = vrot.lane.b32.xlu0 %v9458_v55, %s8733_s21 }
 0x856   : > { %v3402_v7 = vpop.xlane.xlu0 %3401 }
 0x85a   : > { %v3405_v28 = vpop.xlane.xlu1 %3404  ;;  %v3396_v46 = vpop.xlane.xlu0 %3395 }
 0x85b   : > { %8458 = vrcp.f32 %v3405_v28 }
 0x85c   : > { %8460 = vrcp.f32 %v3396_v46 }
 0x85d   : > { %8462 = vrcp.f32 %v3402_v7 }
 0x85e   : > { %v3399_v2 = vpop.xlane.xlu1 %3398  ;;  %v3561_v18 = vpop.permute.xlu0 %3560 }
 0x85f   : > { %8464 = vrcp.f32 %v3399_v2 }
 0x865   : > { %v8459_v61 = vpop.eup %8458 }
 0x866   : > { %v8461_v32 = vpop.eup %8460  ;;  %v3425_v0 = vmul.f32 %v8459_v61, %v9787_v1  ;;  %v3578_v1 = vsel %vm2515_vm0, %v3567_v22, 0 }
 0x867   : > { %v8463_v42 = vpop.eup %8462  ;;  %v3419_v58 = vmul.f32 %v8461_v32, %v9785_v24 }
 0x868   : > { %v3423_v55 = vmul.f32 %v8463_v42, %v9781_v48 }
 0x869   : > { %v8465_v10 = vpop.eup %8464 }
 0x86a   : > { %v3421_v11 = vmul.f32 %v8465_v10, %v9793_v59  ;;  %v3435_v41 = vpack.c.bf16 %v3425_v0, %v3423_v55 }
 0x86c   : > { %v3434_v27 = vpack.c.bf16 %v3421_v11, %v3419_v58 }
 0x86d   : > { %v3414_v19 = vpop.xlane.xlu1 %3413 }
 0x86e   : > { %7698 = vmatprep.mubr.msk.bf16.mxu0 %vm2515_vm0, %v3434_v27 }
 0x86f   : > { %7699 = vmatmul.mubr.msk.bf16.vlgmr.msra.gmra.mrb[20].mxu0 %vm2515_vm0, %v3435_v41 }
 0x870   : > { %7711 = vmatpush3.bf16.xpose.msra.mxu0 %v3575_v17  ;;  %7714 = vmatprep.mubr.msk.bf16.mxu0 %vm2515_vm0, %v3561_v18 }
 0x871   : > { %8031 = vmatprep.subr.msk.bf16.mxu0 %vm2515_vm0, %v3567_v22 }
 0x874   : > { %v3417_v24 = vpop.xlane.xlu1 %3416 }
 0x875   : > { %8466 = vrcp.f32 %v3417_v24 }
 0x878   : > { %v3411_v59 = vpop.xlane.xlu1 %3410  ;;  %7713 = vmatpush3.bf16.xpose.msra.mxu0 %v3578_v1 }
 0x879   : > { %8468 = vrcp.f32 %v3411_v59 }
 0x87a   : > { %8470 = vrcp.f32 %v3414_v19 }
 0x87c   : > { %v3563_v48 = vpop.permute.xlu1 %3562 }
 0x87f   : > { %7715 = vmatmul.mubr.msk.bf16.vlgmr.msra.gmra.mrb[24].mxu0 %vm2515_vm0, %v3563_v48  ;;  %v8467_v12 = vpop.eup %8466 }
 0x880   : > { %v3433_v49 = vmul.f32 %v8467_v12, %v8453_v26  ;;  %v3636_v28 = vpop.permute.xlu1 %3635 }
 0x881   : > { %v3647_v26 = vsel %vm2515_vm0, %v3636_v28, 0 }
 0x883   : > { %v8469_v38 = vpop.eup %8468 }
 0x884   : > { %v8471_v60 = vpop.eup %8470  ;;  %v3429_v29 = vmul.f32 %v8469_v38, %v8455_v33  ;;  %v3632_v33 = vpop.permute.xlu1 %3631 }
 0x885   : > { %v3431_v34 = vmul.f32 %v8471_v60, %v9797_v50 }
 0x887   : > { %v3437_v37 = vpack.c.bf16 %v3433_v49, %v3431_v34 }
 0x88f   : > { %v3408_v8 = vpop.xlane.xlu0 %3407 }
 0x890   : > { %8472 = vrcp.f32 %v3408_v8 }
 0x893   : > { %v3634_v3 = vpop.permute.xlu0 %3633 }
 0x894   : > { %8032 = vmatprep.subr.msk.bf16.mxu1 %vm2515_vm0, %v3634_v3  ;;  %v3644_v22 = vsel %vm2515_vm0, %v3634_v3, 0 }
 0x897   : > { %v3630_v7 = vpop.permute.xlu0 %3629 }
 0x89a   : > { %v8473_v16 = vpop.eup %8472 }
 0x89b   : > { %v3427_v52 = vmul.f32 %v8473_v16, %v8457_v4 }
 0x89d   : > { %v3436_v39 = vpack.c.bf16 %v3429_v29, %v3427_v52 }
 0x89f   : > { %7706 = vmatprep.mubr.msk.bf16.mxu1 %vm2515_vm0, %v3436_v39 }
 0x8a0   : > { %7707 = vmatmul.mubr.msk.bf16.vlgmr.msra.gmra.mrb[44].mxu1 %vm2515_vm0, %v3437_v37 }
 0x8a1   : > { %7719 = vmatpush3.bf16.xpose.msra.mxu1 %v3644_v22  ;;  %7722 = vmatprep.mubr.msk.bf16.mxu1 %vm2515_vm0, %v3630_v7 }
 0x8a2   : > { %8033 = vmatprep.subr.msk.bf16.mxu1 %vm2515_vm0, %v3636_v28 }
 0x8a9   : > { %7721 = vmatpush3.bf16.xpose.msra.mxu1 %v3647_v26 }
 0x8b0   : > { %7723 = vmatmul.mubr.msk.bf16.vlgmr.msra.gmra.mrb[48].mxu1 %vm2515_vm0, %v3632_v33 }
 0x942   : > { %v9838_v50 = vpop.f32.mrb[20].mxu0 }
 0x943   : > { %v9840_v4 = vpop.f32.mrb[21].mxu0 }
 0x944   : > { %v9842_v46 = vpop.f32.mrb[22].mxu0 }
 0x945   : > { %v8241_v2 = vpack.i.bf16 %v9842_v46, %v9838_v50  ;;  %v9846_v61 = vpop.f32.mrb[23].mxu0 }
 0x946   : > { %v8236_v32 = vpack.i.bf16 %v9846_v61, %v9840_v4 }
 0x952   : > { %v7716_v42 = vpop.f32.mrb[24].mxu0 }
 0x953   : > { %v3614_v10 = vpop.f32.mrb[25].mxu0  ;;  %v3704_v27 = vsel %vm2515_vm0, %v7716_v42, -inf }
 0x954   : > { %v7717_v0 = vpop.f32.mrb[26].mxu0  ;;  %v3698_v58 = vsel %vm2515_vm0, %v3614_v10, -inf }
 0x955   : > { %3699 = vmax.xlane.f32.xlu0 %v3698_v58  ;;  %v3617_v11 = vpop.f32.mrb[27].mxu0  ;;  %v3707_v41 = vsel %vm2515_vm0, %v7717_v0, -inf }
 0x956   : > { %v3701_v55 = vsel %vm2515_vm0, %v3617_v11, -inf }
 0x957   : > { %3702 = vmax.xlane.f32.xlu1 %v3701_v55 }
 0x959   : > { %3705 = vmax.xlane.f32.xlu0 %v3704_v27 }
 0x95d   : > { %3708 = vmax.xlane.f32.xlu0 %v3707_v41 }
 0x973   : > { %v9854_v17 = vpop.f32.mrb[44].mxu1 }
 0x974   : > { %v9856_v18 = vpop.f32.mrb[45].mxu1 }
 0x975   : > { %v9858_v19 = vpop.f32.mrb[46].mxu1 }
 0x976   : > { %v8271_v24 = vpack.i.bf16 %v9858_v19, %v9854_v17  ;;  %v9862_v1 = vpop.f32.mrb[47].mxu1 }
 0x977   : > { %v8266_v59 = vpack.i.bf16 %v9862_v1, %v9856_v18 }
 0x983   : > { %v7724_v48 = vpop.f32.mrb[48].mxu1 }
 0x984   : > { %v3683_v8 = vpop.f32.mrb[49].mxu1  ;;  %v3716_v16 = vsel %vm2515_vm0, %v7724_v48, -inf }
 0x985   : > { %v7725_v3 = vpop.f32.mrb[50].mxu1  ;;  %v3710_v12 = vsel %vm2515_vm0, %v3683_v8, -inf }
 0x986   : > { %3711 = vmax.xlane.f32.xlu0 %v3710_v12  ;;  %v3686_v38 = vpop.f32.mrb[51].mxu1  ;;  %v3719_v49 = vsel %vm2515_vm0, %v7725_v3, -inf }
 0x987   : > { %v3713_v60 = vsel %vm2515_vm0, %v3686_v38, -inf }
 0x988   : > { %3714 = vmax.xlane.f32.xlu1 %v3713_v60 }
 0x98a   : > { %3717 = vmax.xlane.f32.xlu0 %v3716_v16 }
 0x98c   : > { %3720 = vmax.xlane.f32.xlu1 %v3719_v49 }
 0x9e2   : > { %v3700_v52 = vpop.xlane.xlu0 %3699 }
 0x9e3   : > { %v3722_v29 = vsub.f32 %v3614_v10, %v3700_v52 }
 0x9e4   : > { %v3703_v34 = vpop.xlane.xlu1 %3702 }
 0x9e5   : > { %v3730_v22 = vmul.f32 1.442695, %v3722_v29  ;;  %v3723_v7 = vsub.f32 %v3617_v11, %v3703_v34 }
 0x9e6   : > { %v3706_v39 = vpop.xlane.xlu0 %3705 }
 0x9e7   : > { %v3724_v37 = vsub.f32 %v7716_v42, %v3706_v39  ;;  %v3732_v58 = vmul.f32 1.442695, %v3723_v7 }
 0x9e9   : > { %v3734_v28 = vmul.f32 1.442695, %v3724_v37 }
 0x9ea   : > { %v3709_v26 = vpop.xlane.xlu0 %3708 }
 0x9eb   : > { %8474 = vpow2.f32 %v3734_v28  ;;  %v3725_v33 = vsub.f32 %v7717_v0, %v3709_v26 }
 0x9ec   : > { %8476 = vpow2.f32 %v3730_v22 }
 0x9ed   : > { %v3736_v55 = vmul.f32 1.442695, %v3725_v33 }
 0x9ef   : > { %8478 = vpow2.f32 %v3736_v55 }
 0x9f0   : > { %8480 = vpow2.f32 %v3732_v58 }
 0x9f5   : > { %v9870_v27 = vpop.eup %8474 }
 0x9f6   : > { %v3752_v41 = vsel %vm2515_vm0, %v9870_v27, 0.0  ;;  %v8477_v10 = vpop.eup %8476 }
 0x9f7   : > { %3753 = vadd.xlane.f32.xlu0 %v3752_v41  ;;  %v3746_v42 = vsel %vm2515_vm0, %v8477_v10, 0.0 }
 0x9f9   : > { %v9874_v12 = vpop.eup %8478 }
 0x9fa   : > { %v3755_v11 = vsel %vm2515_vm0, %v9874_v12, 0.0  ;;  %v8481_v0 = vpop.eup %8480 }
 0x9fb   : > { %3747 = vadd.xlane.f32.xlu0 %v3746_v42  ;;  %3756 = vadd.xlane.f32.xlu1 %v3755_v11  ;;  %v3749_v60 = vsel %vm2515_vm0, %v8481_v0, 0.0 }
 0x9ff   : > { %3750 = vadd.xlane.f32.xlu1 %v3749_v60 }
 0xa10   : > { %3792 = vrot.lane.b32.xlu1 %v9490_v51, %s8733_s21 }
 0xa13   : > { %v3712_v16 = vpop.xlane.xlu0 %3711 }
 0xa14   : > { %3851 = vrot.lane.b32.xlu1 %v9505_v44, %s8733_s21  ;;  %v3726_v49 = vsub.f32 %v3683_v8, %v3712_v16 }
 0xa15   : > { %v3715_v34 = vpop.xlane.xlu1 %3714 }
 0xa16   : > { %v3738_v39 = vmul.f32 1.442695, %v3726_v49  ;;  %v3727_v26 = vsub.f32 %v3686_v38, %v3715_v34 }
 0xa17   : > { %v3718_v52 = vpop.xlane.xlu0 %3717 }
 0xa18   : > { %v3728_v29 = vsub.f32 %v7724_v48, %v3718_v52  ;;  %v3740_v44 = vmul.f32 1.442695, %v3727_v26 }
 0xa19   : > { %v3721_v22 = vpop.xlane.xlu1 %3720 }
 0xa1a   : > { %v3742_v37 = vmul.f32 1.442695, %v3728_v29  ;;  %v3729_v7 = vsub.f32 %v7725_v3, %v3721_v22 }
 0xa1c   : > { %8482 = vpow2.f32 %v3742_v37  ;;  %v3744_v33 = vmul.f32 1.442695, %v3729_v7 }
 0xa1d   : > { %8484 = vpow2.f32 %v3738_v39 }
 0xa1e   : > { %8486 = vpow2.f32 %v3744_v33  ;;  %v8318_v33 = vld [vmem:[%s8843_s30] sm:$0xff]  }
 0xa1f   : > { %8488 = vpow2.f32 %v3740_v44  ;;  %v8322_v44 = vld [vmem:[%s8843_s30 + $0x20] sm:$0xff]  }
 0xa26   : > { %v9884_v28 = vpop.eup %8482 }
 0xa27   : > { %v3764_v51 = vsel %vm2515_vm0, %v9884_v28, 0.0  ;;  %v9888_v58 = vpop.eup %8484 }
 0xa28   : > { %3765 = vadd.xlane.f32.xlu0 %v3764_v51  ;;  %v3758_v48 = vsel %vm2515_vm0, %v9888_v58, 0.0  ;;  %v8487_v8 = vpop.eup %8486  ;;  %v8319_v51 = vld [vmem:[%s8843_s30 + $0x8] sm:$0xff]  }
 0xa29   : > { %v3767_v3 = vsel %vm2515_vm0, %v8487_v8, 0.0  ;;  %v8489_v55 = vpop.eup %8488 }
 0xa2a   : > { %v3761_v38 = vsel %vm2515_vm0, %v8489_v55, 0.0 }
 0xa2c   : > { %3759 = vadd.xlane.f32.xlu0 %v3758_v48  ;;  %v8323_v48 = vld [vmem:[%s8843_s30 + $0x28] sm:$0xff]  }
 0xa38   : > { %3768 = vadd.xlane.f32.xlu1 %v3767_v3  ;;  %v8325_v3 = vld [vmem:[%s8843_s30 + $0x38] sm:$0xff]  }
 0xa3c   : > { %3762 = vadd.xlane.f32.xlu1 %v3761_v38 }
 0xa42   : > { %3790 = vrot.lane.b32.xlu0 %v9492_v57, %s8733_s21 }
 0xa46   : > { %8227 = vrot.lane.b32.xlu0 %v8226_v30, %s8733_s21 }
 0xa4a   : > { %8237 = vrot.lane.b32.xlu0 %v8236_v32, %s8732_s18 }
 0xa4d   : > { %3853 = vrot.lane.b32.xlu1 %v9503_v13, %s8733_s21 }
 0xa51   : > { %8232 = vrot.lane.b32.xlu1 %v8231_v54, %s8733_s21 }
 0xa55   : > { %8242 = vrot.lane.b32.xlu1 %v8241_v2, %s8732_s18 }
 0xa84   : > { %v3754_v57 = vpop.xlane.xlu0 %3753 }
 0xa88   : > { %v3757_v56 = vpop.xlane.xlu1 %3756  ;;  %v3748_v40 = vpop.xlane.xlu0 %3747 }
 0xa89   : > { %8490 = vrcp.f32 %v3748_v40 }
 0xa8c   : > { %v3751_v30 = vpop.xlane.xlu1 %3750 }
 0xa8d   : > { %8492 = vrcp.f32 %v3751_v30 }
 0xa8e   : > { %8494 = vrcp.f32 %v3757_v56 }
 0xa8f   : > { %8496 = vrcp.f32 %v3754_v57 }
 0xa90   : > { %v3793_v4 = vpop.permute.xlu1 %3792 }
 0xa93   : > { %v8491_v32 = vpop.eup %8490 }
 0xa94   : > { %v3852_v61 = vpop.permute.xlu1 %3851  ;;  %v3771_v41 = vmul.f32 %v8491_v32, %v8477_v10 }
 0xa95   : > { %7734 = vmatprep.subr.bf16.mxu1 %v3852_v61 }
 0xa96   : > { %7735 = vmatpush3.bf16.msra.mxu1 %v3852_v61 }
 0xa97   : > { %v8493_v13 = vpop.eup %8492 }
 0xa98   : > { %v3773_v25 = vmul.f32 %v8493_v13, %v8481_v0  ;;  %v8495_v46 = vpop.eup %8494 }
 0xa99   : > { %v8497_v42 = vpop.eup %8496  ;;  %v3777_v11 = vmul.f32 %v8495_v46, %v9874_v12 }
 0xa9a   : > { %v3786_v47 = vpack.c.bf16 %v3773_v25, %v3771_v41  ;;  %v3775_v60 = vmul.f32 %v8497_v42, %v9870_v27 }
 0xa9c   : > { %7730 = vmatprep.mubr.msk.bf16.mxu0 %vm2515_vm0, %v3786_v47  ;;  %v3787_v10 = vpack.c.bf16 %v3777_v11, %v3775_v60 }
 0xab5   : > { %v3766_v54 = vpop.xlane.xlu0 %3765 }
 0xab9   : > { %v3760_v50 = vpop.xlane.xlu0 %3759 }
 0xabd   : > { %v3791_v2 = vpop.permute.xlu0 %3790 }
 0xabe   : > { %7726 = vmatprep.subr.bf16.mxu0 %v3791_v2 }
 0xabf   : > { %7727 = vmatpush3.bf16.msra.mxu0 %v3791_v2 }
 0xac0   : > { %7728 = vmatprep.subr.bf16.mxu0 %v3793_v4 }
 0xac1   : > { %v8228_v53 = vpop.permute.xlu0 %8227 }
 0xac2   : > { %v8230_v17 = vunpack.i.h.bf16 %v8228_v53  ;;  %v8229_v19 = vunpack.i.l.bf16 %v8228_v53 }
 0xac3   : > { %7729 = vmatpush3.bf16.msra.mxu0 %v3793_v4 }
 0xac4   : > { %7742 = vmatprep.subr.bf16.mxu0 %v8318_v33  ;;  %v4009_v47 = vsel %vm2515_vm0, %v9724_v5, %v8230_v17 }
 0xac5   : > { %v3769_v0 = vpop.xlane.xlu1 %3768 }
 0xac6   : > { %7731 = vmatmul.mubr.msk.bf16.vlgmr.msra.gmra.mrb[28].mxu0 %vm2515_vm0, %v3787_v10  ;;  %8498 = vrcp.f32 %v3769_v0 }
 0xac7   : > { %8500 = vrcp.f32 %v3760_v50  ;;  %7743 = vmatpush3.bf16.msra.mxu0 %v8318_v33 }
 0xac8   : > { %8502 = vrcp.f32 %v3766_v54  ;;  %7744 = vmatprep.subr.bf16.mxu0 %v8319_v51  ;;  %v4008_v54 = vsel %vm2515_vm0, %v9720_v23, %v8229_v19  ;;  %v9986_v19 = vld [vmem:[%s8858_s15] sm:$0xff] }
 0xac9   : > { %v3763_v16 = vpop.xlane.xlu1 %3762 }
 0xaca   : > { %8504 = vrcp.f32 %v3763_v16 }
 0xacb   : > { %7745 = vmatpush3.bf16.msra.mxu0 %v8319_v51 }
 0xacd   : > { %v3854_v49 = vpop.permute.xlu1 %3853 }
 0xace   : > { %7736 = vmatprep.subr.bf16.mxu1 %v3854_v49 }
 0xacf   : > { %7737 = vmatpush3.bf16.msra.mxu1 %v3854_v49 }
 0xad0   : > { %v8499_v52 = vpop.eup %8498 }
 0xad1   : > { %v8501_v12 = vpop.eup %8500  ;;  %v3785_v34 = vmul.f32 %v8499_v52, %v8487_v8  ;;  %v8324_v8 = vld [vmem:[%s8843_s30 + $0x30] sm:$0xff]   ;;  %v8233_v6 = vpop.permute.xlu1 %8232 }
 0xad2   : > { %v8503_v29 = vpop.eup %8502  ;;  %v3779_v39 = vmul.f32 %v8501_v12, %v9888_v58  ;;  %v8320_v58 = vld [vmem:[%s8843_s30 + $0x10] sm:$0xff]   ;;  %v8235_v13 = vunpack.i.h.bf16 %v8233_v6  ;;  %v8234_v41 = vunpack.i.l.bf16 %v8233_v6 }
 0xad3   : > { %v3783_v22 = vmul.f32 %v8503_v29, %v9884_v28  ;;  %7746 = vmatprep.subr.bf16.mxu0 %v8320_v58  ;;  %v8321_v28 = vld [vmem:[%s8843_s30 + $0x18] sm:$0xff]  }
 0xad4   : > { %v8505_v27 = vpop.eup %8504  ;;  %7747 = vmatpush3.bf16.msra.mxu0 %v8320_v58  ;;  %v4011_v46 = vsel %vm2515_vm0, %v9722_v36, %v8235_v13  ;;  %v4010_v2 = vsel %vm2515_vm0, %v9718_v63, %v8234_v41  ;;  %v8587_v41 = vld [vmem:[#allocation2] sm:$0xff] }
 0xad5   : > { %v3781_v37 = vmul.f32 %v8505_v27, %v8489_v55  ;;  %v3789_v26 = vpack.c.bf16 %v3785_v34, %v3783_v22  ;;  %7748 = vmatprep.subr.bf16.mxu0 %v8321_v28 }
 0xad7   : > { %v3788_v7 = vpack.c.bf16 %v3781_v37, %v3779_v39 }
 0xad8   : > { %7749 = vmatpush3.bf16.msra.mxu0 %v8321_v28 }
 0xad9   : > { %7738 = vmatprep.mubr.msk.bf16.mxu1 %vm2515_vm0, %v3788_v7  ;;  %7750 = vmatprep.subr.bf16.mxu0 %v8322_v44 }
 0xada   : > { %7739 = vmatmul.mubr.msk.bf16.vlgmr.msra.gmra.mrb[52].mxu1 %vm2515_vm0, %v3789_v26 }
 0xadb   : > { %4439 = vmatprep.mubr.bf16.mxu1 %v8730_v20 }
 0xadc   : > { %7751 = vmatpush3.bf16.msra.mxu0 %v8322_v44 }
 0xadd   : > { %7752 = vmatprep.subr.bf16.mxu0 %v8323_v48 }
 0xae0   : > { %7753 = vmatpush3.bf16.msra.mxu0 %v8323_v48 }
 0xae1   : > { %7754 = vmatprep.subr.bf16.mxu0 %v8324_v8 }
 0xae4   : > { %7755 = vmatpush3.bf16.msra.mxu0 %v8324_v8 }
 0xae5   : > { %7756 = vmatprep.subr.bf16.mxu0 %v8325_v3 }
 0xae8   : > { %7757 = vmatpush3.bf16.msra.mxu0 %v8325_v3 }
 0xae9   : > { %5028 = vmatprep.subr.bf16.mxu0 %v8730_v20 }
 0xb99   : > { %v7732_v55 = vpop.f32.mrb[28].mxu0 }
 0xb9a   : > { %v3836_v38 = vpop.f32.mrb[29].mxu0 }
 0xb9b   : > { %v7733_v57 = vpop.f32.mrb[30].mxu0 }
 0xb9c   : > { %v8251_v56 = vpack.i.bf16 %v7733_v57, %v7732_v55  ;;  %v3839_v40 = vpop.f32.mrb[31].mxu0 }
 0xb9d   : > { %v8246_v30 = vpack.i.bf16 %v3839_v40, %v3836_v38 }
 0xb9e   : > { %8252 = vrot.lane.b32.xlu1 %v8251_v56, %s8731_s20 }
 0xb9f   : > { %8247 = vrot.lane.b32.xlu0 %v8246_v30, %s8731_s20 }
 0xba2   : > { %8262 = vrot.lane.b32.xlu1 %v8261_v14, %s8733_s21 }
 0xba3   : > { %8257 = vrot.lane.b32.xlu0 %v8256_v15, %s8733_s21  ;;  %v8243_v15 = vpop.permute.xlu1 %8242 }
 0xba4   : > { %v8245_v18 = vunpack.i.h.bf16 %v8243_v15  ;;  %v8244_v1 = vunpack.i.l.bf16 %v8243_v15  ;;  %v4177_v15 = vsub.s32 4, %v9411_v35 }
 0xba6   : > { %8272 = vrot.lane.b32.xlu1 %v8271_v24, %s8732_s18  ;;  %v8238_v24 = vpop.permute.xlu0 %8237  ;;  %v4019_v10 = vsel %vm4016_vm1, %v4010_v2, %v8244_v1  ;;  %v4020_v0 = vsel %vm4016_vm1, %v4011_v46, %v8245_v18 }
 0xba7   : > { %8267 = vrot.lane.b32.xlu0 %v8266_v59, %s8732_s18  ;;  %v8240_v59 = vunpack.i.h.bf16 %v8238_v24  ;;  %v8239_v25 = vunpack.i.l.bf16 %v8238_v24  ;;  %v4178_v24 = vrot.slane %v9986_v19, %v4177_v15 }
 0xba9   : > { %v4017_v23 = vsel %vm4016_vm1, %v4008_v54, %v8239_v25  ;;  %v4018_v49 = vsel %vm4016_vm1, %v4009_v47, %v8240_v59  ;;  %v8588_v25 = vld [vmem:[#allocation2 + $0x10] sm:$0xff] }
 0xbad   : > { %v7740_v4 = vpop.f32.mrb[52].mxu1 }
 0xbae   : > { %v3897_v61 = vpop.f32.mrb[53].mxu1 }
 0xbaf   : > { %v7741_v32 = vpop.f32.mrb[54].mxu1 }
 0xbb0   : > { %v8281_v21 = vpack.i.bf16 %v7741_v32, %v7740_v4  ;;  %v3900_v31 = vpop.f32.mrb[55].mxu1 }
 0xbb1   : > { %v8276_v14 = vpack.i.bf16 %v3900_v31, %v3897_v61 }
 0xbb2   : > { %8282 = vrot.lane.b32.xlu1 %v8281_v21, %s8731_s20 }
 0xbb3   : > { %8277 = vrot.lane.b32.xlu0 %v8276_v14, %s8731_s20 }
 0xc10   : > { %v8253_v50 = vpop.permute.xlu1 %8252 }
 0xc11   : > { %v8255_v42 = vunpack.i.h.bf16 %v8253_v50  ;;  %v8254_v11 = vunpack.i.l.bf16 %v8253_v50  ;;  %v8248_v60 = vpop.permute.xlu0 %8247  ;;  %v8589_v50 = vld [vmem:[#allocation2 + $0x8] sm:$0xff] }
 0xc12   : > { %v8250_v5 = vunpack.i.h.bf16 %v8248_v60  ;;  %v8249_v16 = vunpack.i.l.bf16 %v8248_v60 }
 0xc13   : > { %v4029_v52 = vsel %vm4025_vm2, %v4020_v0, %v8255_v42  ;;  %v4028_v36 = vsel %vm4025_vm2, %v4019_v10, %v8254_v11  ;;  %v8590_v11 = vld [vmem:[#allocation2 + $0x18] sm:$0xff] }
 0xc14   : > { %v4035_v12 = vpack.c.bf16 %v4029_v52, %v4028_v36  ;;  %v4026_v63 = vsel %vm4025_vm2, %v4017_v23, %v8249_v16  ;;  %v4027_v29 = vsel %vm4025_vm2, %v4018_v49, %v8250_v5  ;;  %v8263_v34 = vpop.permute.xlu1 %8262  ;;  %v8591_v16 = vld [vmem:[#allocation2 + $0x20] sm:$0xff]  ;;  %v8592_v36 = vld [vmem:[#allocation2 + $0x30] sm:$0xff] }
 0xc15   : > { %v4034_v27 = vpack.c.bf16 %v4027_v29, %v4026_v63  ;;  %v8258_v39 = vpop.permute.xlu0 %8257  ;;  %v8265_v22 = vunpack.i.h.bf16 %v8263_v34  ;;  %v8264_v7 = vunpack.i.l.bf16 %v8263_v34  ;;  %v8593_v29 = vld [vmem:[#allocation2 + $0x28] sm:$0xff]  ;;  %v8594_v34 = vld [vmem:[#allocation2 + $0x38] sm:$0xff] }
 0xc16   : > { %v8260_v33 = vunpack.i.h.bf16 %v8258_v39  ;;  %v8259_v51 = vunpack.i.l.bf16 %v8258_v39 }
 0xc17   : > { %7758 = vmatprep.mubr.bf16.mxu0 %v4034_v27  ;;  %v4015_v8 = vsel %vm2515_vm0, %v9730_v62, %v8265_v22  ;;  %v4014_v3 = vsel %vm2515_vm0, %v9726_v43, %v8264_v7 }
 0xc18   : > { %7759 = vmatmul.mubr.bf16.vlgmr.msra.gmra.mrb[32].mxu0 %v4035_v12  ;;  %v8273_v37 = vpop.permute.xlu1 %8272  ;;  %v4013_v38 = vsel %vm2515_vm0, %v9732_v9, %v8260_v33  ;;  %v4012_v57 = vsel %vm2515_vm0, %v9728_v45, %v8259_v51  ;;  %v8328_v33 = vld [vmem:[%s8853_s23 + $0x4] ss:$8 sps:$4 sm:$0xff]   ;;  %v8331_v51 = vld [vmem:[%s8853_s23 + $0x14] ss:$8 sps:$4 sm:$0xff]  }
 0xc19   : > { %v8268_v26 = vpop.permute.xlu0 %8267  ;;  %v8275_v58 = vunpack.i.h.bf16 %v8273_v37  ;;  %v8274_v28 = vunpack.i.l.bf16 %v8273_v37  ;;  %4407 = vmatprep.subr.bf16.mxu1 %v8328_v33 }
 0xc1a   : > { %v8270_v44 = vunpack.i.h.bf16 %v8268_v26  ;;  %v8269_v48 = vunpack.i.l.bf16 %v8268_v26  ;;  %v8326_v26 = vld [vmem:[%s8853_s23] ss:$8 sps:$4 sm:$0xff]  }
 0xc1b   : > { %v4023_v4 = vsel %vm4016_vm1, %v4014_v3, %v8274_v28  ;;  %v4024_v61 = vsel %vm4016_vm1, %v4015_v8, %v8275_v58  ;;  %4408 = vmatpush1.bf16.msra.mxu1 %v8326_v26  ;;  %v8329_v58 = vld [vmem:[%s8853_s23 + $0x10] ss:$8 sps:$4 sm:$0xff]  }
 0xc1c   : > { %v4021_v21 = vsel %vm4016_vm1, %v4012_v57, %v8269_v48  ;;  %v4022_v43 = vsel %vm4016_vm1, %v4013_v38, %v8270_v44  ;;  %4409 = vmatprep.subr.bf16.mxu1 %v8331_v51 }
 0xc1f   : > { %4410 = vmatpush1.bf16.msra.mxu1 %v8329_v58 }
 0xc24   : > { %v8283_v55 = vpop.permute.xlu1 %8282 }
 0xc25   : > { %v8285_v56 = vunpack.i.h.bf16 %v8283_v55  ;;  %v8284_v40 = vunpack.i.l.bf16 %v8283_v55  ;;  %v8278_v30 = vpop.permute.xlu0 %8277 }
 0xc26   : > { %v8280_v32 = vunpack.i.h.bf16 %v8278_v30  ;;  %v8279_v62 = vunpack.i.l.bf16 %v8278_v30 }
 0xc27   : > { %v4032_v31 = vsel %vm4025_vm2, %v4023_v4, %v8284_v40  ;;  %v4033_v9 = vsel %vm4025_vm2, %v4024_v61, %v8285_v56 }
 0xc28   : > { %v4030_v45 = vsel %vm4025_vm2, %v4021_v21, %v8279_v62  ;;  %v4031_v14 = vsel %vm4025_vm2, %v4022_v43, %v8280_v32  ;;  %v4037_v6 = vpack.c.bf16 %v4033_v9, %v4032_v31  ;;  %v8334_v9 = vld [vmem:[%s8853_s23 + $0x24] ss:$8 sps:$4 sm:$0xff]  }
 0xc29   : > { %v4036_v53 = vpack.c.bf16 %v4031_v14, %v4030_v45  ;;  %v8332_v14 = vld [vmem:[%s8853_s23 + $0x20] ss:$8 sps:$4 sm:$0xff]   ;;  %4411 = vmatprep.subr.bf16.mxu1 %v8334_v9 }
 0xc2a   : > { %4412 = vmatpush1.bf16.msra.mxu1 %v8332_v14 }
 0xc2b   : > { %7762 = vmatprep.mubr.bf16.mxu0 %v4036_v53 }
 0xc2c   : > { %7763 = vmatmul.mubr.bf16.gmra.mrb[36].mxu0 %v4037_v6 }
 0xceb   : > { %v7760_v17 = vpop.f32.mrb[32].mxu0 }
 0xcec   : > { %v4136_v13 = vpop.f32.mrb[33].mxu0  ;;  %v4169_v47 = vadd.f32 %v8588_v25, %v7760_v17 }
 0xced   : > { %v4167_v18 = vadd.f32 %v8587_v41, %v4136_v13  ;;  %v7761_v1 = vpop.f32.mrb[34].mxu0  ;;  %v8337_v41 = vld [vmem:[%s8853_s23 + $0x34] ss:$8 sps:$4 sm:$0xff]  }
 0xcee   : > { %v4139_v59 = vpop.f32.mrb[35].mxu0  ;;  %v9994_v42 = vadd.f32 %v4178_v24, %v4169_v47  ;;  %v4170_v60 = vadd.f32 %v8590_v11, %v7761_v1  ;;  %v8335_v1 = vld [vmem:[%s8853_s23 + $0x30] ss:$8 sps:$4 sm:$0xff]   ;;  %4413 = vmatprep.subr.bf16.mxu1 %v8337_v41  ;;  %v8340_v11 = vld [vmem:[%s8853_s23 + $0x44] ss:$8 sps:$4 sm:$0xff]  }
 0xcef   : > { %v9989_v54 = vadd.f32 %v4178_v24, %v4167_v18  ;;  %v4168_v46 = vadd.f32 %v8589_v50, %v4139_v59  ;;  %4414 = vmatpush1.bf16.msra.mxu1 %v8335_v1 }
 0xcf0   : > { %11013 = vst [vmem:[#allocation8_spill] sm:$0xff] %v9994_v42  ;;  %v9998_v10 = vadd.f32 %v4178_v24, %v4170_v60  ;;  %v8338_v60 = vld [vmem:[%s8853_s23 + $0x40] ss:$8 sps:$4 sm:$0xff]   ;;  %4415 = vmatprep.subr.bf16.mxu1 %v8340_v11 }
 0xcf1   : > { %v9991_v2 = vadd.f32 %v4178_v24, %v4168_v46  ;;  %4187 = vadd.xlane.f32.xlu0 %v9989_v54 }
 0xcf2   : > { %11014 = vst [vmem:[#allocation9_spill] sm:$0xff] %v9998_v10 }
 0xcf3   : > { %11012 = vst [vmem:[#allocation7_spill] sm:$0xff] %v9991_v2  ;;  %4189 = vadd.xlane.f32.xlu1 %v9991_v2  ;;  %4416 = vmatpush1.bf16.msra.mxu1 %v8338_v60 }
 0xcf5   : > { %4191 = vadd.xlane.f32.xlu0 %v9994_v42 }
 0xcf9   : > { %4193 = vadd.xlane.f32.xlu0 %v9998_v10 }
 0xcff   : > { %v7764_v0 = vpop.f32.mrb[36].mxu0 }
 0xd00   : > { %v4152_v5 = vpop.f32.mrb[37].mxu0  ;;  %v4173_v12 = vadd.f32 %v8592_v36, %v7764_v0  ;;  %v8347_v36 = vld [vmem:[%s8853_s23 + $0x70] ss:$8 sps:$4 sm:$0xff]  }
 0xd01   : > { %v4171_v23 = vadd.f32 %v8591_v16, %v4152_v5  ;;  %v7765_v49 = vpop.f32.mrb[38].mxu0  ;;  %v8343_v5 = vld [vmem:[%s8853_s23 + $0x54] ss:$8 sps:$4 sm:$0xff]   ;;  %v8341_v16 = vld [vmem:[%s8853_s23 + $0x50] ss:$8 sps:$4 sm:$0xff]  }
 0xd02   : > { %v4155_v52 = vpop.f32.mrb[39].mxu0  ;;  %v4174_v39 = vadd.f32 %v8594_v34, %v7765_v49  ;;  %v10006_v22 = vadd.f32 %v4178_v24, %v4173_v12  ;;  %4417 = vmatprep.subr.bf16.mxu1 %v8343_v5  ;;  %v8344_v49 = vld [vmem:[%s8853_s23 + $0x60] ss:$8 sps:$4 sm:$0xff]  }
 0xd03   : > { %v10001_v63 = vadd.f32 %v4178_v24, %v4171_v23  ;;  %v4172_v27 = vadd.f32 %v8593_v29, %v4155_v52  ;;  %4418 = vmatpush1.bf16.msra.mxu1 %v8341_v16  ;;  %v8346_v23 = vld [vmem:[%s8853_s23 + $0x64] ss:$8 sps:$4 sm:$0xff]   ;;  %v8349_v52 = vld [vmem:[%s8853_s23 + $0x74] ss:$8 sps:$4 sm:$0xff]   ;;  %s11027_s23 = sld [smem:[#allocation17_spill]] (!%p6893_p5) }
 0xd04   : > { %11017 = vst [vmem:[#allocation12_spill] sm:$0xff] %v10006_v22  ;;  %v10009_v7 = vadd.f32 %v4178_v24, %v4174_v39  ;;  %4419 = vmatprep.subr.bf16.mxu1 %v8346_v23 }
 0xd05   : > { %11015 = vst [vmem:[#allocation10_spill] sm:$0xff] %v10001_v63  ;;  %v10003_v37 = vadd.f32 %v4178_v24, %v4172_v27  ;;  %4195 = vadd.xlane.f32.xlu0 %v10001_v63 }
 0xd06   : > { %11018 = vst [vmem:[#allocation13_spill] sm:$0xff] %v10009_v7 }
 0xd07   : > { %11016 = vst [vmem:[#allocation11_spill] sm:$0xff] %v10003_v37  ;;  %4197 = vadd.xlane.f32.xlu1 %v10003_v37  ;;  %4420 = vmatpush1.bf16.msra.mxu1 %v8344_v49 }
 0xd08   : > { %4421 = vmatprep.subr.bf16.mxu1 %v8349_v52 }
 0xd09   : > { %4199 = vadd.xlane.f32.xlu0 %v10006_v22 }
 0xd0b   : > { %4201 = vadd.xlane.f32.xlu1 %v10009_v7  ;;  %4422 = vmatpush1.bf16.msra.mxu1 %v8347_v36 }
 0xd7e   : > { %v4188_v28 = vpop.xlane.xlu0 %4187 }
 0xd7f   : > { %v4203_v44 = vmul.f32 0.0078125, %v4188_v28 }
 0xd80   : > { %v4190_v48 = vpop.xlane.xlu1 %4189 }
 0xd81   : > { %v10018_v8 = vsub.f32 %v9989_v54, %v4203_v44  ;;  %v4204_v3 = vmul.f32 0.0078125, %v4190_v48  ;;  %v4277_v48 = vsub.s32 2, %v9411_v35 }
 0xd82   : > { %v4192_v55 = vpop.xlane.xlu0 %4191 }
 0xd83   : > { %v10021_v38 = vsub.f32 %v9991_v2, %v4204_v3  ;;  %v4205_v57 = vmul.f32 0.0078125, %v4192_v55  ;;  %v4219_v56 = vmul.f32 %v10018_v8, %v10018_v8  ;;  %v4278_v55 = vrot.slane %v9986_v19, %v4277_v48 }
 0xd84   : > { %v11019_v2 = vmov -1.0  }
 0xd85   : > { %v10026_v40 = vsub.f32 %v9994_v42, %v4205_v57  ;;  %4227 = vadd.xlane.f32.xlu0 %v4219_v56  ;;  %v4220_v30 = vmul.f32 %v10021_v38, %v10021_v38  ;;  %v4289_v57 = vsub.s32 3, %v9411_v35 }
 0xd86   : > { %v4194_v4 = vpop.xlane.xlu0 %4193 }
 0xd87   : > { %v4206_v61 = vmul.f32 0.0078125, %v4194_v4  ;;  %4229 = vadd.xlane.f32.xlu1 %v4220_v30  ;;  %v4221_v32 = vmul.f32 %v10026_v40, %v10026_v40 }
 0xd89   : > { %v10033_v62 = vsub.f32 %v9998_v10, %v4206_v61  ;;  %4231 = vadd.xlane.f32.xlu0 %v4221_v32 }
 0xd8b   : > { %v4222_v21 = vmul.f32 %v10033_v62, %v10033_v62 }
 0xd8d   : > { %4233 = vadd.xlane.f32.xlu1 %v4222_v21  ;;  %v4290_v21 = vrot.slane %v9986_v19, %v4289_v57  ;;  %v8350_v57 = vld [vmem:[%s8863_s0] sm:$0xff]  }
 0xd8e   : > { %5029 = vmatpush1.bf16.msra.mxu0 %v8350_v57 }
 0xd8f   : > { %5030 = vmatprep.subr.bf16.mxu0 %v8730_v20 }
 0xd92   : > { %v4196_v43 = vpop.xlane.xlu0 %4195 }
 0xd93   : > { %v4207_v31 = vmul.f32 0.0078125, %v4196_v43 }
 0xd94   : > { %v4198_v45 = vpop.xlane.xlu1 %4197 }
 0xd95   : > { %v10040_v6 = vsub.f32 %v10001_v63, %v4207_v31  ;;  %v4208_v53 = vmul.f32 0.0078125, %v4198_v45 }
 0xd96   : > { %v4200_v15 = vpop.xlane.xlu0 %4199 }
 0xd97   : > { %v10043_v17 = vsub.f32 %v10003_v37, %v4208_v53  ;;  %v4209_v24 = vmul.f32 0.0078125, %v4200_v15  ;;  %v4223_v13 = vmul.f32 %v10040_v6, %v10040_v6 }
 0xd98   : > { %v4202_v18 = vpop.xlane.xlu1 %4201 }
 0xd99   : > { %v10050_v59 = vsub.f32 %v10006_v22, %v4209_v24  ;;  %v4210_v25 = vmul.f32 0.0078125, %v4202_v18  ;;  %4235 = vadd.xlane.f32.xlu0 %v4223_v13  ;;  %v4224_v47 = vmul.f32 %v10043_v17, %v10043_v17 }
 0xd9b   : > { %v10055_v50 = vsub.f32 %v10009_v7, %v4210_v25  ;;  %4237 = vadd.xlane.f32.xlu1 %v4224_v47  ;;  %v4225_v46 = vmul.f32 %v10050_v59, %v10050_v59 }
 0xd9d   : > { %4239 = vadd.xlane.f32.xlu0 %v4225_v46  ;;  %v4226_v0 = vmul.f32 %v10055_v50, %v10055_v50 }
 0xd9f   : > { %4241 = vadd.xlane.f32.xlu1 %v4226_v0 }
 0xe12   : > { %v4228_v12 = vpop.xlane.xlu0 %4227 }
 0xe13   : > { %v4243_v29 = vmul.f32 0.0078125, %v4228_v12 }
 0xe14   : > { %v4230_v27 = vpop.xlane.xlu1 %4229 }
 0xe15   : > { %v4251_v34 = vadd.f32 1e-05, %v4243_v29  ;;  %v4244_v39 = vmul.f32 0.0078125, %v4230_v27 }
 0xe16   : > { %v4232_v26 = vpop.xlane.xlu0 %4231 }
 0xe17   : > { %8506 = vrsqrt.f32 %v4251_v34  ;;  %v4252_v33 = vadd.f32 1e-05, %v4244_v39  ;;  %v4245_v51 = vmul.f32 0.0078125, %v4232_v26 }
 0xe19   : > { %8508 = vrsqrt.f32 %v4252_v33  ;;  %v4253_v58 = vadd.f32 1e-05, %v4245_v51 }
 0xe1a   : > { %v4234_v28 = vpop.xlane.xlu1 %4233 }
 0xe1b   : > { %8510 = vrsqrt.f32 %v4253_v58  ;;  %v4246_v44 = vmul.f32 0.0078125, %v4234_v28 }
 0xe1d   : > { %v4254_v3 = vadd.f32 1e-05, %v4246_v44 }
 0xe1f   : > { %8512 = vrsqrt.f32 %v4254_v3 }
 0xe21   : > { %v8507_v56 = vpop.eup %8506 }
 0xe22   : > { %v4267_v30 = vmul.f32 %v8507_v56, %v10018_v8  ;;  %v8354_v56 = vld [vmem:[%s8863_s0 + $0x20] sm:$0xff]  }
 0xe23   : > { %v8509_v4 = vpop.eup %8508 }
 0xe24   : > { %v4268_v61 = vmul.f32 %v8509_v4, %v10021_v38  ;;  %v4279_v32 = vmul.f32 %v4278_v55, %v4267_v30  ;;  %v8355_v30 = vld [vmem:[%s8863_s0 + $0x28] sm:$0xff]   ;;  %v8356_v4 = vld [vmem:[%s8863_s0 + $0x30] sm:$0xff]  }
 0xe25   : > { %v8511_v43 = vpop.eup %8510 }
 0xe26   : > { %v4236_v31 = vpop.xlane.xlu0 %4235  ;;  %v4280_v9 = vmul.f32 %v4278_v55, %v4268_v61  ;;  %v4291_v53 = vadd.f32 %v4290_v21, %v4279_v32  ;;  %v4269_v24 = vmul.f32 %v8511_v43, %v10026_v40  ;;  %v8357_v61 = vld [vmem:[%s8863_s0 + $0x38] sm:$0xff]   ;;  %v8358_v32 = vld [vmem:[%s8863_s0 + $0x40] sm:$0xff]   ;;  %v8360_v43 = vld [vmem:[%s8863_s0 + $0x50] sm:$0xff]  }
 0xe27   : > { %v4247_v45 = vmul.f32 0.0078125, %v4236_v31  ;;  %v8361_v31 = vld [vmem:[%s8863_s0 + $0x58] sm:$0xff]  }
 0xe28   : > { %v4238_v14 = vpop.xlane.xlu1 %4237  ;;  %v4292_v15 = vadd.f32 %v4290_v21, %v4280_v9  ;;  %v4281_v11 = vmul.f32 %v4278_v55, %v4269_v24  ;;  %v4321_v9 = vsub.s32 6, %v9411_v35 }
 0xe29   : > { %v8513_v13 = vpop.eup %8512  ;;  %v4255_v41 = vadd.f32 1e-05, %v4247_v45  ;;  %v4248_v18 = vmul.f32 0.0078125, %v4238_v14  ;;  %v2091_v45 = vld [vmem:[%s8858_s15 + $0x8] sm:$0xff] }
 0xe2a   : > { %v4240_v1 = vpop.xlane.xlu0 %4239  ;;  %v4299_v8 = vpack.c.bf16 %v4292_v15, %v4291_v53  ;;  %v4270_v25 = vmul.f32 %v8513_v13, %v10033_v62  ;;  %v4293_v23 = vadd.f32 %v4290_v21, %v4281_v11  ;;  %v10110_v14 = vrot.slane %v9986_v19, %v4321_v9 }
 0xe2b   : > { %8514 = vrsqrt.f32 %v4255_v41  ;;  %v4256_v38 = vadd.f32 1e-05, %v4248_v18  ;;  %v4249_v47 = vmul.f32 0.0078125, %v4240_v1  ;;  %v10112_v53 = vrot.slane %v2091_v45, %v4321_v9 }
 0xe2c   : > { %4440 = vmatmul.mubr.bf16.vlgmr.msra.gmra.mrb[56].mxu1 %v4299_v8  ;;  %v4242_v46 = vpop.xlane.xlu1 %4241  ;;  %v4282_v60 = vmul.f32 %v4278_v55, %v4270_v25 }
 0xe2d   : > { %8516 = vrsqrt.f32 %v4256_v38  ;;  %v4257_v0 = vadd.f32 1e-05, %v4249_v47  ;;  %v4250_v5 = vmul.f32 0.0078125, %v4242_v46  ;;  %4449 = vmatprep.mubr.bf16.mxu1 %v8730_v20 }
 0xe2e   : > { %v4294_v40 = vadd.f32 %v4290_v21, %v4282_v60 }
 0xe2f   : > { %8518 = vrsqrt.f32 %v4257_v0  ;;  %v4258_v16 = vadd.f32 1e-05, %v4250_v5 }
 0xe30   : > { %v4300_v49 = vpack.c.bf16 %v4294_v40, %v4293_v23 }
 0xe31   : > { %8520 = vrsqrt.f32 %v4258_v16 }
 0xe34   : > { %4450 = vmatmul.mubr.bf16.gmra.mrb[60].mxu1 %v4300_v49 }
 0xe35   : > { %v8515_v62 = vpop.eup %8514  ;;  %4459 = vmatprep.mubr.bf16.mxu1 %v8730_v20 }
 0xe36   : > { %v4271_v52 = vmul.f32 %v8515_v62, %v10040_v6 }
 0xe37   : > { %v8517_v36 = vpop.eup %8516 }
 0xe38   : > { %v4272_v12 = vmul.f32 %v8517_v36, %v10043_v17  ;;  %v4283_v29 = vmul.f32 %v4278_v55, %v4271_v52 }
 0xe39   : > { %v8519_v27 = vpop.eup %8518 }
 0xe3a   : > { %v4284_v34 = vmul.f32 %v4278_v55, %v4272_v12  ;;  %v4295_v26 = vadd.f32 %v4290_v21, %v4283_v29  ;;  %v4273_v51 = vmul.f32 %v8519_v27, %v10050_v59  ;;  %v8351_v59 = vld [vmem:[%s8863_s0 + $0x8] sm:$0xff]  }
 0xe3b   : > { %v8521_v39 = vpop.eup %8520  ;;  %5031 = vmatpush1.bf16.msra.mxu0 %v8351_v59 }
 0xe3c   : > { %v4296_v33 = vadd.f32 %v4290_v21, %v4284_v34  ;;  %v4274_v58 = vmul.f32 %v8521_v39, %v10055_v50  ;;  %v4285_v6 = vmul.f32 %v4278_v55, %v4273_v51  ;;  %5032 = vmatprep.subr.bf16.mxu0 %v8730_v20  ;;  %v8352_v50 = vld [vmem:[%s8863_s0 + $0x10] sm:$0xff]  }
 0xe3e   : > { %v4301_v28 = vpack.c.bf16 %v4296_v33, %v4295_v26  ;;  %v4286_v44 = vmul.f32 %v4278_v55, %v4274_v58  ;;  %v4297_v48 = vadd.f32 %v4290_v21, %v4285_v6  ;;  %v8353_v55 = vld [vmem:[%s8863_s0 + $0x18] sm:$0xff]  }
 0xe3f   : > { %5033 = vmatpush1.bf16.msra.mxu0 %v8352_v50 }
 0xe40   : > { %4460 = vmatmul.mubr.bf16.gmra.mrb[64].mxu1 %v4301_v28  ;;  %v4298_v17 = vadd.f32 %v4290_v21, %v4286_v44  ;;  %5034 = vmatprep.subr.bf16.mxu0 %v8730_v20  ;;  %v8359_v21 = vld [vmem:[%s8863_s0 + $0x48] sm:$0xff]  }
 0xe41   : > { %4469 = vmatprep.mubr.bf16.mxu1 %v8730_v20 }
 0xe42   : > { %v4302_v3 = vpack.c.bf16 %v4298_v17, %v4297_v48 }
 0xe43   : > { %5035 = vmatpush1.bf16.msra.mxu0 %v8353_v55  ;;  %v10994_v55 = vmov -1.0  }
 0xe44   : > { %5036 = vmatprep.subr.bf16.mxu0 %v8730_v20 }
 0xe47   : > { %5037 = vmatpush1.bf16.msra.mxu0 %v8354_v56 }
 0xe48   : > { %4470 = vmatmul.mubr.bf16.gmra.mrb[68].mxu1 %v4302_v3  ;;  %5038 = vmatprep.subr.bf16.mxu0 %v8730_v20 }
 0xe4b   : > { %5039 = vmatpush1.bf16.msra.mxu0 %v8355_v30 }
 0xe4c   : > { %5040 = vmatprep.subr.bf16.mxu0 %v8730_v20 }
 0xe4f   : > { %5041 = vmatpush1.bf16.msra.mxu0 %v8356_v4 }
 0xe50   : > { %5042 = vmatprep.subr.bf16.mxu0 %v8730_v20 }
 0xe53   : > { %5043 = vmatpush1.bf16.msra.mxu0 %v8357_v61 }
 0xe54   : > { %5044 = vmatprep.subr.bf16.mxu0 %v8730_v20 }
 0xe57   : > { %5045 = vmatpush1.bf16.msra.mxu0 %v8358_v32 }
 0xe58   : > { %5046 = vmatprep.subr.bf16.mxu0 %v8730_v20 }
 0xe5b   : > { %5047 = vmatpush1.bf16.msra.mxu0 %v8359_v21 }
 0xe5c   : > { %5048 = vmatprep.subr.bf16.mxu0 %v8730_v20 }
 0xe5f   : > { %5049 = vmatpush1.bf16.msra.mxu0 %v8360_v43 }
 0xe60   : > { %5050 = vmatprep.subr.bf16.mxu0 %v8730_v20 }
 0xe63   : > { %5051 = vmatpush1.bf16.msra.mxu0 %v8361_v31 }
 0xeff   : > { %v4441_v15 = vpop.f32.mrb[56].mxu1 }
 0xf00   : > { %v4442_v24 = vadd.f32 %v4441_v15, %v10110_v14  ;;  %v4443_v13 = vpop.f32.mrb[57].mxu1 }
 0xf01   : > { %v4444_v41 = vadd.f32 %v4443_v13, %v10112_v53  ;;  %v4445_v18 = vpop.f32.mrb[58].mxu1 }
 0xf02   : > { %v4496_v1 = vmul.f32 0.70710677, %v4442_v24  ;;  %v4446_v20 = vadd.f32 %v4445_v18, %v10110_v14  ;;  %v4447_v8 = vpop.f32.mrb[59].mxu1  ;;  %v10148_v59 = vmul.f32 0.5, %v4442_v24 }
 0xf03   : > { %v10117_v25 = vmul.f32 0.70710677, %v4444_v41  ;;  %v4448_v19 = vadd.f32 %v4447_v8, %v10112_v53  ;;  %v10156_v30 = vmul.f32 0.5, %v4444_v41 }
 0xf04   : > { %v4544_v38 = vand.u32 2147483647, %v4496_v1  ;;  %v10119_v47 = vmul.f32 0.70710677, %v4446_v20  ;;  %vm4512_vm3 = vcmp.ge.f32.partialorder %v4496_v1, 0.0  ;;  %v10158_v4 = vmul.f32 0.5, %v4446_v20 }
 0xf05   : > { %v4545_v46 = vand.u32 2147483647, %v10117_v25  ;;  %v10124_v40 = vmul.f32 0.70710677, %v4448_v19  ;;  %v10154_v56 = vsel %vm4512_vm3, 1.0, %v10994_v55  ;;  %vm4513_vm4 = vcmp.ge.f32.partialorder %v10117_v25, 0.0 }
 0xf06   : > { %v4560_v11 = vmul.f32 0.3275911, %v4544_v38  ;;  %v4546_v0 = vand.u32 2147483647, %v10119_v47  ;;  %v4768_v27 = vsub.f32 0.0, %v4544_v38  ;;  %vm4514_vm5 = vcmp.ge.f32.partialorder %v10119_v47, 0.0 }
 0xf07   : > { %v4561_v60 = vmul.f32 0.3275911, %v4545_v46  ;;  %v4451_v16 = vpop.f32.mrb[60].mxu1  ;;  %v4547_v52 = vand.u32 2147483647, %v10124_v40  ;;  %v4769_v44 = vsub.f32 0.0, %v4545_v46 }
 0xf08   : > { %v4576_v5 = vadd.f32 1.0, %v4560_v11  ;;  %v4562_v49 = vmul.f32 0.3275911, %v4546_v0  ;;  %v4453_v62 = vpop.f32.mrb[61].mxu1  ;;  %v10128_v39 = vadd.f32 %v4451_v16, %v10110_v14  ;;  %v4784_v28 = vmul.f32 %v4768_v27, %v4544_v38 }
 0xf09   : > { %v4577_v23 = vadd.f32 1.0, %v4561_v60  ;;  %v4455_v36 = vpop.f32.mrb[62].mxu1  ;;  %v4563_v34 = vmul.f32 0.3275911, %v4547_v52  ;;  %v10131_v26 = vadd.f32 %v4453_v62, %v10112_v53  ;;  %v4770_v17 = vsub.f32 0.0, %v4546_v0 }
 0xf0a   : > { %8522 = vrcp.f32 %v4576_v5  ;;  %v4578_v12 = vadd.f32 1.0, %v4562_v49  ;;  %v4457_v29 = vpop.f32.mrb[63].mxu1  ;;  %v10134_v51 = vadd.f32 %v4455_v36, %v10110_v14  ;;  %v10137_v58 = vmul.f32 0.70710677, %v10128_v39 }
 0xf0b   : > { %8524 = vrcp.f32 %v4577_v23  ;;  %v4579_v33 = vadd.f32 1.0, %v4563_v34  ;;  %v10140_v6 = vmul.f32 0.70710677, %v10131_v26  ;;  %v4771_v48 = vsub.f32 0.0, %v4547_v52 }
 0xf0c   : > { %8526 = vrcp.f32 %v4578_v12  ;;  %v10143_v3 = vand.u32 2147483647, %v10137_v58  ;;  %v10146_v57 = vmul.f32 0.70710677, %v10134_v51  ;;  %v4800_v43 = vmul.f32 1.442695, %v4784_v28 }
 0xf0d   : > { %8528 = vrcp.f32 %v4579_v33  ;;  %v10151_v50 = vand.u32 2147483647, %v10140_v6  ;;  %v4785_v31 = vmul.f32 %v4769_v44, %v4545_v46  ;;  %v4786_v13 = vmul.f32 %v4770_v17, %v4546_v0 }
 0xf0e   : > { %v4564_v61 = vmul.f32 0.3275911, %v10143_v3  ;;  %v10165_v45 = vand.u32 2147483647, %v10146_v57  ;;  %v4787_v41 = vmul.f32 %v4771_v48, %v4547_v52  ;;  %v10175_v46 = vadd.f32 %v4457_v29, %v10112_v53 }
 0xf0f   : > { %v4565_v9 = vmul.f32 0.3275911, %v10151_v50  ;;  %v10180_v5 = vmul.f32 0.5, %v4448_v19  ;;  %v4802_v49 = vmul.f32 1.442695, %v4785_v31  ;;  %v10199_v17 = vsel %vm4513_vm4, 1.0, %v10994_v55 }
 0xf10   : > { %v4580_v18 = vadd.f32 1.0, %v4564_v61  ;;  %v4566_v38 = vmul.f32 0.3275911, %v10165_v45  ;;  %v4804_v29 = vmul.f32 1.442695, %v4786_v13  ;;  %v4772_v61 = vsub.f32 0.0, %v10143_v3 }
 0xf11   : > { %v4581_v8 = vadd.f32 1.0, %v4565_v9  ;;  %v4806_v27 = vmul.f32 1.442695, %v4787_v41  ;;  %v10193_v34 = vmul.f32 0.70710677, %v10175_v46  ;;  %v10211_v25 = vsel %vm4514_vm5, 1.0, %v10994_v55 }
 0xf12   : > { %8530 = vrcp.f32 %v4580_v18  ;;  %v4582_v62 = vadd.f32 1.0, %v4566_v38  ;;  %vm4515_vm6 = vcmp.ge.f32.partialorder %v10124_v40, 0.0  ;;  %vm4516_vm7 = vcmp.ge.f32.partialorder %v10137_v58, 0.0 }
 0xf13   : > { %v4461_v32 = vpop.f32.mrb[64].mxu1  ;;  %8532 = vrcp.f32 %v4581_v8  ;;  %v10214_v18 = vand.u32 2147483647, %v10193_v34  ;;  %vm4517_vm8 = vcmp.ge.f32.partialorder %v10140_v6, 0.0  ;;  %vm4518_vm9 = vcmp.ge.f32.partialorder %v10146_v57, 0.0 }
 0xf14   : > { %v10161_v21 = vpop.eup %8522  ;;  %v10170_v1 = vpop.f32.mrb[65].mxu1  ;;  %8534 = vpow2.f32 %v4800_v43  ;;  %vm4519_vm10 = vcmp.ge.f32.partialorder %v10193_v34, 0.0  ;;  %v4534_v57 = vsel %vm4518_vm9, 1.0, %v11019_v2  ;;  %v4487_v34 = vmul.f32 0.5, %v10175_v46 }
 0xf15   : > { %v10167_v15 = vpop.eup %8524  ;;  %v4624_v24 = vmul.f32 1.0614054, %v10161_v21  ;;  %v10177_v11 = vpop.f32.mrb[66].mxu1  ;;  %8536 = vrcp.f32 %v4582_v62  ;;  %v10222_v62 = vmul.f32 %v4772_v61, %v10143_v3  ;;  %v4567_v47 = vmul.f32 0.3275911, %v10214_v18 }
 0xf16   : > { %v4625_v20 = vmul.f32 1.0614054, %v10167_v15  ;;  %v10182_v0 = vpop.f32.mrb[67].mxu1  ;;  %v10184_v16 = vpop.eup %8526  ;;  %8538 = vpow2.f32 %v4802_v49  ;;  %v10281_v40 = vadd.f32 %v10170_v1, %v10112_v53  ;;  %vm8736_vm5 = vmmov (!%p6893_p5), 0  }
 0xf17   : > { %v4640_v60 = vadd.f32 -1.4531521, %v4624_v24  ;;  %v4626_v36 = vmul.f32 1.0614054, %v10184_v16  ;;  %v10189_v12 = vpop.eup %8528  ;;  %v4773_v24 = vsub.f32 0.0, %v10151_v50  ;;  %8540 = vpow2.f32 %v4804_v29 }
 0xf18   : > { %v4641_v23 = vadd.f32 -1.4531521, %v4625_v20  ;;  %v4627_v44 = vmul.f32 1.0614054, %v10189_v12  ;;  %8542 = vpow2.f32 %v4806_v27  ;;  %v4583_v61 = vadd.f32 1.0, %v4567_v47 }
 0xf19   : > { %v4656_v52 = vmul.f32 %v10161_v21, %v4640_v60  ;;  %v4642_v28 = vadd.f32 -1.4531521, %v4626_v36  ;;  %v4789_v27 = vmul.f32 %v4773_v24, %v10151_v50 }
 0xf1a   : > { %v4657_v19 = vmul.f32 %v10167_v15, %v4641_v23  ;;  %v4643_v9 = vadd.f32 -1.4531521, %v4627_v44  ;;  %8544 = vrcp.f32 %v4583_v61 }
 0xf1b   : > { %v4672_v33 = vadd.f32 1.4214138, %v4656_v52  ;;  %v4658_v31 = vmul.f32 %v10184_v16, %v4642_v28  ;;  %v10205_v13 = vpop.f32.mrb[68].mxu1  ;;  %v10226_v52 = vadd.f32 %v4461_v32, %v10110_v14  ;;  %v4774_v32 = vsub.f32 0.0, %v10165_v45 }
 0xf1c   : > { %v4673_v48 = vadd.f32 1.4214138, %v4657_v19  ;;  %v10216_v20 = vpop.f32.mrb[69].mxu1  ;;  %v4659_v60 = vmul.f32 %v10189_v12, %v4643_v9  ;;  %v10228_v36 = vpop.eup %8530  ;;  %v4810_v22 = vmul.f32 1.442695, %v4789_v27 }
 0xf1d   : > { %v4688_v43 = vmul.f32 %v10161_v21, %v4672_v33  ;;  %v4674_v38 = vadd.f32 1.4214138, %v4658_v31  ;;  %v10219_v23 = vpop.f32.mrb[70].mxu1  ;;  %v10235_v44 = vpop.eup %8532 }
 0xf1e   : > { %v4689_v41 = vmul.f32 %v10167_v15, %v4673_v48  ;;  %v4675_v33 = vadd.f32 1.4214138, %v4659_v60  ;;  %v10233_v28 = vpop.f32.mrb[71].mxu1  ;;  %v4628_v48 = vmul.f32 1.0614054, %v10228_v36  ;;  %8546 = vpow2.f32 %v4810_v22 }
 0xf1f   : > { %v4704_v8 = vadd.f32 -0.28449672, %v4688_v43  ;;  %v4690_v29 = vmul.f32 %v10184_v16, %v4674_v38  ;;  %v8535_v43 = vpop.eup %8534  ;;  %v4629_v50 = vmul.f32 1.0614054, %v10235_v44  ;;  %v10244_v38 = vmul.f32 0.70710677, %v10226_v52 }
 0xf20   : > { %v4705_v49 = vadd.f32 -0.28449672, %v4689_v41  ;;  %v4691_v41 = vmul.f32 %v10189_v12, %v4675_v33  ;;  %v10246_v60 = vpop.eup %8536 }
 0xf21   : > { %v4720_v19 = vmul.f32 %v10161_v21, %v4704_v8  ;;  %v4706_v9 = vadd.f32 -0.28449672, %v4690_v29  ;;  %v4644_v8 = vadd.f32 -1.4531521, %v4628_v48  ;;  %v4645_v29 = vadd.f32 -1.4531521, %v4629_v50  ;;  %v8539_v55 = vpop.eup %8538 }
 0xf22   : > { %v4721_v3 = vmul.f32 %v10167_v15, %v4705_v49  ;;  %v8541_v10 = vpop.eup %8540  ;;  %vm4520_vm11 = vcmp.ge.f32.partialorder %v10244_v38, 0.0 }
 0xf23   : > { %v4736_v31 = vadd.f32 0.2548296, %v4720_v19  ;;  %v4722_v47 = vmul.f32 %v10184_v16, %v4706_v9  ;;  %v4707_v19 = vadd.f32 -0.28449672, %v4691_v41  ;;  %v4660_v33 = vmul.f32 %v10228_v36, %v4644_v8 }
 0xf24   : > { %v4737_v24 = vadd.f32 0.2548296, %v4721_v3  ;;  %v4630_v3 = vmul.f32 1.0614054, %v10246_v60  ;;  %v4661_v63 = vmul.f32 %v10235_v44, %v4645_v29  ;;  %v4775_v9 = vsub.f32 0.0, %v10214_v18 }
 0xf25   : > { %v4752_v49 = vmul.f32 %v10161_v21, %v4736_v31  ;;  %v4738_v61 = vadd.f32 0.2548296, %v4722_v47  ;;  %v4723_v37 = vmul.f32 %v10189_v12, %v4707_v19  ;;  %v10257_v41 = vand.u32 2147483647, %v10244_v38 }
 0xf26   : > { %v4753_v7 = vmul.f32 %v10167_v15, %v4737_v24  ;;  %v4646_v31 = vadd.f32 -1.4531521, %v4630_v3  ;;  %v8543_v15 = vpop.eup %8542  ;;  %v4677_v8 = vadd.f32 1.4214138, %v4661_v63 }
 0xf27   : > { %v4832_v48 = vmul.f32 %v8535_v43, %v4752_v49  ;;  %v4754_v27 = vmul.f32 %v10184_v16, %v4738_v61  ;;  %v4739_v24 = vadd.f32 0.2548296, %v4723_v37  ;;  %v4676_v49 = vadd.f32 1.4214138, %v4660_v33 }
 0xf28   : > { %v4833_v21 = vmul.f32 %v8539_v55, %v4753_v7  ;;  %v4662_v47 = vmul.f32 %v10246_v60, %v4646_v31  ;;  %v4568_v19 = vmul.f32 0.3275911, %v10257_v41  ;;  %v4693_v3 = vmul.f32 %v10235_v44, %v4677_v8 }
 0xf29   : > { %v4848_v50 = vsub.f32 1.0, %v4832_v48  ;;  %v4834_v55 = vmul.f32 %v8541_v10, %v4754_v27  ;;  %v4755_v29 = vmul.f32 %v10189_v12, %v4739_v24  ;;  %v4791_v48 = vmul.f32 %v4775_v9, %v10214_v18 }
 0xf2a   : > { %v4849_v43 = vsub.f32 1.0, %v4833_v21  ;;  %v4678_v42 = vadd.f32 1.4214138, %v4662_v47  ;;  %v4584_v16 = vadd.f32 1.0, %v4568_v19  ;;  %v4709_v61 = vadd.f32 -0.28449672, %v4693_v3  ;;  %v10267_v21 = vpop.eup %8544 }
 0xf2b   : > { %v4864_v7 = vmul.f32 %v4848_v50, %v10154_v56  ;;  %v4850_v37 = vsub.f32 1.0, %v4834_v55  ;;  %v4835_v33 = vmul.f32 %v8543_v15, %v4755_v29  ;;  %v4531_v10 = vsel %vm4515_vm6, 1.0, %v11019_v2 }
 0xf2c   : > { %v4865_v63 = vmul.f32 %v4849_v43, %v10199_v17  ;;  %v4692_v56 = vmul.f32 %v10228_v36, %v4676_v49  ;;  %8548 = vrcp.f32 %v4584_v16  ;;  %v4725_v18 = vmul.f32 %v10235_v44, %v4709_v61 }
 0xf2d   : > { %v4880_v31 = vadd.f32 1.0, %v4864_v7  ;;  %v4866_v22 = vmul.f32 %v4850_v37, %v10211_v25  ;;  %v4851_v12 = vsub.f32 1.0, %v4835_v33  ;;  %v4694_v17 = vmul.f32 %v10246_v60, %v4678_v42 }
 0xf2e   : > { %v4808_v9 = vmul.f32 1.442695, %v10222_v62  ;;  %v4790_v15 = vmul.f32 %v4774_v32, %v10165_v45  ;;  %v4631_v50 = vmul.f32 1.0614054, %v10267_v21  ;;  %v4881_v27 = vadd.f32 1.0, %v4865_v63 }
 0xf2f   : > { %v4882_v24 = vadd.f32 1.0, %v4866_v22  ;;  %v4867_v8 = vmul.f32 %v4851_v12, %v4531_v10  ;;  %v4814_v43 = vmul.f32 1.442695, %v4791_v48  ;;  %v4708_v25 = vadd.f32 -0.28449672, %v4692_v56  ;;  %v8547_v48 = vpop.eup %8546 }
 0xf30   : > { %v4741_v49 = vadd.f32 0.2548296, %v4725_v18  ;;  %v4647_v47 = vadd.f32 -1.4531521, %v4631_v50  ;;  %v4896_v19 = vmul.f32 %v4880_v31, %v10148_v59  ;;  %v4710_v7 = vadd.f32 -0.28449672, %v4694_v17 }
 0xf31   : > { %v4898_v42 = vmul.f32 %v4882_v24, %v10158_v4  ;;  %v4883_v62 = vadd.f32 1.0, %v4867_v8  ;;  %v4812_v45 = vmul.f32 1.442695, %v4790_v15  ;;  %v10287_v55 = vmul.f32 0.70710677, %v10281_v40 }
 0xf32   : > { %v4663_v32 = vmul.f32 %v10267_v21, %v4647_v47  ;;  %v4897_v1 = vmul.f32 %v4881_v27, %v10156_v30  ;;  %8550 = vpow2.f32 %v4808_v9  ;;  %v4757_v16 = vmul.f32 %v10235_v44, %v4741_v49 }
 0xf33   : > { %v4912_v29 = vpack.c.bf16 %v4898_v42, %v4896_v19  ;;  %v4899_v3 = vmul.f32 %v4883_v62, %v10180_v5  ;;  %v4724_v4 = vmul.f32 %v10228_v36, %v4708_v25  ;;  %v4726_v37 = vmul.f32 %v10246_v60, %v4710_v7 }
 0xf34   : > { %v4679_v59 = vadd.f32 1.4214138, %v4663_v32  ;;  %8552 = vpow2.f32 %v4814_v43  ;;  %v10298_v30 = vand.u32 2147483647, %v10287_v55  ;;  %v10303_v44 = vadd.f32 %v10177_v11, %v10110_v14 }
 0xf35   : > { %v4913_v63 = vpack.c.bf16 %v4899_v3, %v4897_v1  ;;  %8554 = vpow2.f32 %v4812_v45  ;;  %v10307_v31 = vmul.f32 0.5, %v10128_v39  ;;  %v4837_v10 = vmul.f32 %v8547_v48, %v4757_v16 }
 0xf36   : > { %v10294_v33 = vpop.eup %8548  ;;  %v4695_v61 = vmul.f32 %v10267_v21, %v4679_v59  ;;  %v4569_v22 = vmul.f32 0.3275911, %v10298_v30  ;;  %v4740_v12 = vadd.f32 0.2548296, %v4724_v4  ;;  %v4742_v18 = vadd.f32 0.2548296, %v4726_v37 }
 0xf37   : > { %v4632_v5 = vmul.f32 1.0614054, %v10294_v33  ;;  %6889 = vmatprep.mubr.msk.bf16.mxu0 %vm4016_vm1, %v4913_v63  ;;  %v4485_v9 = vmul.f32 0.5, %v10131_v26  ;;  %v10316_v50 = vmul.f32 0.70710677, %v10303_v44  ;;  %v10320_v27 = vadd.f32 %v10182_v0, %v10112_v53 }
 0xf38   : > { %v4711_v56 = vadd.f32 -0.28449672, %v4695_v61  ;;  %5061 = vmatmul.mubr.bf16.vlgmr.msra.gmra.mrb[40].mxu0 %v4912_v29  ;;  %v4585_v15 = vadd.f32 1.0, %v4569_v22  ;;  %v4853_v24 = vsub.f32 1.0, %v4837_v10  ;;  %v4776_v43 = vsub.f32 0.0, %v10257_v41 }
 0xf39   : > { %v4648_v17 = vadd.f32 -1.4531521, %v4632_v5  ;;  %v4756_v26 = vmul.f32 %v10228_v36, %v4740_v12  ;;  %v10325_v25 = vmul.f32 0.5, %v10134_v51  ;;  %v4758_v6 = vmul.f32 %v10246_v60, %v4742_v18 }
 0xf3a   : > { %v4727_v11 = vmul.f32 %v10267_v21, %v4711_v56  ;;  %8556 = vrcp.f32 %v4585_v15  ;;  %v10330_v49 = vadd.f32 %v10205_v13, %v10110_v14  ;;  %v4532_v0 = vsel %vm4516_vm7, 1.0, %v11019_v2 }
 0xf3b   : > { %v4664_v39 = vmul.f32 %v10294_v33, %v4648_v17  ;;  %v4533_v19 = vsel %vm4517_vm8, 1.0, %v11019_v2  ;;  %v4554_v36 = vand.u32 2147483647, %v10316_v50  ;;  %v10341_v13 = vmul.f32 0.70710677, %v10320_v27 }
 0xf3c   : > { %v4743_v8 = vadd.f32 0.2548296, %v4727_v11  ;;  %v8551_v47 = vpop.eup %8550  ;;  %v4869_v7 = vmul.f32 %v4853_v24, %v4533_v19  ;;  %v4792_v58 = vmul.f32 %v4776_v43, %v10257_v41  ;;  %v10346_v3 = vmul.f32 0.70710677, %v10330_v49 }
 0xf3d   : > { %v4680_v51 = vadd.f32 1.4214138, %v4664_v39  ;;  %v4570_v32 = vmul.f32 0.3275911, %v4554_v36  ;;  %v4836_v1 = vmul.f32 %v8551_v47, %v4756_v26  ;;  %v10351_v59 = vadd.f32 %v10216_v20, %v10112_v53 }
 0xf3e   : > { %v4759_v42 = vmul.f32 %v10267_v21, %v4743_v8  ;;  %v8553_v62 = vpop.eup %8552  ;;  %v4555_v21 = vand.u32 2147483647, %v10341_v13  ;;  %v4535_v41 = vsel %vm4519_vm10, 1.0, %v11019_v2  ;;  %v4777_v4 = vsub.f32 0.0, %v10298_v30 }
 0xf3f   : > { %v8555_v60 = vpop.eup %8554  ;;  %v4586_v16 = vadd.f32 1.0, %v4570_v32  ;;  %v4696_v63 = vmul.f32 %v10294_v33, %v4680_v51  ;;  %v4885_v61 = vadd.f32 1.0, %v4869_v7  ;;  %v4816_v10 = vmul.f32 1.442695, %v4792_v58 }
 0xf40   : > { %v4839_v45 = vmul.f32 %v8553_v62, %v4759_v42  ;;  %v4838_v29 = vmul.f32 %v8555_v60, %v4758_v6  ;;  %v4571_v37 = vmul.f32 0.3275911, %v4555_v21  ;;  %v4852_v56 = vsub.f32 1.0, %v4836_v1 }
 0xf41   : > { %8558 = vrcp.f32 %v4586_v16  ;;  %v10359_v18 = vand.u32 2147483647, %v10346_v3  ;;  %v4778_v11 = vsub.f32 0.0, %v4554_v36  ;;  %v10365_v15 = vmul.f32 0.70710677, %v10351_v59 }
 0xf42   : > { %v4855_v48 = vsub.f32 1.0, %v4839_v45  ;;  %v4854_v22 = vsub.f32 1.0, %v4838_v29  ;;  %v4587_v12 = vadd.f32 1.0, %v4571_v37  ;;  %v4712_v39 = vadd.f32 -0.28449672, %v4696_v63 }
 0xf43   : > { %v4793_v8 = vmul.f32 %v4777_v4, %v10298_v30  ;;  %v4901_v43 = vmul.f32 %v4885_v61, %v4485_v9  ;;  %v4572_v6 = vmul.f32 0.3275911, %v10359_v18  ;;  %v4868_v47 = vmul.f32 %v4852_v56, %v4532_v0 }
 0xf44   : > { %v4871_v5 = vmul.f32 %v4855_v48, %v4535_v41  ;;  %v10361_v20 = vpop.eup %8556  ;;  %8560 = vrcp.f32 %v4587_v12  ;;  %v4870_v19 = vmul.f32 %v4854_v22, %v4534_v57  ;;  %v4794_v62 = vmul.f32 %v4778_v11, %v4554_v36 }
 0xf45   : > { %v4633_v24 = vmul.f32 1.0614054, %v10361_v20  ;;  %8562 = vpow2.f32 %v4816_v10  ;;  %v4588_v51 = vadd.f32 1.0, %v4572_v6  ;;  %v10372_v60 = vand.u32 2147483647, %v10365_v15 }
 0xf46   : > { %v4887_v17 = vadd.f32 1.0, %v4871_v5  ;;  %v4728_v7 = vmul.f32 %v10294_v33, %v4712_v39  ;;  %v4818_v9 = vmul.f32 1.442695, %v4793_v8  ;;  %v10378_v45 = vadd.f32 %v10219_v23, %v10110_v14 }
 0xf47   : > { %v4649_v46 = vadd.f32 -1.4531521, %v4633_v24  ;;  %v10381_v0 = vmul.f32 0.5, %v10226_v52  ;;  %v4779_v58 = vsub.f32 0.0, %v4555_v21  ;;  %8564 = vrcp.f32 %v4588_v51 }
 0xf48   : > { %v4903_v26 = vmul.f32 %v4887_v17, %v4487_v34  ;;  %v4573_v36 = vmul.f32 0.3275911, %v10372_v60  ;;  %v4886_v32 = vadd.f32 1.0, %v4870_v19  ;;  %v10386_v29 = vmul.f32 0.70710677, %v10378_v45 }
 0xf49   : > { %v4665_v30 = vmul.f32 %v10361_v20, %v4649_v46  ;;  %v10390_v57 = vadd.f32 %v10233_v28, %v10112_v53  ;;  %v4884_v23 = vadd.f32 1.0, %v4868_v47  ;;  %v10397_v52 = vsel %vm4520_vm11, 1.0, %v11019_v2 }
 0xf4a   : > { %v4915_v42 = vpack.c.bf16 %v4903_v26, %v4901_v43  ;;  %v4820_v48 = vmul.f32 1.442695, %v4794_v62  ;;  %v4589_v16 = vadd.f32 1.0, %v4573_v36  ;;  %v4744_v41 = vadd.f32 0.2548296, %v4728_v7 }
 0xf4b   : > { %v4681_v1 = vadd.f32 1.4214138, %v4665_v30  ;;  %v10392_v14 = vpop.eup %8558  ;;  %8566 = vpow2.f32 %v4818_v9  ;;  %v10402_v37 = vmul.f32 0.5, %v10281_v40  ;;  %v4795_v53 = vmul.f32 %v4779_v58, %v4555_v21 }
 0xf4c   : > { %6890 = vmatprep.mubr.msk.bf16.mxu0 %vm4016_vm1, %v4915_v42  ;;  %v4634_v4 = vmul.f32 1.0614054, %v10392_v14  ;;  %8568 = vrcp.f32 %v4589_v16  ;;  %v10405_v28 = vand.u32 2147483647, %v10386_v29  ;;  %v4902_v38 = vmul.f32 %v4886_v32, %v10325_v25 }
 0xf4d   : > { %v4697_v63 = vmul.f32 %v10361_v20, %v4681_v1  ;;  %v10411_v56 = vmul.f32 0.70710677, %v10390_v57  ;;  %v4900_v22 = vmul.f32 %v4884_v23, %v10307_v31  ;;  %8570 = vpow2.f32 %v4820_v48 }
 0xf4e   : > { %v10407_v61 = vpop.eup %8560  ;;  %v4650_v10 = vadd.f32 -1.4531521, %v4634_v4  ;;  %v4574_v21 = vmul.f32 0.3275911, %v10405_v28  ;;  %v4760_v34 = vmul.f32 %v10294_v33, %v4744_v41  ;;  %v4822_v24 = vmul.f32 1.442695, %v4795_v53 }
 0xf4f   : > { %v4713_v5 = vadd.f32 -0.28449672, %v4697_v63  ;;  %v4635_v40 = vmul.f32 1.0614054, %v10407_v61  ;;  %v8563_v12 = vpop.eup %8562  ;;  %v10420_v25 = vand.u32 2147483647, %v10411_v56  ;;  %v4914_v47 = vpack.c.bf16 %v4902_v38, %v4900_v22 }
 0xf50   : > { %v4666_v11 = vmul.f32 %v10392_v14, %v4650_v10  ;;  %v4780_v8 = vsub.f32 0.0, %v10359_v18  ;;  %v4590_v31 = vadd.f32 1.0, %v4574_v21  ;;  %vm4521_vm12 = vcmp.ge.f32.partialorder %v10287_v55, 0.0 }
 0xf51   : > { %v4729_v17 = vmul.f32 %v10361_v20, %v4713_v5  ;;  %v4651_v39 = vadd.f32 -1.4531521, %v4635_v40  ;;  %v4575_v6 = vmul.f32 0.3275911, %v10420_v25  ;;  %v10424_v19 = vpop.eup %8564  ;;  %v4781_v46 = vsub.f32 0.0, %v10372_v60  ;;  %5069 = vmatmul.mubr.bf16.gmra.mrb[44].mxu0 %v4914_v47 }
 0xf52   : > { %v4682_v26 = vadd.f32 1.4214138, %v4666_v11  ;;  %8572 = vrcp.f32 %v4590_v31  ;;  %v4636_v51 = vmul.f32 1.0614054, %v10424_v19  ;;  %v4840_v30 = vmul.f32 %v8563_v12, %v4760_v34 }
 0xf53   : > { %v4745_v43 = vadd.f32 0.2548296, %v4729_v17  ;;  %v4667_v33 = vmul.f32 %v10407_v61, %v4651_v39  ;;  %v4591_v7 = vadd.f32 1.0, %v4575_v6  ;;  %8574 = vpow2.f32 %v4822_v24 }
 0xf54   : > { %v4698_v62 = vmul.f32 %v10392_v14, %v4682_v26  ;;  %v4796_v58 = vmul.f32 %v4780_v8, %v10359_v18  ;;  %v4537_v55 = vsel %vm4521_vm12, 1.0, %v11019_v2  ;;  %v4652_v1 = vadd.f32 -1.4531521, %v4636_v51 }
 0xf55   : > { %v4761_v42 = vmul.f32 %v10361_v20, %v4745_v43  ;;  %v4683_v9 = vadd.f32 1.4214138, %v4667_v33  ;;  %v8567_v36 = vpop.eup %8566  ;;  %8576 = vrcp.f32 %v4591_v7  ;;  %v10437_v20 = vmul.f32 0.5, %v10303_v44 }
 0xf56   : > { %v4714_v32 = vadd.f32 -0.28449672, %v4698_v62  ;;  %v10434_v23 = vpop.eup %8568  ;;  %vm4522_vm13 = vcmp.ge.f32.partialorder %v10316_v50, 0.0  ;;  %v4797_v16 = vmul.f32 %v4781_v46, %v10372_v60  ;;  %v4668_v63 = vmul.f32 %v10424_v19, %v4652_v1 }
 0xf57   : > { %v4699_v48 = vmul.f32 %v10407_v61, %v4683_v9  ;;  %v4841_v41 = vmul.f32 %v8567_v36, %v4761_v42  ;;  %v4637_v4 = vmul.f32 1.0614054, %v10434_v23  ;;  %v8571_v53 = vpop.eup %8570  ;;  %v4856_v38 = vsub.f32 1.0, %v4840_v30 }
 0xf58   : > { %v4730_v18 = vmul.f32 %v10392_v14, %v4714_v32  ;;  %v4824_v10 = vmul.f32 1.442695, %v4796_v58  ;;  %v4782_v44 = vsub.f32 0.0, %v10405_v28  ;;  %v4684_v40 = vadd.f32 1.4214138, %v4668_v63 }
 0xf59   : > { %v4715_v5 = vadd.f32 -0.28449672, %v4699_v48  ;;  %v4653_v50 = vadd.f32 -1.4531521, %v4637_v4  ;;  %v4538_v21 = vsel %vm4522_vm13, 1.0, %v11019_v2  ;;  %v4783_v34 = vsub.f32 0.0, %v10420_v25 }
 0xf5a   : > { %v4746_v22 = vadd.f32 0.2548296, %v4730_v18  ;;  %v4826_v12 = vmul.f32 1.442695, %v4797_v16  ;;  %v4857_v17 = vsub.f32 1.0, %v4841_v41  ;;  %v4700_v39 = vmul.f32 %v10424_v19, %v4684_v40 }
 0xf5b   : > { %v4731_v60 = vmul.f32 %v10407_v61, %v4715_v5  ;;  %v4669_v24 = vmul.f32 %v10434_v23, %v4653_v50  ;;  %v4872_v31 = vmul.f32 %v4856_v38, %v10397_v52  ;;  %vm4523_vm14 = vcmp.ge.f32.partialorder %v10341_v13, 0.0 }
 0xf5c   : > { %v4762_v11 = vmul.f32 %v10392_v14, %v4746_v22  ;;  %v10452_v8 = vpop.eup %8572  ;;  %8578 = vpow2.f32 %v4824_v10  ;;  %v4716_v6 = vadd.f32 -0.28449672, %v4700_v39  ;;  %v4798_v33 = vmul.f32 %v4782_v44, %v10405_v28 }
 0xf5d   : > { %v4747_v43 = vadd.f32 0.2548296, %v4731_v60  ;;  %v4685_v47 = vadd.f32 1.4214138, %v4669_v24  ;;  %v8575_v46 = vpop.eup %8574  ;;  %8580 = vpow2.f32 %v4826_v12  ;;  %v4638_v42 = vmul.f32 1.0614054, %v10452_v8 }
 0xf5e   : > { %v4842_v26 = vmul.f32 %v8571_v53, %v4762_v11  ;;  %v4799_v62 = vmul.f32 %v4783_v34, %v10420_v25  ;;  %v4873_v7 = vmul.f32 %v4857_v17, %v4537_v55  ;;  %v4732_v30 = vmul.f32 %v10424_v19, %v4716_v6 }
 0xf5f   : > { %v4763_v14 = vmul.f32 %v10407_v61, %v4747_v43  ;;  %v8577_v51 = vpop.eup %8576  ;;  %v4701_v9 = vmul.f32 %v10434_v23, %v4685_v47  ;;  %v4888_v58 = vadd.f32 1.0, %v4872_v31  ;;  %v4654_v32 = vadd.f32 -1.4531521, %v4638_v42 }
 0xf60   : > { %v4858_v52 = vsub.f32 1.0, %v4842_v26  ;;  %v4639_v1 = vmul.f32 1.0614054, %v8577_v51  ;;  %v4748_v48 = vadd.f32 0.2548296, %v4732_v30  ;;  %v4539_v41 = vsel %vm4523_vm14, 1.0, %v11019_v2 }
 0xf61   : > { %v4843_v36 = vmul.f32 %v8575_v46, %v4763_v14  ;;  %v4717_v16 = vadd.f32 -0.28449672, %v4701_v9  ;;  %v4828_v61 = vmul.f32 1.442695, %v4798_v33  ;;  %v4670_v55 = vmul.f32 %v10452_v8, %v4654_v32 }
 0xf62   : > { %v4874_v28 = vmul.f32 %v4858_v52, %v4538_v21  ;;  %v4655_v18 = vadd.f32 -1.4531521, %v4639_v1  ;;  %v4889_v63 = vadd.f32 1.0, %v4873_v7  ;;  %v4830_v38 = vmul.f32 1.442695, %v4799_v62 }
 0xf63   : > { %v4859_v25 = vsub.f32 1.0, %v4843_v36  ;;  %v4733_v53 = vmul.f32 %v10434_v23, %v4717_v16  ;;  %v4764_v10 = vmul.f32 %v10424_v19, %v4748_v48  ;;  %v4686_v44 = vadd.f32 1.4214138, %v4670_v55 }
 0xf64   : > { %v4890_v4 = vadd.f32 1.0, %v4874_v28  ;;  %v4671_v22 = vmul.f32 %v8577_v51, %v4655_v18  ;;  %v4904_v40 = vmul.f32 %v4888_v58, %v10381_v0  ;;  %8582 = vpow2.f32 %v4828_v61 }
 0xf65   : > { %v4875_v5 = vmul.f32 %v4859_v25, %v4539_v41  ;;  %v4749_v13 = vadd.f32 0.2548296, %v4733_v53  ;;  %v4491_v60 = vmul.f32 0.5, %v10320_v27  ;;  %v4702_v34 = vmul.f32 %v10452_v8, %v4686_v44 }
 0xf66   : > { %v4906_v50 = vmul.f32 %v4890_v4, %v10437_v20  ;;  %v8579_v21 = vpop.eup %8578  ;;  %v4687_v17 = vadd.f32 1.4214138, %v4671_v22  ;;  %v4905_v11 = vmul.f32 %v4889_v63, %v10402_v37  ;;  %8584 = vpow2.f32 %v4830_v38 }
 0xf67   : > { %v4891_v12 = vadd.f32 1.0, %v4875_v5  ;;  %v4765_v39 = vmul.f32 %v10434_v23, %v4749_v13  ;;  %v8581_v24 = vpop.eup %8580  ;;  %v4844_v0 = vmul.f32 %v8579_v21, %v4764_v10  ;;  %v4718_v43 = vadd.f32 -0.28449672, %v4702_v34  ;;  %v11020_v13 = vld [vmem:[#allocation7_spill] sm:$0xff]  ;;  %v11021_v34 = vld [vmem:[#allocation8_spill] sm:$0xff] }
 0xf68   : > { %v4916_v19 = vpack.c.bf16 %v4906_v50, %v4904_v40  ;;  %v4703_v20 = vmul.f32 %v8577_v51, %v4687_v17  ;;  %vm4524_vm15 = vcmp.ge.f32.partialorder %v10346_v3, 0.0  ;;  %vm4525_vm2 = vcmp.ge.f32.partialorder %v10365_v15, 0.0 }
 0xf69   : > { %v4907_v31 = vmul.f32 %v4891_v12, %v4491_v60  ;;  %v4845_v6 = vmul.f32 %v8581_v24, %v4765_v39  ;;  %v4734_v47 = vmul.f32 %v10452_v8, %v4718_v43  ;;  %v4860_v33 = vsub.f32 1.0, %v4844_v0  ;;  %v11023_v43 = vld [vmem:[#allocation10_spill] sm:$0xff] }
 0xf6a   : > { %v4719_v27 = vadd.f32 -0.28449672, %v4703_v20  ;;  %v4540_v7 = vsel %vm4524_vm15, 1.0, %v11019_v2  ;;  %vm4526_vm3 = vcmp.ge.f32.partialorder %v10386_v29, 0.0  ;;  %v4541_v58 = vsel %vm4525_vm2, 1.0, %v11019_v2 }
 0xf6b   : > { %v4917_v26 = vpack.c.bf16 %v4907_v31, %v4905_v11  ;;  %v4750_v46 = vadd.f32 0.2548296, %v4734_v47  ;;  %v4861_v37 = vsub.f32 1.0, %v4845_v6  ;;  %v4876_v52 = vmul.f32 %v4860_v33, %v4540_v7 }
 0xf6c   : > { %v4735_v14 = vmul.f32 %v8577_v51, %v4719_v27  ;;  %vm4527_vm4 = vcmp.ge.f32.partialorder %v10411_v56, 0.0  ;;  %v4542_v1 = vsel %vm4526_vm3, 1.0, %v11019_v2  ;;  %v4492_v16 = vmul.f32 0.5, %v10330_v49  ;;  %v8595_v49 = vld [vmem:[%s8858_s15] sm:$0xff] }
 0xf6d   : > { %6891 = vmatprep.mubr.msk.bf16.mxu0 %vm4016_vm1, %v4917_v26  ;;  %v4766_v23 = vmul.f32 %v10452_v8, %v4750_v46  ;;  %v4877_v36 = vmul.f32 %v4861_v37, %v4541_v58  ;;  %v4892_v8 = vadd.f32 1.0, %v4876_v52  ;;  %v4543_v61 = vsel %vm4527_vm4, 1.0, %v11019_v2  ;;  %v11024_v27 = vld [vmem:[#allocation11_spill] sm:$0xff] }
 0xf6e   : > { %5077 = vmatmul.mubr.bf16.gmra.mrb[48].mxu0 %v4916_v19  ;;  %v4751_v42 = vadd.f32 0.2548296, %v4735_v14  ;;  %v8583_v62 = vpop.eup %8582  ;;  %v4493_v55 = vmul.f32 0.5, %v10351_v59  ;;  %v4495_v63 = vmul.f32 0.5, %v10390_v57  ;;  %v5103_v2 = vsub.s32 5, %v9411_v35  ;;  %v11022_v19 = vld [vmem:[#allocation9_spill] sm:$0xff] }
 0xf6f   : > { %v4846_v30 = vmul.f32 %v8583_v62, %v4766_v23  ;;  %v4893_v29 = vadd.f32 1.0, %v4877_v36  ;;  %v4908_v18 = vmul.f32 %v4892_v8, %v4492_v16  ;;  %v11025_v23 = vld [vmem:[#allocation12_spill] sm:$0xff]  ;;  %v8599_v8 = vld [vmem:[%s10980_s9 + $0x40] sm:$0xff] (!%p6893_p5)  }
 0xf70   : > { %v4767_v3 = vmul.f32 %v8577_v51, %v4751_v42  ;;  %v8585_v9 = vpop.eup %8584  ;;  %v4494_v51 = vmul.f32 0.5, %v10378_v45  ;;  %v5104_v45 = vrot.slane %v8595_v49, %v5103_v2  ;;  %v8613_v2 = vld [vmem:[%s10980_s9 + $0x78] sm:$0xff] (!%p6893_p5)  }
 0xf71   : > { %v4862_v32 = vsub.f32 1.0, %v4846_v30  ;;  %v4909_v53 = vmul.f32 %v4893_v29, %v4493_v55  ;;  %v11026_v30 = vld [vmem:[#allocation13_spill] sm:$0xff]  ;;  %v8597_v29 = vld [vmem:[%s10979_s8 + $0x8] ss:$0 sps:$4 sm:$0x33] (!%p6893_p5)  }
 0xf72   : > { %v4847_v15 = vmul.f32 %v8585_v9, %v4767_v3  ;;  %v8600_v55 = vld [vmem:[%s10980_s9 + $0x8] sm:$0xff] (!%p6893_p5)  }
 0xf73   : > { %v4878_v28 = vmul.f32 %v4862_v32, %v4542_v1  ;;  %v8735_v1 = vmov (!%p6893_p5), 0.0  }
 0xf74   : > { %v4863_v48 = vsub.f32 1.0, %v4847_v15  ;;  %v8596_v15 = vld [vmem:[%s10979_s8] sm:$0xff] (!%p6893_p5)   ;;  %7778 = vmatprep.subr.bf16.mxu1 (!%p6893_p5), %v8735_v1  ;;  %7794 = vmatprep.mubr.msk.bf16.mxu1 (!%p6893_p5), %vm8736_vm5, %v8735_v1 }
 0xf75   : > { %v4894_v41 = vadd.f32 1.0, %v4878_v28  ;;  %7779 = vmatpush3.bf16.msra.mxu1 (!%p6893_p5), %v8599_v8  ;;  %v8648_v8 = vld [vmem:[%s10980_s9 + $0x1c8] sm:$0xff] (!%p6893_p5)  }
 0xf76   : > { %v4879_v25 = vmul.f32 %v4863_v48, %v4543_v61  ;;  %v8601_v48 = vld [vmem:[%s10980_s9 + $0x48] sm:$0xff] (!%p6893_p5)   ;;  %7780 = vmatprep.subr.bf16.mxu1 (!%p6893_p5), %v8735_v1  ;;  %v8603_v61 = vld [vmem:[%s10980_s9 + $0x50] sm:$0xff] (!%p6893_p5)  }
 0xf77   : > { %v4910_v56 = vmul.f32 %v4894_v41, %v4494_v51  ;;  %v8605_v51 = vld [vmem:[%s10980_s9 + $0x58] sm:$0xff] (!%p6893_p5)   ;;  %v8598_v41 = vld [vmem:[%s10980_s9] sm:$0xff] (!%p6893_p5)  }
 0xf78   : > { %v4895_v4 = vadd.f32 1.0, %v4879_v25  ;;  %v8607_v25 = vld [vmem:[%s10980_s9 + $0x60] sm:$0xff] (!%p6893_p5)  }
 0xf79   : > { %v4918_v5 = vpack.c.bf16 %v4910_v56, %v4908_v18  ;;  %7781 = vmatpush3.bf16.msra.mxu1 (!%p6893_p5), %v8601_v48  ;;  %v8609_v18 = vld [vmem:[%s10980_s9 + $0x68] sm:$0xff] (!%p6893_p5)   ;;  %v8602_v56 = vld [vmem:[%s10980_s9 + $0x10] sm:$0xff] (!%p6893_p5)  }
 0xf7a   : > { %v4911_v38 = vmul.f32 %v4895_v4, %v4495_v63  ;;  %7782 = vmatprep.subr.bf16.mxu1 (!%p6893_p5), %v8735_v1  ;;  %v8611_v63 = vld [vmem:[%s10980_s9 + $0x70] sm:$0xff] (!%p6893_p5)   ;;  %v8604_v4 = vld [vmem:[%s10980_s9 + $0x18] sm:$0xff] (!%p6893_p5)  }
 0xf7b   : > { %v8650_v48 = vld [vmem:[%s10980_s9 + $0x1d0] sm:$0xff] (!%p6893_p5)  }
 0xf7c   : > { %v4919_v10 = vpack.c.bf16 %v4911_v38, %v4909_v53  ;;  %v8606_v53 = vld [vmem:[%s10980_s9 + $0x20] sm:$0xff] (!%p6893_p5)   ;;  %v8608_v38 = vld [vmem:[%s10980_s9 + $0x28] sm:$0xff] (!%p6893_p5)  }
 0xf7d   : > { %7783 = vmatpush3.bf16.msra.mxu1 (!%p6893_p5), %v8603_v61  ;;  %v8652_v61 = vld [vmem:[%s10980_s9 + $0x1d8] sm:$0xff] (!%p6893_p5)  }
 0xf7e   : > { %6892 = vmatprep.mubr.msk.bf16.mxu0 %vm4016_vm1, %v4919_v10  ;;  %7784 = vmatprep.subr.bf16.mxu1 (!%p6893_p5), %v8735_v1  ;;  %v8612_v10 = vld [vmem:[%s10980_s9 + $0x38] sm:$0xff] (!%p6893_p5)  }
 0xf7f   : > { %5085 = vmatmul.mubr.bf16.gmra.mrb[52].mxu0 %v4918_v5  ;;  %v8610_v5 = vld [vmem:[%s10980_s9 + $0x30] sm:$0xff] (!%p6893_p5)  }
 0xf80   : > { %7774 = vmatprep.mubr.msk.bf16.mxu0 (!%p6893_p5), %vm4016_vm1, %v8596_v15  ;;  %v8647_v15 = vld [vmem:[%s10980_s9 + $0x180] sm:$0xff] (!%p6893_p5)  }
 0xf81   : > { %7785 = vmatpush3.bf16.msra.mxu1 (!%p6893_p5), %v8605_v51  ;;  %v8654_v51 = vld [vmem:[%s10980_s9 + $0x1e0] sm:$0xff] (!%p6893_p5)  }
 0xf82   : > { %7786 = vmatprep.subr.bf16.mxu1 (!%p6893_p5), %v8735_v1 }
 0xf85   : > { %7787 = vmatpush3.bf16.msra.mxu1 (!%p6893_p5), %v8607_v25  ;;  %v8656_v25 = vld [vmem:[%s10980_s9 + $0x1e8] sm:$0xff] (!%p6893_p5)  }
 0xf86   : > { %7788 = vmatprep.subr.bf16.mxu1 (!%p6893_p5), %v8735_v1 }
 0xf89   : > { %7789 = vmatpush3.bf16.msra.mxu1 (!%p6893_p5), %v8609_v18  ;;  %v8658_v18 = vld [vmem:[%s10980_s9 + $0x1f0] sm:$0xff] (!%p6893_p5)  }
 0xf8a   : > { %7790 = vmatprep.subr.bf16.mxu1 (!%p6893_p5), %v8735_v1 }
 0xf8d   : > { %7791 = vmatpush3.bf16.msra.mxu1 (!%p6893_p5), %v8611_v63  ;;  %v8660_v63 = vld [vmem:[%s10980_s9 + $0x1f8] sm:$0xff] (!%p6893_p5)  }
 0xf8e   : > { %7792 = vmatprep.subr.bf16.mxu1 (!%p6893_p5), %v8735_v1 }
 0xf91   : > { %7793 = vmatpush3.bf16.msra.mxu1 (!%p6893_p5), %v8613_v2  ;;  %v8664_v2 = vld [vmem:[%s10980_s9 + $0x248] sm:$0xff] (!%p6893_p5)  }
 0xf92   : > { %7818 = vmatprep.subr.bf16.mxu1 (!%p6893_p5), %v8735_v1 }
0x100b   : > { %v5062_v44 = vpop.f32.mrb[40].mxu0 }
0x100c   : > { %v5093_v22 = vadd.f32 %v5062_v44, %v9989_v54  ;;  %v5064_v59 = vpop.f32.mrb[41].mxu0  ;;  %v8614_v44 = vld [vmem:[%s10980_s9 + $0xc0] sm:$0xff] (!%p6893_p5)  }
0x100d   : > { %v5065_v40 = vpop.f32.mrb[42].mxu0 }
0x100e   : > { %v5105_v50 = vadd.f32 %v5104_v45, %v5093_v22  ;;  %v5094_v57 = vadd.f32 %v5065_v40, %v11020_v13  ;;  %v5067_v21 = vpop.f32.mrb[43].mxu0 }
0x100f   : > { %v8617_v21 = vld [vmem:[%s10980_s9 + $0x88] sm:$0xff] (!%p6893_p5)  }
0x1010   : > { %5113 = vst [vmem:[#allocation2] sm:$0xff] %v5105_v50  ;;  %v5106_v60 = vadd.f32 %v5104_v45, %v5094_v57  ;;  %v8616_v57 = vld [vmem:[%s10980_s9 + $0xc8] sm:$0xff] (!%p6893_p5)  }
0x1012   : > { %5114 = vst [vmem:[#allocation2 + $0x8] sm:$0xff] %v5106_v60  ;;  %v5128_v36 = vpack.c.bf16 (!%p6893_p5), %v5106_v60, %v5105_v50  ;;  %v8615_v50 = vld [vmem:[%s10980_s9 + $0x80] sm:$0xff] (!%p6893_p5)   ;;  %v8618_v60 = vld [vmem:[%s10980_s9 + $0xd0] sm:$0xff] (!%p6893_p5)  }
0x1014   : > { %7766 = vmatprep.subr.bf16.mxu0 (!%p6893_p5), %v5128_v36 }
0x1015   : > { %7767 = vmatpush3.bf16.msra.mxu0 (!%p6893_p5), %v5128_v36  ;;  %v8646_v36 = vld [vmem:[%s10980_s9 + $0x1c0] sm:$0xff] (!%p6893_p5)  }
0x1024   : > { %v5070_v12 = vpop.f32.mrb[44].mxu0 }
0x1025   : > { %v5095_v17 = vadd.f32 %v5070_v12, %v11021_v34  ;;  %v5072_v11 = vpop.f32.mrb[45].mxu0  ;;  %v8619_v12 = vld [vmem:[%s10980_s9 + $0x90] sm:$0xff] (!%p6893_p5)   ;;  %v8620_v34 = vld [vmem:[%s10980_s9 + $0xd8] sm:$0xff] (!%p6893_p5)  }
0x1026   : > { %v5073_v39 = vpop.f32.mrb[46].mxu0  ;;  %v8622_v11 = vld [vmem:[%s10980_s9 + $0xe0] sm:$0xff] (!%p6893_p5)  }
0x1027   : > { %v5107_v35 = vadd.f32 %v5104_v45, %v5095_v17  ;;  %v5096_v24 = vadd.f32 %v5073_v39, %v11022_v19  ;;  %v5075_v31 = vpop.f32.mrb[47].mxu0  ;;  %v8621_v17 = vld [vmem:[%s10980_s9 + $0x98] sm:$0xff] (!%p6893_p5)   ;;  %v8623_v39 = vld [vmem:[%s10980_s9 + $0xa0] sm:$0xff] (!%p6893_p5)   ;;  %v8625_v19 = vld [vmem:[%s10980_s9 + $0xa8] sm:$0xff] (!%p6893_p5)  }
0x1028   : > { %v8627_v31 = vld [vmem:[%s10980_s9 + $0xb0] sm:$0xff] (!%p6893_p5)  }
0x1029   : > { %5115 = vst [vmem:[#allocation2 + $0x10] sm:$0xff] %v5107_v35  ;;  %v5108_v54 = vadd.f32 %v5104_v45, %v5096_v24  ;;  %v8626_v24 = vld [vmem:[%s10980_s9 + $0xf0] sm:$0xff] (!%p6893_p5)  }
0x102b   : > { %5116 = vst [vmem:[#allocation2 + $0x18] sm:$0xff] %v5108_v54  ;;  %v5129_v32 = vpack.c.bf16 (!%p6893_p5), %v5108_v54, %v5107_v35  ;;  %v8624_v35 = vld [vmem:[%s10980_s9 + $0xe8] sm:$0xff] (!%p6893_p5)   ;;  %v8628_v54 = vld [vmem:[%s10980_s9 + $0xf8] sm:$0xff] (!%p6893_p5)  }
0x102d   : > { %7768 = vmatprep.subr.bf16.mxu0 (!%p6893_p5), %v5129_v32 }
0x102e   : > { %7769 = vmatpush3.bf16.msra.mxu0 (!%p6893_p5), %v5129_v32 }
0x1041   : > { %v5078_v0 = vpop.f32.mrb[48].mxu0 }
0x1042   : > { %v5097_v20 = vadd.f32 %v5078_v0, %v11023_v43  ;;  %v5080_v26 = vpop.f32.mrb[49].mxu0  ;;  %v8629_v0 = vld [vmem:[%s10980_s9 + $0xb8] sm:$0xff] (!%p6893_p5)   ;;  %v8630_v43 = vld [vmem:[%s10980_s9 + $0x140] sm:$0xff] (!%p6893_p5)  }
0x1043   : > { %v5081_v6 = vpop.f32.mrb[50].mxu0  ;;  %v8631_v26 = vld [vmem:[%s10980_s9 + $0x100] sm:$0xff] (!%p6893_p5)  }
0x1044   : > { %v5109_v47 = vadd.f32 %v5104_v45, %v5097_v20  ;;  %v5098_v33 = vadd.f32 %v5081_v6, %v11024_v27  ;;  %v5083_v46 = vpop.f32.mrb[51].mxu0  ;;  %v8633_v27 = vld [vmem:[%s10980_s9 + $0x108] sm:$0xff] (!%p6893_p5)  }
0x1045   : > { %v8635_v46 = vld [vmem:[%s10980_s9 + $0x110] sm:$0xff] (!%p6893_p5)  }
0x1046   : > { %5117 = vst [vmem:[#allocation2 + $0x20] sm:$0xff] %v5109_v47  ;;  %v5110_v14 = vadd.f32 %v5104_v45, %v5098_v33  ;;  %v8634_v33 = vld [vmem:[%s10980_s9 + $0x150] sm:$0xff] (!%p6893_p5)  }
0x1048   : > { %5118 = vst [vmem:[#allocation2 + $0x28] sm:$0xff] %v5110_v14  ;;  %v5130_v28 = vpack.c.bf16 (!%p6893_p5), %v5110_v14, %v5109_v47  ;;  %v8632_v47 = vld [vmem:[%s10980_s9 + $0x148] sm:$0xff] (!%p6893_p5)   ;;  %v8636_v14 = vld [vmem:[%s10980_s9 + $0x158] sm:$0xff] (!%p6893_p5)  }
0x104a   : > { %7770 = vmatprep.subr.bf16.mxu0 (!%p6893_p5), %v5130_v28 }
0x104b   : > { %7771 = vmatpush3.bf16.msra.mxu0 (!%p6893_p5), %v5130_v28  ;;  %v8649_v28 = vld [vmem:[%s10980_s9 + $0x188] sm:$0xff] (!%p6893_p5)  }
0x1052   : > { %v5086_v37 = vpop.f32.mrb[52].mxu0 }
0x1053   : > { %v5099_v42 = vadd.f32 %v5086_v37, %v11025_v23  ;;  %v5088_v62 = vpop.f32.mrb[53].mxu0  ;;  %5124 = sbr.rel (%p6893_p5) target bundleno = 5409 (0x1521), region = 96  ;;  %v8637_v37 = vld [vmem:[%s10980_s9 + $0x118] sm:$0xff] (!%p6893_p5)   ;;  %v8638_v23 = vld [vmem:[%s10980_s9 + $0x160] sm:$0xff] (!%p6893_p5)  }
0x1054   : > { %v5089_v7 = vpop.f32.mrb[54].mxu0  ;;  %v8640_v62 = vld [vmem:[%s10980_s9 + $0x168] sm:$0xff] (!%p6893_p5)  }
0x1055   : > { %v5111_v52 = vadd.f32 %v5104_v45, %v5099_v42  ;;  %v5100_v3 = vadd.f32 %v5089_v7, %v11026_v30  ;;  %v5091_v9 = vpop.f32.mrb[55].mxu0  ;;  %v8639_v42 = vld [vmem:[%s10980_s9 + $0x120] sm:$0xff] (!%p6893_p5)   ;;  %v8641_v7 = vld [vmem:[%s10980_s9 + $0x128] sm:$0xff] (!%p6893_p5)   ;;  %v8643_v30 = vld [vmem:[%s10980_s9 + $0x130] sm:$0xff] (!%p6893_p5)  }
0x1057   : > { %5119 = vst [vmem:[#allocation2 + $0x30] sm:$0xff] %v5111_v52  ;;  %v5112_v58 = vadd.f32 %v5104_v45, %v5100_v3  ;;  %v8644_v3 = vld [vmem:[%s10980_s9 + $0x178] sm:$0xff] (!%p6893_p5)  }
0x1059   : > { %5120 = vst [vmem:[#allocation2 + $0x38] sm:$0xff] %v5112_v58  ;;  %v5131_v16 = vpack.c.bf16 (!%p6893_p5), %v5112_v58, %v5111_v52  ;;  %v8642_v52 = vld [vmem:[%s10980_s9 + $0x170] sm:$0xff] (!%p6893_p5)   ;;  %v8645_v58 = vld [vmem:[%s10980_s9 + $0x138] sm:$0xff] (!%p6893_p5)  }
0x105b   : > { %7772 = vmatprep.subr.bf16.mxu0 %v5131_v16 }
0x105c   : > { %7773 = vmatpush3.bf16.msra.mxu0 %v5131_v16  ;;  %v8651_v16 = vld [vmem:[%s10980_s9 + $0x190] sm:$0xff]  }
0x105d   : > { %7798 = vmatprep.subr.bf16.mxu0 %v8735_v1 }
0x105f   : > { %7775 = vmatmul.mubr.msk.bf16.vlgmr.msra.gmra.mrb[0].mxu0 %vm4016_vm1, %v8597_v29  ;;  %v8653_v29 = vld [vmem:[%s10980_s9 + $0x198] sm:$0xff]  }
0x1060   : > { %7799 = vmatpush3.bf16.msra.mxu0 %v8598_v41  ;;  %7814 = vmatprep.mubr.msk.bf16.mxu0 %vm8736_vm5, %v8735_v1  ;;  %v8655_v41 = vld [vmem:[%s10980_s9 + $0x1a0] sm:$0xff]  }
0x1061   : > { %7800 = vmatprep.subr.bf16.mxu0 %v8735_v1 }
0x1064   : > { %7801 = vmatpush3.bf16.msra.mxu0 %v8600_v55  ;;  %v8657_v55 = vld [vmem:[%s10980_s9 + $0x1a8] sm:$0xff]  }
0x1065   : > { %7802 = vmatprep.subr.bf16.mxu0 %v8735_v1 }
0x1068   : > { %7803 = vmatpush3.bf16.msra.mxu0 %v8602_v56  ;;  %v8659_v56 = vld [vmem:[%s10980_s9 + $0x1b0] sm:$0xff]  }
0x1069   : > { %7804 = vmatprep.subr.bf16.mxu0 %v8735_v1 }
0x106c   : > { %7805 = vmatpush3.bf16.msra.mxu0 %v8604_v4  ;;  %v8661_v4 = vld [vmem:[%s10980_s9 + $0x1b8] sm:$0xff]  }
0x106d   : > { %7806 = vmatprep.subr.bf16.mxu0 %v8735_v1 }
0x1070   : > { %7807 = vmatpush3.bf16.msra.mxu0 %v8606_v53  ;;  %v8662_v53 = vld [vmem:[%s10980_s9 + $0x240] sm:$0xff]  }
0x1071   : > { %7808 = vmatprep.subr.bf16.mxu0 %v8735_v1 }
0x1074   : > { %7809 = vmatpush3.bf16.msra.mxu0 %v8608_v38 }
0x1075   : > { %7810 = vmatprep.subr.bf16.mxu0 %v8735_v1 }
0x1078   : > { %7811 = vmatpush3.bf16.msra.mxu0 %v8610_v5  ;;  %v8663_v5 = vld [vmem:[%s10980_s9 + $0x200] sm:$0xff]  }
0x1079   : > { %7812 = vmatprep.subr.bf16.mxu0 %v8735_v1 }
0x107c   : > { %7813 = vmatpush3.bf16.msra.mxu0 %v8612_v10 }
0x107d   : > { %7838 = vmatprep.subr.bf16.mxu0 %v8735_v1 }
0x1132   : > { %v10579_v49 = vpop.f32.mrb[0].mxu0 }
0x1133   : > { %v5180_v45 = vpop.f32.mrb[1].mxu0 }
0x1134   : > { %v10584_v22 = vpack.c.bf16 %v5180_v45, %v5180_v45  ;;  %v7777_v59 = vpop.f32.mrb[2].mxu0  ;;  %v8665_v45 = vld [vmem:[%s10980_s9 + $0x208] sm:$0xff]  }
0x1135   : > { %v10586_v40 = vpop.f32.mrb[3].mxu0  ;;  %v8668_v59 = vld [vmem:[%s10980_s9 + $0x258] sm:$0xff]  }
0x1136   : > { %7815 = vmatmul.mubr.bf16.vlgmr.msra.gmra.mrb[4].mxu0 %v10584_v22  ;;  %v5229_v13 = vrot.slane %v10584_v22, 1  ;;  %v5532_v20 = vrot.slane %v10584_v22, 3  ;;  %v5424_v6 = vrot.slane %v10584_v22, 2  ;;  %v10720_v9 = vpack.c.bf16 %v10586_v40, %v10586_v40  ;;  %v8667_v22 = vld [vmem:[%s10980_s9 + $0x210] sm:$0xff]   ;;  %v8669_v40 = vld [vmem:[%s10980_s9 + $0x218] sm:$0xff]  }
0x1137   : > { %7839 = vmatpush3.bf16.msra.mxu0 %v8614_v44  ;;  %7854 = vmatprep.mubr.msk.bf16.mxu0 %vm8736_vm5, %v8735_v1  ;;  %v8666_v44 = vld [vmem:[%s10980_s9 + $0x250] sm:$0xff]  }
0x1138   : > { %7795 = vmatmul.mubr.bf16.vlgmr.msra.gmra.mrb[0].mxu1 %v5229_v13  ;;  %7840 = vmatprep.subr.bf16.mxu0 %v8735_v1  ;;  %v5748_v32 = vrot.slane %v10720_v9, 1  ;;  %v5964_v38 = vrot.slane %v10720_v9, 3  ;;  %v5856_v10 = vrot.slane %v10720_v9, 2  ;;  %v8671_v13 = vld [vmem:[%s10980_s9 + $0x220] sm:$0xff]  }
0x1139   : > { %7819 = vmatpush3.bf16.msra.mxu1 %v8615_v50  ;;  %7834 = vmatprep.mubr.msk.bf16.mxu1 %vm8736_vm5, %v8735_v1  ;;  %v8670_v50 = vld [vmem:[%s10980_s9 + $0x260] sm:$0xff]  }
0x113a   : > { %7820 = vmatprep.subr.bf16.mxu1 %v8735_v1 }
0x113b   : > { %7841 = vmatpush3.bf16.msra.mxu0 %v8616_v57  ;;  %v8672_v57 = vld [vmem:[%s10980_s9 + $0x268] sm:$0xff]  }
0x113c   : > { %7842 = vmatprep.subr.bf16.mxu0 %v8735_v1 }
0x113d   : > { %7821 = vmatpush3.bf16.msra.mxu1 %v8617_v21  ;;  %v8673_v21 = vld [vmem:[%s10980_s9 + $0x228] sm:$0xff]  }
0x113e   : > { %7822 = vmatprep.subr.bf16.mxu1 %v8735_v1 }
0x113f   : > { %7843 = vmatpush3.bf16.msra.mxu0 %v8618_v60  ;;  %v8674_v60 = vld [vmem:[%s10980_s9 + $0x270] sm:$0xff]  }
0x1140   : > { %7844 = vmatprep.subr.bf16.mxu0 %v8735_v1 }
0x1141   : > { %7823 = vmatpush3.bf16.msra.mxu1 %v8619_v12  ;;  %v8675_v12 = vld [vmem:[%s10980_s9 + $0x230] sm:$0xff]  }
0x1142   : > { %7824 = vmatprep.subr.bf16.mxu1 %v8735_v1 }
0x1143   : > { %7845 = vmatpush3.bf16.msra.mxu0 %v8620_v34  ;;  %v8676_v34 = vld [vmem:[%s10980_s9 + $0x278] sm:$0xff]  }
0x1144   : > { %7846 = vmatprep.subr.bf16.mxu0 %v8735_v1 }
0x1145   : > { %7825 = vmatpush3.bf16.msra.mxu1 %v8621_v17  ;;  %v6055_v17 = vpack.c.bf16 %v10579_v49, %v10579_v49  ;;  %v8678_v49 = vld [vmem:[%s10982_s11] sm:$0xff]  }
0x1146   : > { %7826 = vmatprep.subr.bf16.mxu1 %v8735_v1 }
0x1147   : > { %7847 = vmatpush3.bf16.msra.mxu0 %v8622_v11  ;;  %v8677_v11 = vld [vmem:[%s10980_s9 + $0x238] sm:$0xff]  }
0x1148   : > { %7848 = vmatprep.subr.bf16.mxu0 %v8735_v1 }
0x1149   : > { %7827 = vmatpush3.bf16.msra.mxu1 %v8623_v39  ;;  %v6180_v39 = vrot.slane %v6055_v17, 1 }
0x114a   : > { %7828 = vmatprep.subr.bf16.mxu1 %v8735_v1 }
0x114b   : > { %7849 = vmatpush3.bf16.msra.mxu0 %v8624_v35  ;;  %v8679_v35 = vld [vmem:[%s10982_s11 + $0x8] sm:$0xff]  }
0x114c   : > { %7850 = vmatprep.subr.bf16.mxu0 %v8735_v1 }
0x114d   : > { %7829 = vmatpush3.bf16.msra.mxu1 %v8625_v19  ;;  %v8680_v19 = vld [vmem:[%s10982_s11 + $0x10] sm:$0xff]  }
0x114e   : > { %7830 = vmatprep.subr.bf16.mxu1 %v8735_v1 }
0x114f   : > { %7851 = vmatpush3.bf16.msra.mxu0 %v8626_v24  ;;  %v8681_v24 = vld [vmem:[%s10982_s11 + $0x18] sm:$0xff]  }
0x1150   : > { %7852 = vmatprep.subr.bf16.mxu0 %v8735_v1 }
0x1151   : > { %7831 = vmatpush3.bf16.msra.mxu1 %v8627_v31  ;;  %v8682_v31 = vld [vmem:[%s10982_s11 + $0x20] sm:$0xff]  }
0x1152   : > { %7832 = vmatprep.subr.bf16.mxu1 %v8735_v1 }
0x1153   : > { %7853 = vmatpush3.bf16.msra.mxu0 %v8628_v54 }
0x1154   : > { %7878 = vmatprep.subr.bf16.mxu0 %v8735_v1 }
0x1155   : > { %7833 = vmatpush3.bf16.msra.mxu1 %v8629_v0  ;;  %v8683_v0 = vld [vmem:[%s10982_s11 + $0x28] sm:$0xff]  }
0x1156   : > { %7855 = vmatmul.mubr.bf16.vlgmr.msra.gmra.mrb[8].mxu0 %v5532_v20  ;;  %7858 = vmatprep.subr.bf16.mxu1 %v8735_v1 }
0x1157   : > { %7879 = vmatpush3.bf16.msra.mxu0 %v8630_v43  ;;  %7894 = vmatprep.mubr.msk.bf16.mxu0 %vm8736_vm5, %v8735_v1 }
0x1158   : > { %7835 = vmatmul.mubr.bf16.vlgmr.msra.gmra.mrb[4].mxu1 %v5424_v6  ;;  %7880 = vmatprep.subr.bf16.mxu0 %v8735_v1 }
0x1159   : > { %7859 = vmatpush3.bf16.msra.mxu1 %v8631_v26  ;;  %7874 = vmatprep.mubr.msk.bf16.mxu1 %vm8736_vm5, %v8735_v1 }
0x115a   : > { %7860 = vmatprep.subr.bf16.mxu1 %v8735_v1 }
0x115b   : > { %7881 = vmatpush3.bf16.msra.mxu0 %v8632_v47 }
0x115c   : > { %7882 = vmatprep.subr.bf16.mxu0 %v8735_v1 }
0x115d   : > { %7861 = vmatpush3.bf16.msra.mxu1 %v8633_v27 }
0x115e   : > { %7862 = vmatprep.subr.bf16.mxu1 %v8735_v1 }
0x115f   : > { %7883 = vmatpush3.bf16.msra.mxu0 %v8634_v33 }
0x1160   : > { %7884 = vmatprep.subr.bf16.mxu0 %v8735_v1 }
0x1161   : > { %7863 = vmatpush3.bf16.msra.mxu1 %v8635_v46  ;;  %v8684_v46 = vld [vmem:[%s10982_s11 + $0x30] sm:$0xff]  }
0x1162   : > { %7864 = vmatprep.subr.bf16.mxu1 %v8735_v1 }
0x1163   : > { %7885 = vmatpush3.bf16.msra.mxu0 %v8636_v14 }
0x1164   : > { %7886 = vmatprep.subr.bf16.mxu0 %v8735_v1 }
0x1165   : > { %7865 = vmatpush3.bf16.msra.mxu1 %v8637_v37  ;;  %v8685_v37 = vld [vmem:[%s10982_s11 + $0x38] sm:$0xff]  }
0x1166   : > { %7866 = vmatprep.subr.bf16.mxu1 %v8735_v1 }
0x1167   : > { %7887 = vmatpush3.bf16.msra.mxu0 %v8638_v23  ;;  %v8686_v23 = vld [vmem:[%s10984_s13] sm:$0xff]  }
0x1168   : > { %7888 = vmatprep.subr.bf16.mxu0 %v8735_v1 }
0x1169   : > { %7867 = vmatpush3.bf16.msra.mxu1 %v8639_v42  ;;  %v8687_v42 = vld [vmem:[%s10984_s13 + $0x8] sm:$0xff]  }
0x116a   : > { %7868 = vmatprep.subr.bf16.mxu1 %v8735_v1 }
0x116b   : > { %7889 = vmatpush3.bf16.msra.mxu0 %v8640_v62 }
0x116c   : > { %7890 = vmatprep.subr.bf16.mxu0 %v8735_v1 }
0x116d   : > { %7869 = vmatpush3.bf16.msra.mxu1 %v8641_v7 }
0x116e   : > { %7870 = vmatprep.subr.bf16.mxu1 %v8735_v1 }
0x116f   : > { %7891 = vmatpush3.bf16.msra.mxu0 %v8642_v52 }
0x1170   : > { %7892 = vmatprep.subr.bf16.mxu0 %v8735_v1 }
0x1171   : > { %7871 = vmatpush3.bf16.msra.mxu1 %v8643_v30 }
0x1172   : > { %7872 = vmatprep.subr.bf16.mxu1 %v8735_v1 }
0x1173   : > { %7893 = vmatpush3.bf16.msra.mxu0 %v8644_v3 }
0x1174   : > { %7918 = vmatprep.subr.bf16.mxu0 %v8735_v1 }
0x1175   : > { %7873 = vmatpush3.bf16.msra.mxu1 %v8645_v58 }
0x1176   : > { %7895 = vmatmul.mubr.bf16.vlgmr.msra.gmra.mrb[12].mxu0 %v5748_v32  ;;  %7898 = vmatprep.subr.bf16.mxu1 %v8735_v1 }
0x1177   : > { %7919 = vmatpush3.bf16.msra.mxu0 %v8646_v36  ;;  %7934 = vmatprep.mubr.msk.bf16.mxu0 %vm8736_vm5, %v8735_v1 }
0x1178   : > { %7875 = vmatmul.mubr.bf16.vlgmr.msra.gmra.mrb[8].mxu1 %v10720_v9  ;;  %7920 = vmatprep.subr.bf16.mxu0 %v8735_v1 }
0x1179   : > { %7899 = vmatpush3.bf16.msra.mxu1 %v8647_v15  ;;  %7914 = vmatprep.mubr.msk.bf16.mxu1 %vm8736_vm5, %v8735_v1 }
0x117a   : > { %7900 = vmatprep.subr.bf16.mxu1 %v8735_v1 }
0x117b   : > { %7921 = vmatpush3.bf16.msra.mxu0 %v8648_v8 }
0x117c   : > { %7922 = vmatprep.subr.bf16.mxu0 %v8735_v1 }
0x117d   : > { %7901 = vmatpush3.bf16.msra.mxu1 %v8649_v28 }
0x117e   : > { %7902 = vmatprep.subr.bf16.mxu1 %v8735_v1 }
0x117f   : > { %7923 = vmatpush3.bf16.msra.mxu0 %v8650_v48 }
0x1180   : > { %7924 = vmatprep.subr.bf16.mxu0 %v8735_v1 }
0x1181   : > { %7903 = vmatpush3.bf16.msra.mxu1 %v8651_v16 }
0x1182   : > { %7904 = vmatprep.subr.bf16.mxu1 %v8735_v1 }
0x1183   : > { %7925 = vmatpush3.bf16.msra.mxu0 %v8652_v61 }
0x1184   : > { %7926 = vmatprep.subr.bf16.mxu0 %v8735_v1 }
0x1185   : > { %7905 = vmatpush3.bf16.msra.mxu1 %v8653_v29 }
0x1186   : > { %7906 = vmatprep.subr.bf16.mxu1 %v8735_v1 }
0x1187   : > { %7927 = vmatpush3.bf16.msra.mxu0 %v8654_v51 }
0x1188   : > { %7928 = vmatprep.subr.bf16.mxu0 %v8735_v1 }
0x1189   : > { %7907 = vmatpush3.bf16.msra.mxu1 %v8655_v41 }
0x118a   : > { %7908 = vmatprep.subr.bf16.mxu1 %v8735_v1 }
0x118b   : > { %7929 = vmatpush3.bf16.msra.mxu0 %v8656_v25 }
0x118c   : > { %7930 = vmatprep.subr.bf16.mxu0 %v8735_v1 }
0x118d   : > { %7909 = vmatpush3.bf16.msra.mxu1 %v8657_v55 }
0x118e   : > { %7910 = vmatprep.subr.bf16.mxu1 %v8735_v1 }
0x118f   : > { %7931 = vmatpush3.bf16.msra.mxu0 %v8658_v18 }
0x1190   : > { %7932 = vmatprep.subr.bf16.mxu0 %v8735_v1 }
0x1191   : > { %7911 = vmatpush3.bf16.msra.mxu1 %v8659_v56 }
0x1192   : > { %7912 = vmatprep.subr.bf16.mxu1 %v8735_v1 }
0x1193   : > { %7933 = vmatpush3.bf16.msra.mxu0 %v8660_v63 }
0x1194   : > { %7958 = vmatprep.subr.bf16.mxu0 %v8735_v1 }
0x1195   : > { %7913 = vmatpush3.bf16.msra.mxu1 %v8661_v4 }
0x1196   : > { %7935 = vmatmul.mubr.bf16.vlgmr.msra.gmra.mrb[16].mxu0 %v5964_v38  ;;  %7938 = vmatprep.subr.bf16.mxu1 %v8735_v1 }
0x1197   : > { %7959 = vmatpush3.bf16.msra.mxu0 %v8662_v53  ;;  %7974 = vmatprep.mubr.msk.bf16.mxu0 %vm8736_vm5, %v8735_v1 }
0x1198   : > { %7915 = vmatmul.mubr.bf16.vlgmr.msra.gmra.mrb[12].mxu1 %v5856_v10  ;;  %7960 = vmatprep.subr.bf16.mxu0 %v8735_v1 }
0x1199   : > { %7939 = vmatpush3.bf16.msra.mxu1 %v8663_v5  ;;  %7954 = vmatprep.mubr.msk.bf16.mxu1 %vm8736_vm5, %v8735_v1 }
0x119a   : > { %7940 = vmatprep.subr.bf16.mxu1 %v8735_v1 }
0x119b   : > { %7961 = vmatpush3.bf16.msra.mxu0 %v8664_v2 }
0x119c   : > { %7962 = vmatprep.subr.bf16.mxu0 %v8735_v1 }
0x119d   : > { %7941 = vmatpush3.bf16.msra.mxu1 %v8665_v45 }
0x119e   : > { %7942 = vmatprep.subr.bf16.mxu1 %v8735_v1 }
0x119f   : > { %7963 = vmatpush3.bf16.msra.mxu0 %v8666_v44 }
0x11a0   : > { %7964 = vmatprep.subr.bf16.mxu0 %v8735_v1 }
0x11a1   : > { %7943 = vmatpush3.bf16.msra.mxu1 %v8667_v22 }
0x11a2   : > { %7944 = vmatprep.subr.bf16.mxu1 %v8735_v1 }
0x11a3   : > { %7965 = vmatpush3.bf16.msra.mxu0 %v8668_v59 }
0x11a4   : > { %7966 = vmatprep.subr.bf16.mxu0 %v8735_v1 }
0x11a5   : > { %7945 = vmatpush3.bf16.msra.mxu1 %v8669_v40 }
0x11a6   : > { %7946 = vmatprep.subr.bf16.mxu1 %v8735_v1 }
0x11a7   : > { %7967 = vmatpush3.bf16.msra.mxu0 %v8670_v50 }
0x11a8   : > { %7968 = vmatprep.subr.bf16.mxu0 %v8735_v1 }
0x11a9   : > { %7947 = vmatpush3.bf16.msra.mxu1 %v8671_v13 }
0x11aa   : > { %7948 = vmatprep.subr.bf16.mxu1 %v8735_v1 }
0x11ab   : > { %7969 = vmatpush3.bf16.msra.mxu0 %v8672_v57 }
0x11ac   : > { %7970 = vmatprep.subr.bf16.mxu0 %v8735_v1 }
0x11ad   : > { %7949 = vmatpush3.bf16.msra.mxu1 %v8673_v21  ;;  %v7122_v21 = vld [vmem:[%s10981_s10] ss:$0 sm:$0xff] }
0x11ae   : > { %7950 = vmatprep.subr.bf16.mxu1 %v8735_v1 }
0x11af   : > { %7971 = vmatpush3.bf16.msra.mxu0 %v8674_v60 }
0x11b0   : > { %7972 = vmatprep.subr.bf16.mxu0 %v8735_v1 }
0x11b1   : > { %7951 = vmatpush3.bf16.msra.mxu1 %v8675_v12 }
0x11b2   : > { %7952 = vmatprep.subr.bf16.mxu1 %v8735_v1 }
0x11b3   : > { %7973 = vmatpush3.bf16.msra.mxu0 %v8676_v34 }
0x11b4   : > { %7998 = vmatprep.subr.bf16.mxu0 %v8735_v1 }
0x11b5   : > { %7953 = vmatpush3.bf16.msra.mxu1 %v8677_v11 }
0x11b6   : > { %7975 = vmatmul.mubr.bf16.vlgmr.msra.gmra.mrb[20].mxu0 %v6180_v39  ;;  %7978 = vmatprep.subr.bf16.mxu1 %v8735_v1 }
0x11b7   : > { %8006 = vmatprep.mubr.msk.bf16.mxu0 %vm8736_vm5, %v8735_v1  ;;  %7999 = vmatpush3.bf16.msra.mxu0 %v8686_v23 }
0x11b8   : > { %7955 = vmatmul.mubr.bf16.vlgmr.msra.gmra.mrb[16].mxu1 %v6055_v17  ;;  %8000 = vmatprep.subr.bf16.mxu0 %v8735_v1 }
0x11b9   : > { %7994 = vmatprep.mubr.msk.bf16.mxu1 %vm8736_vm5, %v8735_v1  ;;  %7979 = vmatpush3.bf16.msra.mxu1 %v8678_v49  ;;  %v8688_v49 = vld [vmem:[%s10984_s13 + $0x10] sm:$0xff]  }
0x11ba   : > { %7980 = vmatprep.subr.bf16.mxu1 %v8735_v1 }
0x11bb   : > { %8001 = vmatpush3.bf16.msra.mxu0 %v8687_v42 }
0x11bc   : > { %8002 = vmatprep.subr.bf16.mxu0 %v8735_v1 }
0x11bd   : > { %7981 = vmatpush3.bf16.msra.mxu1 %v8679_v35  ;;  %v8689_v35 = vld [vmem:[%s10984_s13 + $0x18] sm:$0xff]  }
0x11be   : > { %7982 = vmatprep.subr.bf16.mxu1 %v8735_v1 }
0x11bf   : > { %8003 = vmatpush3.bf16.msra.mxu0 %v8688_v49 }
0x11c0   : > { %8004 = vmatprep.subr.bf16.mxu0 %v8735_v1 }
0x11c1   : > { %7983 = vmatpush3.bf16.msra.mxu1 %v8680_v19  ;;  %v7123_v19 = vld [vmem:[%s10983_s12] ss:$0 sm:$0xff] }
0x11c2   : > { %7984 = vmatprep.subr.bf16.mxu1 %v8735_v1 }
0x11c3   : > { %8005 = vmatpush3.bf16.msra.mxu0 %v8689_v35 }
0x11c4   : > { %8010 = vmatprep.subr.bf16.mxu0 %v8735_v1 }
0x11c5   : > { %7985 = vmatpush3.bf16.msra.mxu1 %v8681_v24 }
0x11c6   : > { %7986 = vmatprep.subr.bf16.mxu1 %v8735_v1 }
0x11c9   : > { %7987 = vmatpush3.bf16.msra.mxu1 %v8682_v31 }
0x11ca   : > { %7988 = vmatprep.subr.bf16.mxu1 %v8735_v1 }
0x11cd   : > { %7989 = vmatpush3.bf16.msra.mxu1 %v8683_v0 }
0x11ce   : > { %7990 = vmatprep.subr.bf16.mxu1 %v8735_v1 }
0x11d1   : > { %7991 = vmatpush3.bf16.msra.mxu1 %v8684_v46 }
0x11d2   : > { %7992 = vmatprep.subr.bf16.mxu1 %v8735_v1 }
0x11d5   : > { %7993 = vmatpush3.bf16.msra.mxu1 %v8685_v37 }
0x1209   : > { %v5401_v54 = vpop.f32.mrb[4].mxu0 }
0x120a   : > { %v7816_v43 = vpop.f32.mrb[5].mxu0 }
0x120b   : > { %v5313_v20 = vpop.f32.mrb[0].mxu1  ;;  %v5404_v26 = vpop.f32.mrb[6].mxu0 }
0x120c   : > { %v5402_v6 = vadd.f32 %v5401_v54, %v5313_v20  ;;  %v7796_v47 = vpop.f32.mrb[1].mxu1  ;;  %v7817_v27 = vpop.f32.mrb[7].mxu0  ;;  %v8690_v26 = vld [vmem:[%s11027_s23] sm:$0xff]  }
0x120d   : > { %v5316_v33 = vpop.f32.mrb[2].mxu1  ;;  %v8691_v47 = vld [vmem:[%s11027_s23 + $0x8] sm:$0xff]   ;;  %v7132_v27 = vld [vmem:[%s11028_s26] ss:$0 sm:$0xff] }
0x120e   : > { %v7797_v14 = vpop.f32.mrb[3].mxu1 }
0x1229   : > { %v5616_v62 = vpop.f32.mrb[8].mxu0 }
0x122a   : > { %v7856_v7 = vpop.f32.mrb[9].mxu0 }
0x122b   : > { %v5508_v52 = vpop.f32.mrb[4].mxu1  ;;  %v5619_v30 = vpop.f32.mrb[10].mxu0 }
0x122c   : > { %v5514_v3 = vadd.f32 %v5508_v52, %v5402_v6  ;;  %v7836_v9 = vpop.f32.mrb[5].mxu1  ;;  %v7857_v58 = vpop.f32.mrb[11].mxu0 }
0x122d   : > { %v5511_v36 = vpop.f32.mrb[6].mxu1 }
0x122e   : > { %v7837_v32 = vpop.f32.mrb[7].mxu1  ;;  %v5622_v15 = vadd.f32 %v5616_v62, %v5514_v3 }
0x1249   : > { %v5832_v8 = vpop.f32.mrb[12].mxu0 }
0x124a   : > { %v7896_v28 = vpop.f32.mrb[13].mxu0 }
0x124b   : > { %v5723_v48 = vpop.f32.mrb[8].mxu1  ;;  %v5835_v16 = vpop.f32.mrb[14].mxu0 }
0x124c   : > { %v5729_v61 = vadd.f32 %v5723_v48, %v5622_v15  ;;  %v7876_v29 = vpop.f32.mrb[9].mxu1  ;;  %v7897_v51 = vpop.f32.mrb[15].mxu0 }
0x124d   : > { %v5726_v41 = vpop.f32.mrb[10].mxu1 }
0x124e   : > { %v7877_v25 = vpop.f32.mrb[11].mxu1  ;;  %v5838_v55 = vadd.f32 %v5832_v8, %v5729_v61 }
0x1269   : > { %v6048_v18 = vpop.f32.mrb[16].mxu0 }
0x126a   : > { %v7936_v56 = vpop.f32.mrb[17].mxu0 }
0x126b   : > { %v5940_v63 = vpop.f32.mrb[12].mxu1  ;;  %v6051_v4 = vpop.f32.mrb[18].mxu0 }
0x126c   : > { %v5946_v53 = vadd.f32 %v5940_v63, %v5838_v55  ;;  %v7916_v38 = vpop.f32.mrb[13].mxu1  ;;  %v7937_v5 = vpop.f32.mrb[19].mxu0 }
0x126d   : > { %v5943_v10 = vpop.f32.mrb[14].mxu1 }
0x126e   : > { %v7917_v2 = vpop.f32.mrb[15].mxu1  ;;  %v6054_v45 = vadd.f32 %v6048_v18, %v5946_v53 }
0x1289   : > { %v6264_v44 = vpop.f32.mrb[20].mxu0 }
0x128a   : > { %v7976_v22 = vpop.f32.mrb[21].mxu0 }
0x128b   : > { %v6155_v59 = vpop.f32.mrb[16].mxu1  ;;  %v6267_v40 = vpop.f32.mrb[22].mxu0 }
0x128c   : > { %v6161_v50 = vadd.f32 %v6155_v59, %v6054_v45  ;;  %v7956_v13 = vpop.f32.mrb[17].mxu1  ;;  %v7977_v57 = vpop.f32.mrb[23].mxu0 }
0x128d   : > { %v6158_v60 = vpop.f32.mrb[18].mxu1 }
0x128e   : > { %v6270_v12 = vadd.f32 %v6264_v44, %v6161_v50  ;;  %v7957_v34 = vpop.f32.mrb[19].mxu1 }
0x1290   : > { %v6278_v17 = vadd.f32 %v7122_v21, %v6270_v12 }
0x1292   : > { %v6279_v11 = vmax.f32 %v6278_v17, 0.0 }
0x1294   : > { %v6280_v39 = vpack.c.bf16 %v6279_v11, %v6279_v11 }
0x1296   : > { %7995 = vmatmul.mubr.bf16.vlgmr.msra.gmra.mrb[20].mxu1 %v6280_v39 }
0x1369   : > { %v6386_v24 = vpop.f32.mrb[20].mxu1 }
0x136a   : > { %v6387_v31 = vadd.f32 %v7123_v19, %v6386_v24  ;;  %v7996_v54 = vpop.f32.mrb[21].mxu1 }
0x136b   : > { %v6389_v0 = vpop.f32.mrb[22].mxu1 }
0x136c   : > { %v6392_v43 = vmax.f32 %v6387_v31, 0.0  ;;  %v7997_v20 = vpop.f32.mrb[23].mxu1 }
0x136e   : > { %v6393_v6 = vpack.c.bf16 %v6392_v43, %v6392_v43 }
0x1370   : > { %8007 = vmatmul.mubr.msk.bf16.vlgmr.msra.gmra.mrb[24].mxu0 %vm4016_vm1, %v6393_v6  ;;  %vm6544_vm1 = vcmask 9216  }
0x1371   : > { %8011 = vmatpush3.bf16.msra.mxu0 %v8690_v26  ;;  %8014 = vmatprep.mubr.msk.bf16.mxu0 %vm8736_vm5, %v8735_v1 }
0x1372   : > { %8012 = vmatprep.subr.bf16.mxu0 %v8735_v1  ;;  %v7138_v1 = vld [vmem:[%s11029_s29] ss:$0 sm:$0xff] }
0x1375   : > { %8013 = vmatpush3.bf16.msra.mxu0 %v8691_v47 }
0x1443   : > { %v6470_v33 = vpop.f32.mrb[24].mxu0 }
0x1444   : > { %v6471_v46 = vadd.f32 %v7132_v27, %v6470_v33  ;;  %v8008_v14 = vpop.f32.mrb[25].mxu0 }
0x1445   : > { %v6473_v37 = vpop.f32.mrb[26].mxu0 }
0x1446   : > { %v6476_v23 = vmax.f32 %v6471_v46, 0.0  ;;  %v8009_v42 = vpop.f32.mrb[27].mxu0 }
0x1448   : > { %v6477_v62 = vpack.c.bf16 %v6476_v23, %v6476_v23 }
0x144a   : > { %8015 = vmatmul.mubr.msk.bf16.vlgmr.msra.gmra.mrb[28].mxu0 %vm2515_vm0, %v6477_v62 }
0x151d   : > { %v6538_v7 = vpop.f32.mrb[28].mxu0 }
0x151e   : > { %v6539_v52 = vadd.f32 %v7138_v1, %v6538_v7  ;;  %v8016_v30 = vpop.f32.mrb[29].mxu0 }
0x151f   : > { %v6541_v3 = vpop.f32.mrb[30].mxu0 }
0x1520   : > { %6545 = vst.msk [vmem:[#allocation3] sm:$0x3] %vm6544_vm1, %v6539_v52  ;;  %v8017_v9 = vpop.f32.mrb[31].mxu0 }
0x1521 PF: > { %p8040_p6 = scmp.eq.s32.totalorder %s8834_s25, 3  ;;  %s8737_s27 = smov [#allocation3]  }
0x1522   : > { %s6553_s19 = sshll.u32 %s8737_s27, 4  ;;  %s6554_s19 = int_to_ptr.vmem [resolvable:$true] %s6553_s19 }
0x1523   : > { %s8692_s20 = scalar_lea.vmem %s6554_s19, 32  ;;  %p8699_p10 = scmp.lt.s32.totalorder %s6554_s19, %s6554_s19 }
0x1524   : > { %p8693_p7 = scmp.ne.s32.totalorder %s6554_s19, %s8692_s20  ;;  %p8700_p11 = scmp.lt.s32.totalorder %s8692_s20, %s8692_s20 }
0x1526   : > { %p8694_p8 = pnand %p8693_p7, %p8040_p6  ;;  %p8701_p12 = por %p8700_p11, %p8699_p10 }
0x1528   : > { %p8695_p9 = pneg %p8694_p8 }
0x152a   : > { %p8702_p13 = pnand %p8701_p12, %p8695_p9 }
0x152c   : > { %8705 = shalt.err (!%p8702_p13)
}
0x152d   : > { %s11030_s15 = sld [smem:[#allocation19_spill]] }
0x1533   : > { %s8706_s30 = scalar_lea.hbm %s11030_s15, 32 }
0x1534   : > { %p8707_p0 = scmp.ne.s32.totalorder %s11030_s15, %s8706_s30  ;;  %p8712_p3 = scmp.lt.u32.totalorder %s8706_s30, %s11030_s15 }
0x1536   : > { %p8708_p1 = pnand %p8707_p0, %p8040_p6 }
0x1538   : > { %p8709_p2 = pneg %p8708_p1 }
0x153a   : > { %p8714_p4 = pnand %p8712_p3, %p8709_p2 }
0x153c   : > { %8717 = shalt.err (!%p8714_p4)
}
0x153d   : > { %8037 = dma.vmem_to_hbm [thread:$0]  (%p8040_p6), %s6554_s19, 32, %s11030_s15, [#allocation4]  }
0x153e   : > { %8723 = dma.done.wait (%p8040_p6), [#allocation4], 32  }
0x153f   : > { %8725 = vsyncadd (%p8040_p6), [#allocation4], 4294967264 }
0x1540 PF: > { %s11031_s28 = sld [smem:[#allocation6_spill]] }
0x1546   : > { %s28_s24 = sadd.s32 1, %s11031_s28  }
0x1547   : > { %p25_p5 = scmp.ge.s32.totalorder %s28_s24, 6  }
0x1549   :  { %27 = sbr.rel (!%p25_p5) target bundleno = 8 (0x8), region = 144 }
0x1550   :  { %6566 = vsyncpa [#allocation4], 1 }
0x1551   :  { %6568 = vsyncpa [#allocation4 + $0x1], 1 }

</bundles_post_ra>
